<compile_context>
chip_gen: v7x
topology: tpu7x:2x2x1
jax: 0.10.0
libtpu: 0.0.40
codegen_flags: <defaults>
</compile_context>

<pallas_src>
import functools

import jax
import jax.numpy as jnp
from jax import lax
from jax.experimental import pallas as pl
from jax.experimental.pallas import tpu as pltpu

LEAK = 0.2
EPS = 1e-5

TILE_M = 256
TILE_N = 256
TILE_K = 512
VMEM_LIMIT_BYTES = 32 * 1024 * 1024  # fits v7x (64 MiB physical) with headroom


def _round_up(x, m):
    return (x + m - 1) // m * m


# ----------------------------- Pallas kernels ------------------------------

def _conv_matmul_kernel(p_ref, w_ref, b_ref, *rest, act, compute_stats,
                        n_k, tile_m, m_true):
    """Tiled  y = P @ W + b  (bf16 operands on the MXU, f32 accumulate).

    Epilogue on the last K step:
      * act=True           -> fused LeakyReLU(0.2)
      * compute_stats=True -> also emit per-channel (sum, sum_sq) for this
                              M tile so the following BatchNorm does not
                              re-read y from HBM for its statistics pass.
    """
    if compute_stats:
        y_ref, stats_ref, acc_ref = rest
    else:
        y_ref, acc_ref = rest
        stats_ref = None

    k = pl.program_id(2)

    @pl.when(k == 0)
    def _():
        acc_ref[...] = jnp.zeros_like(acc_ref)

    acc_ref[...] += jnp.dot(p_ref[...], w_ref[...],
                            preferred_element_type=jnp.float32)

    @pl.when(k == n_k - 1)
    def _():
        y = acc_ref[...] + b_ref[...]                 # f32 epilogue
        if act:
            y = jnp.where(y > 0, y, LEAK * y)         # fused LeakyReLU(0.2)
        y_ref[...] = y
        if compute_stats:
            ysq = y * y
            if m_true % tile_m != 0:                  # mask zero-padded rows
                rows = (pl.program_id(0) * tile_m
                        + lax.broadcasted_iota(jnp.int32, y.shape, 0))
                valid = rows < m_true
                y = jnp.where(valid, y, 0.0)
                ysq = jnp.where(valid, ysq, 0.0)
            s1 = jnp.sum(y, axis=0, keepdims=True)    # (1, tn)
            s2 = jnp.sum(ysq, axis=0, keepdims=True)  # (1, tn)
            stats_ref[...] = jnp.concatenate([s1, s2], axis=0)[None]


def _bn_apply_kernel(y_ref, sc_ref, sh_ref, o_ref):
    """out = y * scale + shift fused with LeakyReLU(0.2) (tiled elementwise)."""
    out = y_ref[...] * sc_ref[...] + sh_ref[...]
    o_ref[...] = jnp.where(out > 0, out, LEAK * out)


# --------------------------- kernel call wrappers ---------------------------

def conv_matmul(patches, w2d, bias, *, act, compute_stats):
    """patches: (M, K) f32, w2d: (K, Cout) f32, bias: (Cout,) f32.

    Returns (y_pad (Mp, Np) f32, stats (gm, 2, Np) f32 or None, tm, tn).
    """
    M, K = patches.shape
    Cout = w2d.shape[1]

    tm = min(TILE_M, _round_up(M, 8))
    tk = min(TILE_K, _round_up(K, 128))
    tn = min(TILE_N, _round_up(Cout, 128))
    Mp = _round_up(M, tm)
    Kp = _round_up(K, tk)
    Np = _round_up(Cout, tn)
    gm, gn, gk = Mp // tm, Np // tn, Kp // tk

    # bf16 operands for the MXU; zero padding keeps the matmul exact.
    p = jnp.pad(patches, ((0, Mp - M), (0, Kp - K))).astype(jnp.bfloat16)
    w = jnp.pad(w2d, ((0, Kp - K), (0, Np - Cout))).astype(jnp.bfloat16)
    b = jnp.pad(bias.reshape(1, Cout), ((0, 0), (0, Np - Cout)))  # f32

    kern = functools.partial(
        _conv_matmul_kernel, act=act, compute_stats=compute_stats,
        n_k=gk, tile_m=tm, m_true=M)

    if compute_stats:
        out_shape = (jax.ShapeDtypeStruct((Mp, Np), jnp.float32),
                     jax.ShapeDtypeStruct((gm, 2, Np), jnp.float32))
        out_specs = (pl.BlockSpec((tm, tn), lambda i, j, k: (i, j)),
                     pl.BlockSpec((1, 2, tn), lambda i, j, k: (i, 0, j)))
    else:
        out_shape = jax.ShapeDtypeStruct((Mp, Np), jnp.float32)
        out_specs = pl.BlockSpec((tm, tn), lambda i, j, k: (i, j))

    out = pl.pallas_call(
        kern,
        out_shape=out_shape,
        grid=(gm, gn, gk),
        in_specs=[
            pl.BlockSpec((tm, tk), lambda i, j, k: (i, k)),
            pl.BlockSpec((tk, tn), lambda i, j, k: (k, j)),
            pl.BlockSpec((1, tn), lambda i, j, k: (0, j)),
        ],
        out_specs=out_specs,
        scratch_shapes=[pltpu.VMEM((tm, tn), jnp.float32)],
        compiler_params=pltpu.CompilerParams(
            dimension_semantics=("parallel", "parallel", "arbitrary"),
            vmem_limit_bytes=VMEM_LIMIT_BYTES,
        ),
    )(p, w, b)

    if compute_stats:
        y_pad, stats = out
    else:
        y_pad, stats = out, None
    return y_pad, stats, tm, tn


def bn_apply(y_pad, scale, shift, tm, tn):
    """Tiled (y * scale + shift) fused with LeakyReLU. scale/shift: (Np,)."""
    Mp, Np = y_pad.shape
    gm, gn = Mp // tm, Np // tn
    return pl.pallas_call(
        _bn_apply_kernel,
        out_shape=jax.ShapeDtypeStruct((Mp, Np), jnp.float32),
        grid=(gm, gn),
        in_specs=[
            pl.BlockSpec((tm, tn), lambda i, j: (i, j)),
            pl.BlockSpec((1, tn), lambda i, j: (0, j)),
            pl.BlockSpec((1, tn), lambda i, j: (0, j)),
        ],
        out_specs=pl.BlockSpec((tm, tn), lambda i, j: (i, j)),
        compiler_params=pltpu.CompilerParams(
            dimension_semantics=("parallel", "parallel"),
            vmem_limit_bytes=VMEM_LIMIT_BYTES,
        ),
    )(y_pad, scale.reshape(1, Np), shift.reshape(1, Np))


# ------------------------------- glue (JAX) ---------------------------------

def im2col(x, k, stride, pad):
    """x: NHWC. Returns (N*oh*ow, k*k*C) patches ordered (kh, kw, C)."""
    # TODO(synk): fuse im2col into the conv kernel (overlapping-window
    # BlockSpec / in-kernel gather) to avoid materializing the 4-16x expanded
    # patches array in HBM.
    x = jnp.pad(x, ((0, 0), (pad, pad), (pad, pad), (0, 0)))
    N, H, W, C = x.shape
    oh = (H - k) // stride + 1
    ow = (W - k) // stride + 1
    cols = []
    for kh in range(k):
        for kw in range(k):
            cols.append(
                x[:, kh:kh + stride * oh:stride, kw:kw + stride * ow:stride, :])
    p = jnp.stack(cols, axis=3)                       # (N, oh, ow, k*k, C)
    return p.reshape(N * oh * ow, k * k * C), (N, oh, ow)


def conv_block(x, w, b, gamma, beta, *, stride, has_bn, fuse_act):
    """One discriminator layer on an NHWC input x."""
    Cout = w.shape[-1]
    K = w.shape[0] * w.shape[1] * w.shape[2]
    patches, (N, oh, ow) = im2col(x, k=4, stride=stride, pad=1)
    M = patches.shape[0]

    y_pad, stats, tm, tn = conv_matmul(
        patches, w.reshape(K, Cout), b, act=fuse_act, compute_stats=has_bn)
    Np = y_pad.shape[1]

    if has_bn:
        # Training-mode BatchNorm of a fresh module: batch stats, biased var.
        ssum = jnp.sum(stats[:, 0, :], axis=0)        # (Np,)
        ssq = jnp.sum(stats[:, 1, :], axis=0)
        mean = ssum / M
        var = jnp.maximum(ssq / M - mean * mean, 0.0)
        rstd = lax.rsqrt(var + EPS)
        gamma_p = jnp.pad(gamma, (0, Np - Cout), constant_values=1.0)
        beta_p = jnp.pad(beta, (0, Np - Cout))
        scale = gamma_p * rstd
        shift = beta_p - mean * scale
        y_pad = bn_apply(y_pad, scale, shift, tm, tn)

    return y_pad[:M, :Cout].reshape(N, oh, ow, Cout)


def init_params(key, in_channels=3):
    """Deterministic synthetic parameters for the 5 conv layers."""
    specs = [(in_channels * 2, 64), (64, 128), (128, 256), (256, 512), (512, 1)]
    params = []
    for cin, cout in specs:
        key, k1, k2 = jax.random.split(key, 3)
        fan_in = cin * 16  # 4x4 kernel
        # Weight stored (kh, kw, cin, cout): matches im2col feature ordering.
        w = jax.random.normal(k1, (4, 4, cin, cout), jnp.float32) / jnp.sqrt(
            jnp.float32(fan_in))
        b = jax.random.normal(k2, (cout,), jnp.float32) * 0.01
        gamma = jnp.ones((cout,), jnp.float32)        # BatchNorm default init
        beta = jnp.zeros((cout,), jnp.float32)
        params.append((w, b, gamma, beta))
    return params


def discriminator_forward(params, img_A, img_B):
    """img_A, img_B: NCHW float32. Returns NCHW patch map, as in PyTorch."""
    x = jnp.concatenate([img_A, img_B], axis=1)       # channel concat (NCHW)
    x = jnp.transpose(x, (0, 2, 3, 1))                # -> NHWC
    strides = [2, 2, 2, 2, 1]
    has_bn = [False, True, True, True, False]
    n_layers = len(params)
    for i, (w, b, g, be) in enumerate(params):
        is_final = i == n_layers - 1
        x = conv_block(x, w, b, g, be,
                       stride=strides[i],
                       has_bn=has_bn[i],
                       fuse_act=(not has_bn[i]) and (not is_final))
    return jnp.transpose(x, (0, 3, 1, 2))             # back to NCHW


# ---------------------------------- main -----------------------------------

if __name__ == "__main__":
    key = jax.random.PRNGKey(0)
    kp, ka, kb = jax.random.split(key, 3)

    params = init_params(kp, in_channels=3)
    # Small but valid shapes: 32x32 spatial -> 16 -> 8 -> 4 -> 2 -> 1 patch out.
    img_A = jax.random.normal(ka, (2, 3, 32, 32), jnp.float32)
    img_B = jax.random.normal(kb, (2, 3, 32, 32), jnp.float32)

    fwd = jax.jit(discriminator_forward)
    out = jax.block_until_ready(fwd(params, img_A, img_B))

    assert out.shape == (2, 1, 1, 1), out.shape
    assert out.dtype == jnp.float32
    print("KERNEL_OK")
</pallas_src>

<mosaic_0001>
module attributes {stable_mosaic.version = 11 : i64} {
  func.func @_conv_matmul_kernel(%arg0: i32, %arg1: i32, %arg2: i32, %arg3: memref<256x128xbf16, #tpu.memory_space<vmem>>, %arg4: memref<128x128xbf16, #tpu.memory_space<vmem>>, %arg5: memref<1x128xf32, #tpu.memory_space<vmem>>, %arg6: memref<256x128xf32, #tpu.memory_space<vmem>>, %arg7: memref<256x128xf32, #tpu.memory_space<vmem>>) attributes {dimension_semantics = [#tpu.dimension_semantics<parallel>, #tpu.dimension_semantics<parallel>, #tpu.dimension_semantics<arbitrary>], iteration_bounds = array<i64: 2, 1, 1>, scalar_prefetch = 0 : i64, scratch_operands = 1 : i64, tpu.core_type = #tpu.core_type<tc>, window_params = [{transform_indices = @transform_0, window_bounds = array<i64: 256, 128>}, {transform_indices = @transform_1, window_bounds = array<i64: 128, 128>}, {transform_indices = @transform_2, window_bounds = array<i64: 1, 128>}, {transform_indices = @transform_3, window_bounds = array<i64: 256, 128>}]} {
    %c0_i32 = arith.constant 0 : i32
    %0 = arith.cmpi eq, %arg2, %c0_i32 : i32
    %1 = arith.extui %0 : i1 to i32
    %c0_i32_0 = arith.constant 0 : i32
    %2 = arith.cmpi ne, %1, %c0_i32_0 : i32
    scf.if %2 {
      %cst_10 = arith.constant 0.000000e+00 : f32
      %12 = vector.broadcast %cst_10 : f32 to vector<256x128xf32>
      %c0_11 = arith.constant 0 : index
      %c0_12 = arith.constant 0 : index
      %13 = vector.load %arg7[%c0_11, %c0_12] : memref<256x128xf32, #tpu.memory_space<vmem>>, vector<256x128xf32>
      tpu.vector_store %arg7[%c0_11, %c0_12], %12 {strides = array<i32>} : memref<256x128xf32, #tpu.memory_space<vmem>>, vector<256x128xf32>,
    } else {
    }
    %c0 = arith.constant 0 : index
    %c0_1 = arith.constant 0 : index
    %3 = vector.load %arg7[%c0, %c0_1] : memref<256x128xf32, #tpu.memory_space<vmem>>, vector<256x128xf32>
    %c0_2 = arith.constant 0 : index
    %c0_3 = arith.constant 0 : index
    %4 = vector.load %arg3[%c0_2, %c0_3] : memref<256x128xbf16, #tpu.memory_space<vmem>>, vector<256x128xbf16>
    %c0_4 = arith.constant 0 : index
    %c0_5 = arith.constant 0 : index
    %5 = vector.load %arg4[%c0_4, %c0_5] : memref<128x128xbf16, #tpu.memory_space<vmem>>, vector<128x128xbf16>
    %cst = arith.constant dense<0.000000e+00> : vector<256x128xf32>
    %6 = tpu.matmul %4, %5, %cst {dimension_numbers = #tpu.dot_dimension_numbers<[1], [0], [0], [1], [0, 0, 1, 1], [], []>} : vector<256x128xbf16>, vector<128x128xbf16>, vector<256x128xf32> -> vector<256x128xf32>
    %7 = arith.addf %3, %6 : vector<256x128xf32>
    %c0_6 = arith.constant 0 : index
    %c0_7 = arith.constant 0 : index
    %8 = vector.load %arg7[%c0_6, %c0_7] : memref<256x128xf32, #tpu.memory_space<vmem>>, vector<256x128xf32>
    tpu.vector_store %arg7[%c0_6, %c0_7], %7 {strides = array<i32>} : memref<256x128xf32, #tpu.memory_space<vmem>>, vector<256x128xf32>,
    %c0_i32_8 = arith.constant 0 : i32
    %9 = arith.cmpi eq, %arg2, %c0_i32_8 : i32
    %10 = arith.extui %9 : i1 to i32
    %c0_i32_9 = arith.constant 0 : i32
    %11 = arith.cmpi ne, %10, %c0_i32_9 : i32
    scf.if %11 {
      %c0_10 = arith.constant 0 : index
      %c0_11 = arith.constant 0 : index
      %12 = vector.load %arg7[%c0_10, %c0_11] : memref<256x128xf32, #tpu.memory_space<vmem>>, vector<256x128xf32>
      %c0_12 = arith.constant 0 : index
      %c0_13 = arith.constant 0 : index
      %13 = vector.load %arg5[%c0_12, %c0_13] : memref<1x128xf32, #tpu.memory_space<vmem>>, vector<1x128xf32>
      %14 = vector.broadcast %13 : vector<1x128xf32> to vector<256x128xf32>
      %15 = arith.addf %12, %14 : vector<256x128xf32>
      %cst_14 = arith.constant 0.000000e+00 : f32
      %16 = vector.broadcast %cst_14 : f32 to vector<256x128xf32>
      %17 = arith.cmpf ogt, %15, %16 : vector<256x128xf32>
      %cst_15 = arith.constant 2.000000e-01 : f32
      %18 = vector.broadcast %cst_15 : f32 to vector<256x128xf32>
      %19 = arith.mulf %18, %15 : vector<256x128xf32>
      %20 = arith.select %17, %15, %19 : vector<256x128xi1>, vector<256x128xf32>
      %c0_16 = arith.constant 0 : index
      %c0_17 = arith.constant 0 : index
      %21 = vector.load %arg6[%c0_16, %c0_17] : memref<256x128xf32, #tpu.memory_space<vmem>>, vector<256x128xf32>
      tpu.vector_store %arg6[%c0_16, %c0_17], %20 {strides = array<i32>} : memref<256x128xf32, #tpu.memory_space<vmem>>, vector<256x128xf32>,
    } else {
    }
    return
  }
  func.func @transform_0(%arg0: i32, %arg1: i32, %arg2: i32) -> (i32, i32) {
    %c0_i32 = arith.constant 0 : i32
    return %arg0, %arg2 : i32, i32
  }
  func.func @transform_1(%arg0: i32, %arg1: i32, %arg2: i32) -> (i32, i32) {
    %c0_i32 = arith.constant 0 : i32
    return %arg2, %arg1 : i32, i32
  }
  func.func @transform_2(%arg0: i32, %arg1: i32, %arg2: i32) -> (i32, i32) {
    %c0_i32 = arith.constant 0 : i32
    %c0_i32_0 = arith.constant 0 : i32
    return %c0_i32, %arg1 : i32, i32
  }
  func.func @transform_3(%arg0: i32, %arg1: i32, %arg2: i32) -> (i32, i32) {
    %c0_i32 = arith.constant 0 : i32
    return %arg0, %arg1 : i32, i32
  }
}

module attributes {stable_mosaic.version = 11 : i64} {
  func.func @_conv_matmul_kernel(%arg0: i32, %arg1: i32, %arg2: i32, %arg3: memref<128x512xbf16, #tpu.memory_space<vmem>>, %arg4: memref<512x128xbf16, #tpu.memory_space<vmem>>, %arg5: memref<1x128xf32, #tpu.memory_space<vmem>>, %arg6: memref<128x128xf32, #tpu.memory_space<vmem>>, %arg7: memref<1x2x128xf32, #tpu.memory_space<vmem>>, %arg8: memref<128x128xf32, #tpu.memory_space<vmem>>) attributes {dimension_semantics = [#tpu.dimension_semantics<parallel>, #tpu.dimension_semantics<parallel>, #tpu.dimension_semantics<arbitrary>], iteration_bounds = array<i64: 1, 1, 2>, scalar_prefetch = 0 : i64, scratch_operands = 1 : i64, tpu.core_type = #tpu.core_type<tc>, window_params = [{transform_indices = @transform_0, window_bounds = array<i64: 128, 512>}, {transform_indices = @transform_1, window_bounds = array<i64: 512, 128>}, {transform_indices = @transform_2, window_bounds = array<i64: 1, 128>}, {transform_indices = @transform_3, window_bounds = array<i64: 128, 128>}, {transform_indices = @transform_4, window_bounds = array<i64: 1, 2, 128>}]} {
    %c0_i32 = arith.constant 0 : i32
    %0 = arith.cmpi eq, %arg2, %c0_i32 : i32
    %1 = arith.extui %0 : i1 to i32
    %c0_i32_0 = arith.constant 0 : i32
    %2 = arith.cmpi ne, %1, %c0_i32_0 : i32
    scf.if %2 {
      %cst_9 = arith.constant 0.000000e+00 : f32
      %12 = vector.broadcast %cst_9 : f32 to vector<128x128xf32>
      %c0_10 = arith.constant 0 : index
      %c0_11 = arith.constant 0 : index
      %13 = vector.load %arg8[%c0_10, %c0_11] : memref<128x128xf32, #tpu.memory_space<vmem>>, vector<128x128xf32>
      tpu.vector_store %arg8[%c0_10, %c0_11], %12 {strides = array<i32>} : memref<128x128xf32, #tpu.memory_space<vmem>>, vector<128x128xf32>,
    } else {
    }
    %c0 = arith.constant 0 : index
    %c0_1 = arith.constant 0 : index
    %3 = vector.load %arg8[%c0, %c0_1] : memref<128x128xf32, #tpu.memory_space<vmem>>, vector<128x128xf32>
    %c0_2 = arith.constant 0 : index
    %c0_3 = arith.constant 0 : index
    %4 = vector.load %arg3[%c0_2, %c0_3] : memref<128x512xbf16, #tpu.memory_space<vmem>>, vector<128x512xbf16>
    %c0_4 = arith.constant 0 : index
    %c0_5 = arith.constant 0 : index
    %5 = vector.load %arg4[%c0_4, %c0_5] : memref<512x128xbf16, #tpu.memory_space<vmem>>, vector<512x128xbf16>
    %cst = arith.constant dense<0.000000e+00> : vector<128x128xf32>
    %6 = tpu.matmul %4, %5, %cst {dimension_numbers = #tpu.dot_dimension_numbers<[1], [0], [0], [1], [0, 0, 1, 1], [], []>} : vector<128x512xbf16>, vector<512x128xbf16>, vector<128x128xf32> -> vector<128x128xf32>
    %7 = arith.addf %3, %6 : vector<128x128xf32>
    %c0_6 = arith.constant 0 : index
    %c0_7 = arith.constant 0 : index
    %8 = vector.load %arg8[%c0_6, %c0_7] : memref<128x128xf32, #tpu.memory_space<vmem>>, vector<128x128xf32>
    tpu.vector_store %arg8[%c0_6, %c0_7], %7 {strides = array<i32>} : memref<128x128xf32, #tpu.memory_space<vmem>>, vector<128x128xf32>,
    %c1_i32 = arith.constant 1 : i32
    %9 = arith.cmpi eq, %arg2, %c1_i32 : i32
    %10 = arith.extui %9 : i1 to i32
    %c0_i32_8 = arith.constant 0 : i32
    %11 = arith.cmpi ne, %10, %c0_i32_8 : i32
    scf.if %11 {
      %c0_9 = arith.constant 0 : index
      %c0_10 = arith.constant 0 : index
      %12 = vector.load %arg8[%c0_9, %c0_10] : memref<128x128xf32, #tpu.memory_space<vmem>>, vector<128x128xf32>
      %c0_11 = arith.constant 0 : index
      %c0_12 = arith.constant 0 : index
      %13 = vector.load %arg5[%c0_11, %c0_12] : memref<1x128xf32, #tpu.memory_space<vmem>>, vector<1x128xf32>
      %14 = vector.broadcast %13 : vector<1x128xf32> to vector<128x128xf32>
      %15 = arith.addf %12, %14 : vector<128x128xf32>
      %c0_13 = arith.constant 0 : index
      %c0_14 = arith.constant 0 : index
      %16 = vector.load %arg6[%c0_13, %c0_14] : memref<128x128xf32, #tpu.memory_space<vmem>>, vector<128x128xf32>
      tpu.vector_store %arg6[%c0_13, %c0_14], %15 {strides = array<i32>} : memref<128x128xf32, #tpu.memory_space<vmem>>, vector<128x128xf32>,
      %17 = arith.mulf %15, %15 : vector<128x128xf32>
      %cst_15 = arith.constant dense<0.000000e+00> : vector<128xf32>
      %18 = vector.multi_reduction <add>, %15, %cst_15 [0] : vector<128x128xf32> to vector<128xf32>
      %19 = vector.shape_cast %18 : vector<128xf32> to vector<1x128xf32>
      %cst_16 = arith.constant dense<0.000000e+00> : vector<128xf32>
      %20 = vector.multi_reduction <add>, %17, %cst_16 [0] : vector<128x128xf32> to vector<128xf32>
      %21 = vector.shape_cast %20 : vector<128xf32> to vector<1x128xf32>
      %22 = tpu.concatenate %19, %21 in 0 : vector<1x128xf32>, vector<1x128xf32> -> vector<2x128xf32>
      %23 = vector.shape_cast %22 : vector<2x128xf32> to vector<1x2x128xf32>
      %c0_17 = arith.constant 0 : index
      %c0_18 = arith.constant 0 : index
      %c0_19 = arith.constant 0 : index
      %24 = vector.load %arg7[%c0_17, %c0_18, %c0_19] : memref<1x2x128xf32, #tpu.memory_space<vmem>>, vector<1x2x128xf32>
      tpu.vector_store %arg7[%c0_17, %c0_18, %c0_19], %23 {strides = array<i32>} : memref<1x2x128xf32, #tpu.memory_space<vmem>>, vector<1x2x128xf32>,
    } else {
    }
    return
  }
  func.func @transform_0(%arg0: i32, %arg1: i32, %arg2: i32) -> (i32, i32) {
    %c0_i32 = arith.constant 0 : i32
    return %arg0, %arg2 : i32, i32
  }
  func.func @transform_1(%arg0: i32, %arg1: i32, %arg2: i32) -> (i32, i32) {
    %c0_i32 = arith.constant 0 : i32
    return %arg2, %arg1 : i32, i32
  }
  func.func @transform_2(%arg0: i32, %arg1: i32, %arg2: i32) -> (i32, i32) {
    %c0_i32 = arith.constant 0 : i32
    %c0_i32_0 = arith.constant 0 : i32
    return %c0_i32, %arg1 : i32, i32
  }
  func.func @transform_3(%arg0: i32, %arg1: i32, %arg2: i32) -> (i32, i32) {
    %c0_i32 = arith.constant 0 : i32
    return %arg0, %arg1 : i32, i32
  }
  func.func @transform_4(%arg0: i32, %arg1: i32, %arg2: i32) -> (i32, i32, i32) {
    %c0_i32 = arith.constant 0 : i32
    %c0_i32_0 = arith.constant 0 : i32
    return %arg0, %c0_i32, %arg1 : i32, i32, i32
  }
}

module attributes {stable_mosaic.version = 11 : i64} {
  func.func @_bn_apply_kernel(%arg0: i32, %arg1: i32, %arg2: memref<128x128xf32, #tpu.memory_space<vmem>>, %arg3: memref<1x128xf32, #tpu.memory_space<vmem>>, %arg4: memref<1x128xf32, #tpu.memory_space<vmem>>, %arg5: memref<128x128xf32, #tpu.memory_space<vmem>>) attributes {dimension_semantics = [#tpu.dimension_semantics<parallel>, #tpu.dimension_semantics<parallel>], iteration_bounds = array<i64: 1, 1>, scalar_prefetch = 0 : i64, scratch_operands = 0 : i64, tpu.core_type = #tpu.core_type<tc>, window_params = [{transform_indices = @transform_0, window_bounds = array<i64: 128, 128>}, {transform_indices = @transform_1, window_bounds = array<i64: 1, 128>}, {transform_indices = @transform_2, window_bounds = array<i64: 1, 128>}, {transform_indices = @transform_3, window_bounds = array<i64: 128, 128>}]} {
    %c0 = arith.constant 0 : index
    %c0_0 = arith.constant 0 : index
    %0 = vector.load %arg2[%c0, %c0_0] : memref<128x128xf32, #tpu.memory_space<vmem>>, vector<128x128xf32>
    %c0_1 = arith.constant 0 : index
    %c0_2 = arith.constant 0 : index
    %1 = vector.load %arg3[%c0_1, %c0_2] : memref<1x128xf32, #tpu.memory_space<vmem>>, vector<1x128xf32>
    %2 = vector.broadcast %1 : vector<1x128xf32> to vector<128x128xf32>
    %3 = arith.mulf %0, %2 : vector<128x128xf32>
    %c0_3 = arith.constant 0 : index
    %c0_4 = arith.constant 0 : index
    %4 = vector.load %arg4[%c0_3, %c0_4] : memref<1x128xf32, #tpu.memory_space<vmem>>, vector<1x128xf32>
    %5 = vector.broadcast %4 : vector<1x128xf32> to vector<128x128xf32>
    %6 = arith.addf %3, %5 : vector<128x128xf32>
    %cst = arith.constant 0.000000e+00 : f32
    %7 = vector.broadcast %cst : f32 to vector<128x128xf32>
    %8 = arith.cmpf ogt, %6, %7 : vector<128x128xf32>
    %cst_5 = arith.constant 2.000000e-01 : f32
    %9 = vector.broadcast %cst_5 : f32 to vector<128x128xf32>
    %10 = arith.mulf %9, %6 : vector<128x128xf32>
    %11 = arith.select %8, %6, %10 : vector<128x128xi1>, vector<128x128xf32>
    %c0_6 = arith.constant 0 : index
    %c0_7 = arith.constant 0 : index
    %12 = vector.load %arg5[%c0_6, %c0_7] : memref<128x128xf32, #tpu.memory_space<vmem>>, vector<128x128xf32>
    tpu.vector_store %arg5[%c0_6, %c0_7], %11 {strides = array<i32>} : memref<128x128xf32, #tpu.memory_space<vmem>>, vector<128x128xf32>,
    return
  }
  func.func @transform_0(%arg0: i32, %arg1: i32) -> (i32, i32) {
    %c0_i32 = arith.constant 0 : i32
    return %arg0, %arg1 : i32, i32
  }
  func.func @transform_1(%arg0: i32, %arg1: i32) -> (i32, i32) {
    %c0_i32 = arith.constant 0 : i32
    %c0_i32_0 = arith.constant 0 : i32
    return %c0_i32, %arg1 : i32, i32
  }
  func.func @transform_2(%arg0: i32, %arg1: i32) -> (i32, i32) {
    %c0_i32 = arith.constant 0 : i32
    %c0_i32_0 = arith.constant 0 : i32
    return %c0_i32, %arg1 : i32, i32
  }
  func.func @transform_3(%arg0: i32, %arg1: i32) -> (i32, i32) {
    %c0_i32 = arith.constant 0 : i32
    return %arg0, %arg1 : i32, i32
  }
}

module attributes {stable_mosaic.version = 11 : i64} {
  func.func @_conv_matmul_kernel(%arg0: i32, %arg1: i32, %arg2: i32, %arg3: memref<32x512xbf16, #tpu.memory_space<vmem>>, %arg4: memref<512x256xbf16, #tpu.memory_space<vmem>>, %arg5: memref<1x256xf32, #tpu.memory_space<vmem>>, %arg6: memref<32x256xf32, #tpu.memory_space<vmem>>, %arg7: memref<1x2x256xf32, #tpu.memory_space<vmem>>, %arg8: memref<32x256xf32, #tpu.memory_space<vmem>>) attributes {dimension_semantics = [#tpu.dimension_semantics<parallel>, #tpu.dimension_semantics<parallel>, #tpu.dimension_semantics<arbitrary>], iteration_bounds = array<i64: 1, 1, 4>, scalar_prefetch = 0 : i64, scratch_operands = 1 : i64, tpu.core_type = #tpu.core_type<tc>, window_params = [{transform_indices = @transform_0, window_bounds = array<i64: 32, 512>}, {transform_indices = @transform_1, window_bounds = array<i64: 512, 256>}, {transform_indices = @transform_2, window_bounds = array<i64: 1, 256>}, {transform_indices = @transform_3, window_bounds = array<i64: 32, 256>}, {transform_indices = @transform_4, window_bounds = array<i64: 1, 2, 256>}]} {
    %c0_i32 = arith.constant 0 : i32
    %0 = arith.cmpi eq, %arg2, %c0_i32 : i32
    %1 = arith.extui %0 : i1 to i32
    %c0_i32_0 = arith.constant 0 : i32
    %2 = arith.cmpi ne, %1, %c0_i32_0 : i32
    scf.if %2 {
      %cst_9 = arith.constant 0.000000e+00 : f32
      %12 = vector.broadcast %cst_9 : f32 to vector<32x256xf32>
      %c0_10 = arith.constant 0 : index
      %c0_11 = arith.constant 0 : index
      %13 = vector.load %arg8[%c0_10, %c0_11] : memref<32x256xf32, #tpu.memory_space<vmem>>, vector<32x256xf32>
      tpu.vector_store %arg8[%c0_10, %c0_11], %12 {strides = array<i32>} : memref<32x256xf32, #tpu.memory_space<vmem>>, vector<32x256xf32>,
    } else {
    }
    %c0 = arith.constant 0 : index
    %c0_1 = arith.constant 0 : index
    %3 = vector.load %arg8[%c0, %c0_1] : memref<32x256xf32, #tpu.memory_space<vmem>>, vector<32x256xf32>
    %c0_2 = arith.constant 0 : index
    %c0_3 = arith.constant 0 : index
    %4 = vector.load %arg3[%c0_2, %c0_3] : memref<32x512xbf16, #tpu.memory_space<vmem>>, vector<32x512xbf16>
    %c0_4 = arith.constant 0 : index
    %c0_5 = arith.constant 0 : index
    %5 = vector.load %arg4[%c0_4, %c0_5] : memref<512x256xbf16, #tpu.memory_space<vmem>>, vector<512x256xbf16>
    %cst = arith.constant dense<0.000000e+00> : vector<32x256xf32>
    %6 = tpu.matmul %4, %5, %cst {dimension_numbers = #tpu.dot_dimension_numbers<[1], [0], [0], [1], [0, 0, 1, 1], [], []>} : vector<32x512xbf16>, vector<512x256xbf16>, vector<32x256xf32> -> vector<32x256xf32>
    %7 = arith.addf %3, %6 : vector<32x256xf32>
    %c0_6 = arith.constant 0 : index
    %c0_7 = arith.constant 0 : index
    %8 = vector.load %arg8[%c0_6, %c0_7] : memref<32x256xf32, #tpu.memory_space<vmem>>, vector<32x256xf32>
    tpu.vector_store %arg8[%c0_6, %c0_7], %7 {strides = array<i32>} : memref<32x256xf32, #tpu.memory_space<vmem>>, vector<32x256xf32>,
    %c3_i32 = arith.constant 3 : i32
    %9 = arith.cmpi eq, %arg2, %c3_i32 : i32
    %10 = arith.extui %9 : i1 to i32
    %c0_i32_8 = arith.constant 0 : i32
    %11 = arith.cmpi ne, %10, %c0_i32_8 : i32
    scf.if %11 {
      %c0_9 = arith.constant 0 : index
      %c0_10 = arith.constant 0 : index
      %12 = vector.load %arg8[%c0_9, %c0_10] : memref<32x256xf32, #tpu.memory_space<vmem>>, vector<32x256xf32>
      %c0_11 = arith.constant 0 : index
      %c0_12 = arith.constant 0 : index
      %13 = vector.load %arg5[%c0_11, %c0_12] : memref<1x256xf32, #tpu.memory_space<vmem>>, vector<1x256xf32>
      %14 = vector.broadcast %13 : vector<1x256xf32> to vector<32x256xf32>
      %15 = arith.addf %12, %14 : vector<32x256xf32>
      %c0_13 = arith.constant 0 : index
      %c0_14 = arith.constant 0 : index
      %16 = vector.load %arg6[%c0_13, %c0_14] : memref<32x256xf32, #tpu.memory_space<vmem>>, vector<32x256xf32>
      tpu.vector_store %arg6[%c0_13, %c0_14], %15 {strides = array<i32>} : memref<32x256xf32, #tpu.memory_space<vmem>>, vector<32x256xf32>,
      %17 = arith.mulf %15, %15 : vector<32x256xf32>
      %cst_15 = arith.constant dense<0.000000e+00> : vector<256xf32>
      %18 = vector.multi_reduction <add>, %15, %cst_15 [0] : vector<32x256xf32> to vector<256xf32>
      %19 = vector.shape_cast %18 : vector<256xf32> to vector<1x256xf32>
      %cst_16 = arith.constant dense<0.000000e+00> : vector<256xf32>
      %20 = vector.multi_reduction <add>, %17, %cst_16 [0] : vector<32x256xf32> to vector<256xf32>
      %21 = vector.shape_cast %20 : vector<256xf32> to vector<1x256xf32>
      %22 = tpu.concatenate %19, %21 in 0 : vector<1x256xf32>, vector<1x256xf32> -> vector<2x256xf32>
      %23 = vector.shape_cast %22 : vector<2x256xf32> to vector<1x2x256xf32>
      %c0_17 = arith.constant 0 : index
      %c0_18 = arith.constant 0 : index
      %c0_19 = arith.constant 0 : index
      %24 = vector.load %arg7[%c0_17, %c0_18, %c0_19] : memref<1x2x256xf32, #tpu.memory_space<vmem>>, vector<1x2x256xf32>
      tpu.vector_store %arg7[%c0_17, %c0_18, %c0_19], %23 {strides = array<i32>} : memref<1x2x256xf32, #tpu.memory_space<vmem>>, vector<1x2x256xf32>,
    } else {
    }
    return
  }
  func.func @transform_0(%arg0: i32, %arg1: i32, %arg2: i32) -> (i32, i32) {
    %c0_i32 = arith.constant 0 : i32
    return %arg0, %arg2 : i32, i32
  }
  func.func @transform_1(%arg0: i32, %arg1: i32, %arg2: i32) -> (i32, i32) {
    %c0_i32 = arith.constant 0 : i32
    return %arg2, %arg1 : i32, i32
  }
  func.func @transform_2(%arg0: i32, %arg1: i32, %arg2: i32) -> (i32, i32) {
    %c0_i32 = arith.constant 0 : i32
    %c0_i32_0 = arith.constant 0 : i32
    return %c0_i32, %arg1 : i32, i32
  }
  func.func @transform_3(%arg0: i32, %arg1: i32, %arg2: i32) -> (i32, i32) {
    %c0_i32 = arith.constant 0 : i32
    return %arg0, %arg1 : i32, i32
  }
  func.func @transform_4(%arg0: i32, %arg1: i32, %arg2: i32) -> (i32, i32, i32) {
    %c0_i32 = arith.constant 0 : i32
    %c0_i32_0 = arith.constant 0 : i32
    return %arg0, %c0_i32, %arg1 : i32, i32, i32
  }
}

module attributes {stable_mosaic.version = 11 : i64} {
  func.func @_bn_apply_kernel(%arg0: i32, %arg1: i32, %arg2: memref<32x256xf32, #tpu.memory_space<vmem>>, %arg3: memref<1x256xf32, #tpu.memory_space<vmem>>, %arg4: memref<1x256xf32, #tpu.memory_space<vmem>>, %arg5: memref<32x256xf32, #tpu.memory_space<vmem>>) attributes {dimension_semantics = [#tpu.dimension_semantics<parallel>, #tpu.dimension_semantics<parallel>], iteration_bounds = array<i64: 1, 1>, scalar_prefetch = 0 : i64, scratch_operands = 0 : i64, tpu.core_type = #tpu.core_type<tc>, window_params = [{transform_indices = @transform_0, window_bounds = array<i64: 32, 256>}, {transform_indices = @transform_1, window_bounds = array<i64: 1, 256>}, {transform_indices = @transform_2, window_bounds = array<i64: 1, 256>}, {transform_indices = @transform_3, window_bounds = array<i64: 32, 256>}]} {
    %c0 = arith.constant 0 : index
    %c0_0 = arith.constant 0 : index
    %0 = vector.load %arg2[%c0, %c0_0] : memref<32x256xf32, #tpu.memory_space<vmem>>, vector<32x256xf32>
    %c0_1 = arith.constant 0 : index
    %c0_2 = arith.constant 0 : index
    %1 = vector.load %arg3[%c0_1, %c0_2] : memref<1x256xf32, #tpu.memory_space<vmem>>, vector<1x256xf32>
    %2 = vector.broadcast %1 : vector<1x256xf32> to vector<32x256xf32>
    %3 = arith.mulf %0, %2 : vector<32x256xf32>
    %c0_3 = arith.constant 0 : index
    %c0_4 = arith.constant 0 : index
    %4 = vector.load %arg4[%c0_3, %c0_4] : memref<1x256xf32, #tpu.memory_space<vmem>>, vector<1x256xf32>
    %5 = vector.broadcast %4 : vector<1x256xf32> to vector<32x256xf32>
    %6 = arith.addf %3, %5 : vector<32x256xf32>
    %cst = arith.constant 0.000000e+00 : f32
    %7 = vector.broadcast %cst : f32 to vector<32x256xf32>
    %8 = arith.cmpf ogt, %6, %7 : vector<32x256xf32>
    %cst_5 = arith.constant 2.000000e-01 : f32
    %9 = vector.broadcast %cst_5 : f32 to vector<32x256xf32>
    %10 = arith.mulf %9, %6 : vector<32x256xf32>
    %11 = arith.select %8, %6, %10 : vector<32x256xi1>, vector<32x256xf32>
    %c0_6 = arith.constant 0 : index
    %c0_7 = arith.constant 0 : index
    %12 = vector.load %arg5[%c0_6, %c0_7] : memref<32x256xf32, #tpu.memory_space<vmem>>, vector<32x256xf32>
    tpu.vector_store %arg5[%c0_6, %c0_7], %11 {strides = array<i32>} : memref<32x256xf32, #tpu.memory_space<vmem>>, vector<32x256xf32>,
    return
  }
  func.func @transform_0(%arg0: i32, %arg1: i32) -> (i32, i32) {
    %c0_i32 = arith.constant 0 : i32
    return %arg0, %arg1 : i32, i32
  }
  func.func @transform_1(%arg0: i32, %arg1: i32) -> (i32, i32) {
    %c0_i32 = arith.constant 0 : i32
    %c0_i32_0 = arith.constant 0 : i32
    return %c0_i32, %arg1 : i32, i32
  }
  func.func @transform_2(%arg0: i32, %arg1: i32) -> (i32, i32) {
    %c0_i32 = arith.constant 0 : i32
    %c0_i32_0 = arith.constant 0 : i32
    return %c0_i32, %arg1 : i32, i32
  }
  func.func @transform_3(%arg0: i32, %arg1: i32) -> (i32, i32) {
    %c0_i32 = arith.constant 0 : i32
    return %arg0, %arg1 : i32, i32
  }
}

module attributes {stable_mosaic.version = 11 : i64} {
  func.func @_conv_matmul_kernel(%arg0: i32, %arg1: i32, %arg2: i32, %arg3: memref<8x512xbf16, #tpu.memory_space<vmem>>, %arg4: memref<512x256xbf16, #tpu.memory_space<vmem>>, %arg5: memref<1x256xf32, #tpu.memory_space<vmem>>, %arg6: memref<8x256xf32, #tpu.memory_space<vmem>>, %arg7: memref<1x2x256xf32, #tpu.memory_space<vmem>>, %arg8: memref<8x256xf32, #tpu.memory_space<vmem>>) attributes {dimension_semantics = [#tpu.dimension_semantics<parallel>, #tpu.dimension_semantics<parallel>, #tpu.dimension_semantics<arbitrary>], iteration_bounds = array<i64: 1, 2, 8>, scalar_prefetch = 0 : i64, scratch_operands = 1 : i64, tpu.core_type = #tpu.core_type<tc>, window_params = [{transform_indices = @transform_0, window_bounds = array<i64: 8, 512>}, {transform_indices = @transform_1, window_bounds = array<i64: 512, 256>}, {transform_indices = @transform_2, window_bounds = array<i64: 1, 256>}, {transform_indices = @transform_3, window_bounds = array<i64: 8, 256>}, {transform_indices = @transform_4, window_bounds = array<i64: 1, 2, 256>}]} {
    %c0_i32 = arith.constant 0 : i32
    %0 = arith.cmpi eq, %arg2, %c0_i32 : i32
    %1 = arith.extui %0 : i1 to i32
    %c0_i32_0 = arith.constant 0 : i32
    %2 = arith.cmpi ne, %1, %c0_i32_0 : i32
    scf.if %2 {
      %cst_9 = arith.constant 0.000000e+00 : f32
      %12 = vector.broadcast %cst_9 : f32 to vector<8x256xf32>
      %c0_10 = arith.constant 0 : index
      %c0_11 = arith.constant 0 : index
      %13 = vector.load %arg8[%c0_10, %c0_11] : memref<8x256xf32, #tpu.memory_space<vmem>>, vector<8x256xf32>
      tpu.vector_store %arg8[%c0_10, %c0_11], %12 {strides = array<i32>} : memref<8x256xf32, #tpu.memory_space<vmem>>, vector<8x256xf32>,
    } else {
    }
    %c0 = arith.constant 0 : index
    %c0_1 = arith.constant 0 : index
    %3 = vector.load %arg8[%c0, %c0_1] : memref<8x256xf32, #tpu.memory_space<vmem>>, vector<8x256xf32>
    %c0_2 = arith.constant 0 : index
    %c0_3 = arith.constant 0 : index
    %4 = vector.load %arg3[%c0_2, %c0_3] : memref<8x512xbf16, #tpu.memory_space<vmem>>, vector<8x512xbf16>
    %c0_4 = arith.constant 0 : index
    %c0_5 = arith.constant 0 : index
    %5 = vector.load %arg4[%c0_4, %c0_5] : memref<512x256xbf16, #tpu.memory_space<vmem>>, vector<512x256xbf16>
    %cst = arith.constant dense<0.000000e+00> : vector<8x256xf32>
    %6 = tpu.matmul %4, %5, %cst {dimension_numbers = #tpu.dot_dimension_numbers<[1], [0], [0], [1], [0, 0, 1, 1], [], []>} : vector<8x512xbf16>, vector<512x256xbf16>, vector<8x256xf32> -> vector<8x256xf32>
    %7 = arith.addf %3, %6 : vector<8x256xf32>
    %c0_6 = arith.constant 0 : index
    %c0_7 = arith.constant 0 : index
    %8 = vector.load %arg8[%c0_6, %c0_7] : memref<8x256xf32, #tpu.memory_space<vmem>>, vector<8x256xf32>
    tpu.vector_store %arg8[%c0_6, %c0_7], %7 {strides = array<i32>} : memref<8x256xf32, #tpu.memory_space<vmem>>, vector<8x256xf32>,
    %c7_i32 = arith.constant 7 : i32
    %9 = arith.cmpi eq, %arg2, %c7_i32 : i32
    %10 = arith.extui %9 : i1 to i32
    %c0_i32_8 = arith.constant 0 : i32
    %11 = arith.cmpi ne, %10, %c0_i32_8 : i32
    scf.if %11 {
      %c0_9 = arith.constant 0 : index
      %c0_10 = arith.constant 0 : index
      %12 = vector.load %arg8[%c0_9, %c0_10] : memref<8x256xf32, #tpu.memory_space<vmem>>, vector<8x256xf32>
      %c0_11 = arith.constant 0 : index
      %c0_12 = arith.constant 0 : index
      %13 = vector.load %arg5[%c0_11, %c0_12] : memref<1x256xf32, #tpu.memory_space<vmem>>, vector<1x256xf32>
      %14 = vector.broadcast %13 : vector<1x256xf32> to vector<8x256xf32>
      %15 = arith.addf %12, %14 : vector<8x256xf32>
      %c0_13 = arith.constant 0 : index
      %c0_14 = arith.constant 0 : index
      %16 = vector.load %arg6[%c0_13, %c0_14] : memref<8x256xf32, #tpu.memory_space<vmem>>, vector<8x256xf32>
      tpu.vector_store %arg6[%c0_13, %c0_14], %15 {strides = array<i32>} : memref<8x256xf32, #tpu.memory_space<vmem>>, vector<8x256xf32>,
      %17 = arith.mulf %15, %15 : vector<8x256xf32>
      %cst_15 = arith.constant dense<0.000000e+00> : vector<256xf32>
      %18 = vector.multi_reduction <add>, %15, %cst_15 [0] : vector<8x256xf32> to vector<256xf32>
      %19 = vector.shape_cast %18 : vector<256xf32> to vector<1x256xf32>
      %cst_16 = arith.constant dense<0.000000e+00> : vector<256xf32>
      %20 = vector.multi_reduction <add>, %17, %cst_16 [0] : vector<8x256xf32> to vector<256xf32>
      %21 = vector.shape_cast %20 : vector<256xf32> to vector<1x256xf32>
      %22 = tpu.concatenate %19, %21 in 0 : vector<1x256xf32>, vector<1x256xf32> -> vector<2x256xf32>
      %23 = vector.shape_cast %22 : vector<2x256xf32> to vector<1x2x256xf32>
      %c0_17 = arith.constant 0 : index
      %c0_18 = arith.constant 0 : index
      %c0_19 = arith.constant 0 : index
      %24 = vector.load %arg7[%c0_17, %c0_18, %c0_19] : memref<1x2x256xf32, #tpu.memory_space<vmem>>, vector<1x2x256xf32>
      tpu.vector_store %arg7[%c0_17, %c0_18, %c0_19], %23 {strides = array<i32>} : memref<1x2x256xf32, #tpu.memory_space<vmem>>, vector<1x2x256xf32>,
    } else {
    }
    return
  }
  func.func @transform_0(%arg0: i32, %arg1: i32, %arg2: i32) -> (i32, i32) {
    %c0_i32 = arith.constant 0 : i32
    return %arg0, %arg2 : i32, i32
  }
  func.func @transform_1(%arg0: i32, %arg1: i32, %arg2: i32) -> (i32, i32) {
    %c0_i32 = arith.constant 0 : i32
    return %arg2, %arg1 : i32, i32
  }
  func.func @transform_2(%arg0: i32, %arg1: i32, %arg2: i32) -> (i32, i32) {
    %c0_i32 = arith.constant 0 : i32
    %c0_i32_0 = arith.constant 0 : i32
    return %c0_i32, %arg1 : i32, i32
  }
  func.func @transform_3(%arg0: i32, %arg1: i32, %arg2: i32) -> (i32, i32) {
    %c0_i32 = arith.constant 0 : i32
    return %arg0, %arg1 : i32, i32
  }
  func.func @transform_4(%arg0: i32, %arg1: i32, %arg2: i32) -> (i32, i32, i32) {
    %c0_i32 = arith.constant 0 : i32
    %c0_i32_0 = arith.constant 0 : i32
    return %arg0, %c0_i32, %arg1 : i32, i32, i32
  }
}

module attributes {stable_mosaic.version = 11 : i64} {
  func.func @_bn_apply_kernel(%arg0: i32, %arg1: i32, %arg2: memref<8x256xf32, #tpu.memory_space<vmem>>, %arg3: memref<1x256xf32, #tpu.memory_space<vmem>>, %arg4: memref<1x256xf32, #tpu.memory_space<vmem>>, %arg5: memref<8x256xf32, #tpu.memory_space<vmem>>) attributes {dimension_semantics = [#tpu.dimension_semantics<parallel>, #tpu.dimension_semantics<parallel>], iteration_bounds = array<i64: 1, 2>, scalar_prefetch = 0 : i64, scratch_operands = 0 : i64, tpu.core_type = #tpu.core_type<tc>, window_params = [{transform_indices = @transform_0, window_bounds = array<i64: 8, 256>}, {transform_indices = @transform_1, window_bounds = array<i64: 1, 256>}, {transform_indices = @transform_2, window_bounds = array<i64: 1, 256>}, {transform_indices = @transform_3, window_bounds = array<i64: 8, 256>}]} {
    %c0 = arith.constant 0 : index
    %c0_0 = arith.constant 0 : index
    %0 = vector.load %arg2[%c0, %c0_0] : memref<8x256xf32, #tpu.memory_space<vmem>>, vector<8x256xf32>
    %c0_1 = arith.constant 0 : index
    %c0_2 = arith.constant 0 : index
    %1 = vector.load %arg3[%c0_1, %c0_2] : memref<1x256xf32, #tpu.memory_space<vmem>>, vector<1x256xf32>
    %2 = vector.broadcast %1 : vector<1x256xf32> to vector<8x256xf32>
    %3 = arith.mulf %0, %2 : vector<8x256xf32>
    %c0_3 = arith.constant 0 : index
    %c0_4 = arith.constant 0 : index
    %4 = vector.load %arg4[%c0_3, %c0_4] : memref<1x256xf32, #tpu.memory_space<vmem>>, vector<1x256xf32>
    %5 = vector.broadcast %4 : vector<1x256xf32> to vector<8x256xf32>
    %6 = arith.addf %3, %5 : vector<8x256xf32>
    %cst = arith.constant 0.000000e+00 : f32
    %7 = vector.broadcast %cst : f32 to vector<8x256xf32>
    %8 = arith.cmpf ogt, %6, %7 : vector<8x256xf32>
    %cst_5 = arith.constant 2.000000e-01 : f32
    %9 = vector.broadcast %cst_5 : f32 to vector<8x256xf32>
    %10 = arith.mulf %9, %6 : vector<8x256xf32>
    %11 = arith.select %8, %6, %10 : vector<8x256xi1>, vector<8x256xf32>
    %c0_6 = arith.constant 0 : index
    %c0_7 = arith.constant 0 : index
    %12 = vector.load %arg5[%c0_6, %c0_7] : memref<8x256xf32, #tpu.memory_space<vmem>>, vector<8x256xf32>
    tpu.vector_store %arg5[%c0_6, %c0_7], %11 {strides = array<i32>} : memref<8x256xf32, #tpu.memory_space<vmem>>, vector<8x256xf32>,
    return
  }
  func.func @transform_0(%arg0: i32, %arg1: i32) -> (i32, i32) {
    %c0_i32 = arith.constant 0 : i32
    return %arg0, %arg1 : i32, i32
  }
  func.func @transform_1(%arg0: i32, %arg1: i32) -> (i32, i32) {
    %c0_i32 = arith.constant 0 : i32
    %c0_i32_0 = arith.constant 0 : i32
    return %c0_i32, %arg1 : i32, i32
  }
  func.func @transform_2(%arg0: i32, %arg1: i32) -> (i32, i32) {
    %c0_i32 = arith.constant 0 : i32
    %c0_i32_0 = arith.constant 0 : i32
    return %c0_i32, %arg1 : i32, i32
  }
  func.func @transform_3(%arg0: i32, %arg1: i32) -> (i32, i32) {
    %c0_i32 = arith.constant 0 : i32
    return %arg0, %arg1 : i32, i32
  }
}

module attributes {stable_mosaic.version = 11 : i64} {
  func.func @_conv_matmul_kernel(%arg0: i32, %arg1: i32, %arg2: i32, %arg3: memref<8x512xbf16, #tpu.memory_space<vmem>>, %arg4: memref<512x128xbf16, #tpu.memory_space<vmem>>, %arg5: memref<1x128xf32, #tpu.memory_space<vmem>>, %arg6: memref<8x128xf32, #tpu.memory_space<vmem>>, %arg7: memref<8x128xf32, #tpu.memory_space<vmem>>) attributes {dimension_semantics = [#tpu.dimension_semantics<parallel>, #tpu.dimension_semantics<parallel>, #tpu.dimension_semantics<arbitrary>], iteration_bounds = array<i64: 1, 1, 16>, scalar_prefetch = 0 : i64, scratch_operands = 1 : i64, tpu.core_type = #tpu.core_type<tc>, window_params = [{transform_indices = @transform_0, window_bounds = array<i64: 8, 512>}, {transform_indices = @transform_1, window_bounds = array<i64: 512, 128>}, {transform_indices = @transform_2, window_bounds = array<i64: 1, 128>}, {transform_indices = @transform_3, window_bounds = array<i64: 8, 128>}]} {
    %c0_i32 = arith.constant 0 : i32
    %0 = arith.cmpi eq, %arg2, %c0_i32 : i32
    %1 = arith.extui %0 : i1 to i32
    %c0_i32_0 = arith.constant 0 : i32
    %2 = arith.cmpi ne, %1, %c0_i32_0 : i32
    scf.if %2 {
      %cst_9 = arith.constant 0.000000e+00 : f32
      %12 = vector.broadcast %cst_9 : f32 to vector<8x128xf32>
      %c0_10 = arith.constant 0 : index
      %c0_11 = arith.constant 0 : index
      %13 = vector.load %arg7[%c0_10, %c0_11] : memref<8x128xf32, #tpu.memory_space<vmem>>, vector<8x128xf32>
      tpu.vector_store %arg7[%c0_10, %c0_11], %12 {strides = array<i32>} : memref<8x128xf32, #tpu.memory_space<vmem>>, vector<8x128xf32>,
    } else {
    }
    %c0 = arith.constant 0 : index
    %c0_1 = arith.constant 0 : index
    %3 = vector.load %arg7[%c0, %c0_1] : memref<8x128xf32, #tpu.memory_space<vmem>>, vector<8x128xf32>
    %c0_2 = arith.constant 0 : index
    %c0_3 = arith.constant 0 : index
    %4 = vector.load %arg3[%c0_2, %c0_3] : memref<8x512xbf16, #tpu.memory_space<vmem>>, vector<8x512xbf16>
    %c0_4 = arith.constant 0 : index
    %c0_5 = arith.constant 0 : index
    %5 = vector.load %arg4[%c0_4, %c0_5] : memref<512x128xbf16, #tpu.memory_space<vmem>>, vector<512x128xbf16>
    %cst = arith.constant dense<0.000000e+00> : vector<8x128xf32>
    %6 = tpu.matmul %4, %5, %cst {dimension_numbers = #tpu.dot_dimension_numbers<[1], [0], [0], [1], [0, 0, 1, 1], [], []>} : vector<8x512xbf16>, vector<512x128xbf16>, vector<8x128xf32> -> vector<8x128xf32>
    %7 = arith.addf %3, %6 : vector<8x128xf32>
    %c0_6 = arith.constant 0 : index
    %c0_7 = arith.constant 0 : index
    %8 = vector.load %arg7[%c0_6, %c0_7] : memref<8x128xf32, #tpu.memory_space<vmem>>, vector<8x128xf32>
    tpu.vector_store %arg7[%c0_6, %c0_7], %7 {strides = array<i32>} : memref<8x128xf32, #tpu.memory_space<vmem>>, vector<8x128xf32>,
    %c15_i32 = arith.constant 15 : i32
    %9 = arith.cmpi eq, %arg2, %c15_i32 : i32
    %10 = arith.extui %9 : i1 to i32
    %c0_i32_8 = arith.constant 0 : i32
    %11 = arith.cmpi ne, %10, %c0_i32_8 : i32
    scf.if %11 {
      %c0_9 = arith.constant 0 : index
      %c0_10 = arith.constant 0 : index
      %12 = vector.load %arg7[%c0_9, %c0_10] : memref<8x128xf32, #tpu.memory_space<vmem>>, vector<8x128xf32>
      %c0_11 = arith.constant 0 : index
      %c0_12 = arith.constant 0 : index
      %13 = vector.load %arg5[%c0_11, %c0_12] : memref<1x128xf32, #tpu.memory_space<vmem>>, vector<1x128xf32>
      %14 = vector.broadcast %13 : vector<1x128xf32> to vector<8x128xf32>
      %15 = arith.addf %12, %14 : vector<8x128xf32>
      %c0_13 = arith.constant 0 : index
      %c0_14 = arith.constant 0 : index
      %16 = vector.load %arg6[%c0_13, %c0_14] : memref<8x128xf32, #tpu.memory_space<vmem>>, vector<8x128xf32>
      tpu.vector_store %arg6[%c0_13, %c0_14], %15 {strides = array<i32>} : memref<8x128xf32, #tpu.memory_space<vmem>>, vector<8x128xf32>,
    } else {
    }
    return
  }
  func.func @transform_0(%arg0: i32, %arg1: i32, %arg2: i32) -> (i32, i32) {
    %c0_i32 = arith.constant 0 : i32
    return %arg0, %arg2 : i32, i32
  }
  func.func @transform_1(%arg0: i32, %arg1: i32, %arg2: i32) -> (i32, i32) {
    %c0_i32 = arith.constant 0 : i32
    return %arg2, %arg1 : i32, i32
  }
  func.func @transform_2(%arg0: i32, %arg1: i32, %arg2: i32) -> (i32, i32) {
    %c0_i32 = arith.constant 0 : i32
    %c0_i32_0 = arith.constant 0 : i32
    return %c0_i32, %arg1 : i32, i32
  }
  func.func @transform_3(%arg0: i32, %arg1: i32, %arg2: i32) -> (i32, i32) {
    %c0_i32 = arith.constant 0 : i32
    return %arg0, %arg1 : i32, i32
  }
}

</mosaic_0001>

<bundles_post_ra>
// kernel: discriminator_forward.8
= control target key start
LH: loop header
LB: loop body
LE: loop exit
PB: predicated region body
PF: predicated region fallthrough
CT: control target
= control target key end

     0   :  { %s1276_s12 = smov 0   ;;  %s1278_s13 = smov 0   ;;  %s1426_s0 = inlined_call_operand.vmem [shape: bf16[512,128], index: 0, kind: input, shape index: {}]   ;;  %s1427_s1 = inlined_call_operand.vmem [shape: bf16[128,128], index: 1, kind: input, shape index: {}]   ;;  %s1428_s2 = inlined_call_operand.vmem [shape: f32[1,128], index: 2, kind: input, shape index: {}]   ;;  %s1429_s3 = inlined_call_operand.vmem [shape: f32[512,128], index: 3, kind: output, shape index: {}]  }
   0x1   :  { %s1280_s14 = smov 0  }
   0x2 LB: > { %s32_s15 = sadd.s32 1, %s1250_s13  ;;  %p1064_p0 = scmp.ge.s32.totalorder %s1254_s14, 1  ;;  %s1254_s14 = sphi %s1280_s14, %s13_s14   ;;  %s1250_s13 = sphi %s1278_s13, %s1431_s13   ;;  %s1246_s12 = sphi %s1276_s12, %s1430_s12  }
   0x3   : > { %p34_p1 = scmp.ge.s32.totalorder %s32_s15, 2  ;;  %p188_p2 = scmp.lt.s32.totalorder %s1254_s14, 3 }
   0x5   : > { %s1433_s15 = smov (%p34_p1, %s32_s15), 0  ;;  %p189_p3 = pnand %p1064_p0, %p188_p2 }
   0x6   : > { %v1208_v0 = vld [vmem:[%s1427_s1] sm:$0xff] (!%p189_p3)   ;;  %s1065_s18 = sshll.u32 (!%p189_p3), %s1246_s12, 5  ;;  %v1209_v1 = vld [vmem:[%s1427_s1 + $0x8] sm:$0xff] (!%p189_p3)   ;;  %v1210_v2 = vld [vmem:[%s1427_s1 + $0x10] sm:$0xff] (!%p189_p3)  }
   0x7   : > { %192 = sbr.rel (%p189_p3) target bundleno = 288 (0x120), region = 32  ;;  %p230_p4 = scmp.lt.s32.totalorder (!%p189_p3), %s1065_s18, 63  ;;  %1120 = vmatprep.subr.bf16.mxu0 (!%p189_p3), %v1208_v0  ;;  %1168 = vmatprep.subr.bf16.mxu1 (!%p189_p3), %v1208_v0  ;;  %v1211_v3 = vld [vmem:[%s1427_s1 + $0x18] sm:$0xff] (!%p189_p3)   ;;  %v1212_v6 = vld [vmem:[%s1427_s1 + $0x20] sm:$0xff] (!%p189_p3)   ;;  %v1213_v7 = vld [vmem:[%s1427_s1 + $0x28] sm:$0xff] (!%p189_p3)  }
   0x8   : > { %1121 = vmatpush3.bf16.msra.mxu0 (!%p189_p3), %v1208_v0  ;;  %1176 = vmatpush3.bf16.msra.mxu1 (!%p189_p3), %v1208_v0  ;;  %v1214_v8 = vld [vmem:[%s1427_s1 + $0x30] sm:$0xff] (!%p189_p3)   ;;  %v1215_v9 = vld [vmem:[%s1427_s1 + $0x38] sm:$0xff] (!%p189_p3)   ;;  %v1345_v24 = vld [vmem:[%s1428_s2] ss:$0 sm:$0xff] (!%p189_p3) }
   0x9   : > { %1122 = vmatprep.subr.bf16.mxu0 (!%p189_p3), %v1209_v1  ;;  %1169 = vmatprep.subr.bf16.mxu1 (!%p189_p3), %v1209_v1 }
   0xc   : > { %1123 = vmatpush3.bf16.msra.mxu0 (!%p189_p3), %v1209_v1  ;;  %1177 = vmatpush3.bf16.msra.mxu1 (!%p189_p3), %v1209_v1 }
   0xd   : > { %1124 = vmatprep.subr.bf16.mxu0 (!%p189_p3), %v1210_v2  ;;  %1170 = vmatprep.subr.bf16.mxu1 (!%p189_p3), %v1210_v2 }
   0xe   : > { %s1435_s18 = smov (!%p230_p4, %s1065_s18), 63 }
   0xf   : > { %s1066_s23 = sshll.u32 %s1435_s18, 2  ;;  %s1068_s12 = sshll.u32 %s1435_s18, 3 }
  0x10   : > { %s1309_s26 = scalar_lea.vmem %s1426_s0, %s1066_s23  ;;  %1125 = vmatpush3.bf16.msra.mxu0 %v1210_v2  ;;  %1178 = vmatpush3.bf16.msra.mxu1 %v1210_v2  ;;  %s1355_s19 = scalar_lea.vmem %s1429_s3, %s1068_s12 }
  0x11   : > { %v1216_v4 = vld [vmem:[%s1309_s26] sm:$0xff]   ;;  %1126 = vmatprep.subr.bf16.mxu0 %v1211_v3  ;;  %1171 = vmatprep.subr.bf16.mxu1 %v1211_v3  ;;  %v1218_v10 = vld [vmem:[%s1309_s26 + $0x8] sm:$0xff]   ;;  %v1220_v12 = vld [vmem:[%s1309_s26 + $0x10] sm:$0xff]  }
  0x12   : > { %v1217_v5 = vld [vmem:[%s1309_s26 + $0x40] sm:$0xff]   ;;  %1136 = vmatprep.mubr.bf16.mxu0 %v1216_v4  ;;  %v1219_v11 = vld [vmem:[%s1309_s26 + $0x48] sm:$0xff]   ;;  %v1221_v13 = vld [vmem:[%s1309_s26 + $0x50] sm:$0xff]  }
  0x13   : > { %1152 = vmatprep.mubr.bf16.mxu1 %v1217_v5  ;;  %v1222_v14 = vld [vmem:[%s1309_s26 + $0x18] sm:$0xff]   ;;  %v1224_v16 = vld [vmem:[%s1309_s26 + $0x20] sm:$0xff]   ;;  %v1226_v18 = vld [vmem:[%s1309_s26 + $0x28] sm:$0xff]  }
  0x14   : > { %1127 = vmatpush3.bf16.msra.mxu0 %v1211_v3  ;;  %1179 = vmatpush3.bf16.msra.mxu1 %v1211_v3  ;;  %v1223_v15 = vld [vmem:[%s1309_s26 + $0x58] sm:$0xff]   ;;  %v1225_v17 = vld [vmem:[%s1309_s26 + $0x60] sm:$0xff]   ;;  %v1227_v19 = vld [vmem:[%s1309_s26 + $0x68] sm:$0xff]  }
  0x15   : > { %1128 = vmatprep.subr.bf16.mxu0 %v1212_v6  ;;  %1172 = vmatprep.subr.bf16.mxu1 %v1212_v6  ;;  %v1228_v20 = vld [vmem:[%s1309_s26 + $0x30] sm:$0xff]   ;;  %v1230_v22 = vld [vmem:[%s1309_s26 + $0x38] sm:$0xff]  }
  0x16   : > { %v1229_v21 = vld [vmem:[%s1309_s26 + $0x70] sm:$0xff]   ;;  %v1231_v23 = vld [vmem:[%s1309_s26 + $0x78] sm:$0xff]  }
  0x18   : > { %1129 = vmatpush3.bf16.msra.mxu0 %v1212_v6  ;;  %1180 = vmatpush3.bf16.msra.mxu1 %v1212_v6 }
  0x19   : > { %1130 = vmatprep.subr.bf16.mxu0 %v1213_v7  ;;  %1173 = vmatprep.subr.bf16.mxu1 %v1213_v7 }
  0x1c   : > { %1131 = vmatpush3.bf16.msra.mxu0 %v1213_v7  ;;  %1181 = vmatpush3.bf16.msra.mxu1 %v1213_v7 }
  0x1d   : > { %1132 = vmatprep.subr.bf16.mxu0 %v1214_v8  ;;  %1174 = vmatprep.subr.bf16.mxu1 %v1214_v8 }
  0x20   : > { %1133 = vmatpush3.bf16.msra.mxu0 %v1214_v8  ;;  %1182 = vmatpush3.bf16.msra.mxu1 %v1214_v8 }
  0x21   : > { %1134 = vmatprep.subr.bf16.mxu0 %v1215_v9  ;;  %1175 = vmatprep.subr.bf16.mxu1 %v1215_v9 }
  0x24   : > { %1135 = vmatpush3.bf16.msra.mxu0 %v1215_v9  ;;  %1183 = vmatpush3.bf16.msra.mxu1 %v1215_v9 }
  0x27   : > { %1137 = vmatmul.mubr.bf16.vlgmr.msra.gmra.mrb[0].mxu0 %v1218_v10  ;;  %1153 = vmatmul.mubr.bf16.vlgmr.msra.gmra.mrb[0].mxu1 %v1219_v11 }
  0x28   : > { %1140 = vmatprep.mubr.bf16.mxu0 %v1220_v12  ;;  %1156 = vmatprep.mubr.bf16.mxu1 %v1221_v13 }
  0x2f   : > { %1141 = vmatmul.mubr.bf16.gmra.mrb[4].mxu0 %v1222_v14  ;;  %1157 = vmatmul.mubr.bf16.gmra.mrb[4].mxu1 %v1223_v15 }
  0x30   : > { %1144 = vmatprep.mubr.bf16.mxu0 %v1224_v16  ;;  %1160 = vmatprep.mubr.bf16.mxu1 %v1225_v17 }
  0x37   : > { %1145 = vmatmul.mubr.bf16.gmra.mrb[8].mxu0 %v1226_v18  ;;  %1161 = vmatmul.mubr.bf16.gmra.mrb[8].mxu1 %v1227_v19 }
  0x38   : > { %1148 = vmatprep.mubr.bf16.mxu0 %v1228_v20  ;;  %1164 = vmatprep.mubr.bf16.mxu1 %v1229_v21 }
  0x3f   : > { %1149 = vmatmul.mubr.bf16.gmra.mrb[12].mxu0 %v1230_v22  ;;  %1165 = vmatmul.mubr.bf16.gmra.mrb[12].mxu1 %v1231_v23 }
  0xfa   : > { %v1138_v25 = vpop.f32.mrb[0].mxu0  ;;  %v1154_v26 = vpop.f32.mrb[0].mxu1 }
  0xfb   : > { %v789_v27 = vadd.f32 %v1138_v25, %v1345_v24  ;;  %v805_v28 = vadd.f32 %v1154_v26, %v1345_v24  ;;  %v554_v29 = vpop.f32.mrb[1].mxu0  ;;  %v618_v30 = vpop.f32.mrb[1].mxu1 }
  0xfc   : > { %v787_v31 = vadd.f32 %v1345_v24, %v554_v29  ;;  %v803_v32 = vadd.f32 %v1345_v24, %v618_v30  ;;  %v1139_v33 = vpop.f32.mrb[2].mxu0  ;;  %v1155_v34 = vpop.f32.mrb[2].mxu1 }
  0xfd   : > { %vm821_vm0 = vcmp.gt.f32.partialorder %v789_v27, 0.0  ;;  %v853_v35 = vmul.f32 0.2, %v789_v27  ;;  %vm837_vm1 = vcmp.gt.f32.partialorder %v805_v28, 0.0  ;;  %v869_v36 = vmul.f32 0.2, %v805_v28 }
  0xfe   : > { %vm819_vm2 = vcmp.gt.f32.partialorder %v787_v31, 0.0  ;;  %v851_v37 = vmul.f32 0.2, %v787_v31  ;;  %vm835_vm3 = vcmp.gt.f32.partialorder %v803_v32, 0.0  ;;  %v867_v38 = vmul.f32 0.2, %v803_v32 }
  0xff   : > { %v885_v39 = vsel %vm821_vm0, %v789_v27, %v853_v35  ;;  %v901_v40 = vsel %vm837_vm1, %v805_v28, %v869_v36  ;;  %v790_v41 = vadd.f32 %v1139_v33, %v1345_v24  ;;  %v806_v42 = vadd.f32 %v1155_v34, %v1345_v24  ;;  %v557_v43 = vpop.f32.mrb[3].mxu0  ;;  %v621_v44 = vpop.f32.mrb[3].mxu1 }
 0x100   : > { %917 = vst [vmem:[%s1355_s19 + $0x10] sm:$0xff] %v885_v39  ;;  %933 = vst [vmem:[%s1355_s19 + $0x90] sm:$0xff] %v901_v40  ;;  %v883_v45 = vsel %vm819_vm2, %v787_v31, %v851_v37  ;;  %v899_v46 = vsel %vm835_vm3, %v803_v32, %v867_v38  ;;  %v788_v47 = vadd.f32 %v1345_v24, %v557_v43 }
 0x101   : > { %v804_v48 = vadd.f32 %v1345_v24, %v621_v44  ;;  %915 = vst [vmem:[%s1355_s19] sm:$0xff] %v883_v45  ;;  %931 = vst [vmem:[%s1355_s19 + $0x80] sm:$0xff] %v899_v46  ;;  %vm822_vm4 = vcmp.gt.f32.partialorder %v790_v41, 0.0  ;;  %v854_v49 = vmul.f32 0.2, %v790_v41  ;;  %vm838_vm5 = vcmp.gt.f32.partialorder %v806_v42, 0.0 }
 0x102   : > { %v870_v50 = vmul.f32 0.2, %v806_v42  ;;  %vm820_vm6 = vcmp.gt.f32.partialorder %v788_v47, 0.0  ;;  %v852_v51 = vmul.f32 0.2, %v788_v47  ;;  %v1142_v55 = vpop.f32.mrb[4].mxu0 }
 0x103   : > { %vm836_vm7 = vcmp.gt.f32.partialorder %v804_v48, 0.0  ;;  %v868_v52 = vmul.f32 0.2, %v804_v48  ;;  %v886_v53 = vsel %vm822_vm4, %v790_v41, %v854_v49  ;;  %v1158_v56 = vpop.f32.mrb[4].mxu1  ;;  %v793_v59 = vadd.f32 %v1142_v55, %v1345_v24  ;;  %v570_v61 = vpop.f32.mrb[5].mxu0 }
 0x104   : > { %v902_v54 = vsel %vm838_vm5, %v806_v42, %v870_v50  ;;  %918 = vst [vmem:[%s1355_s19 + $0x18] sm:$0xff] %v886_v53  ;;  %v884_v57 = vsel %vm820_vm6, %v788_v47, %v852_v51  ;;  %v809_v60 = vadd.f32 %v1158_v56, %v1345_v24  ;;  %v634_v62 = vpop.f32.mrb[5].mxu1  ;;  %v791_v63 = vadd.f32 %v1345_v24, %v570_v61  ;;  %v1143_v1 = vpop.f32.mrb[6].mxu0 }
 0x105   : > { %934 = vst [vmem:[%s1355_s19 + $0x98] sm:$0xff] %v902_v54  ;;  %v900_v58 = vsel %vm836_vm7, %v804_v48, %v868_v52  ;;  %916 = vst [vmem:[%s1355_s19 + $0x8] sm:$0xff] %v884_v57  ;;  %v807_v0 = vadd.f32 %v1345_v24, %v634_v62  ;;  %v1159_v2 = vpop.f32.mrb[6].mxu1  ;;  %vm825_vm8 = vcmp.gt.f32.partialorder %v793_v59, 0.0  ;;  %v857_v3 = vmul.f32 0.2, %v793_v59 }
 0x106   : > { %932 = vst [vmem:[%s1355_s19 + $0x88] sm:$0xff] %v900_v58  ;;  %vm841_vm9 = vcmp.gt.f32.partialorder %v809_v60, 0.0  ;;  %v873_v4 = vmul.f32 0.2, %v809_v60  ;;  %vm823_vm10 = vcmp.gt.f32.partialorder %v791_v63, 0.0  ;;  %v794_v9 = vadd.f32 %v1143_v1, %v1345_v24  ;;  %v573_v11 = vpop.f32.mrb[7].mxu0 }
 0x107   : > { %v855_v5 = vmul.f32 0.2, %v791_v63  ;;  %vm839_vm11 = vcmp.gt.f32.partialorder %v807_v0, 0.0  ;;  %v871_v6 = vmul.f32 0.2, %v807_v0  ;;  %v889_v7 = vsel %vm825_vm8, %v793_v59, %v857_v3  ;;  %v637_v12 = vpop.f32.mrb[7].mxu1 }
 0x108   : > { %v905_v8 = vsel %vm841_vm9, %v809_v60, %v873_v4  ;;  %v810_v10 = vadd.f32 %v1159_v2, %v1345_v24  ;;  %921 = vst [vmem:[%s1355_s19 + $0x30] sm:$0xff] %v889_v7  ;;  %v792_v15 = vadd.f32 %v1345_v24, %v573_v11  ;;  %v808_v16 = vadd.f32 %v1345_v24, %v637_v12 }
 0x109   : > { %937 = vst [vmem:[%s1355_s19 + $0xb0] sm:$0xff] %v905_v8  ;;  %v887_v13 = vsel %vm823_vm10, %v791_v63, %v855_v5  ;;  %v903_v14 = vsel %vm839_vm11, %v807_v0, %v871_v6  ;;  %vm826_vm12 = vcmp.gt.f32.partialorder %v794_v9, 0.0  ;;  %v858_v17 = vmul.f32 0.2, %v794_v9 }
 0x10a   : > { %919 = vst [vmem:[%s1355_s19 + $0x20] sm:$0xff] %v887_v13  ;;  %935 = vst [vmem:[%s1355_s19 + $0xa0] sm:$0xff] %v903_v14  ;;  %vm842_vm13 = vcmp.gt.f32.partialorder %v810_v10, 0.0  ;;  %v874_v18 = vmul.f32 0.2, %v810_v10  ;;  %vm824_vm14 = vcmp.gt.f32.partialorder %v792_v15, 0.0 }
 0x10b   : > { %v856_v19 = vmul.f32 0.2, %v792_v15  ;;  %vm840_vm15 = vcmp.gt.f32.partialorder %v808_v16, 0.0  ;;  %v872_v20 = vmul.f32 0.2, %v808_v16  ;;  %v890_v21 = vsel %vm826_vm12, %v794_v9, %v858_v17  ;;  %v1146_v23 = vpop.f32.mrb[8].mxu0 }
 0x10c   : > { %v906_v22 = vsel %vm842_vm13, %v810_v10, %v874_v18  ;;  %v1162_v25 = vpop.f32.mrb[8].mxu1  ;;  %922 = vst [vmem:[%s1355_s19 + $0x38] sm:$0xff] %v890_v21  ;;  %v797_v28 = vadd.f32 %v1146_v23, %v1345_v24  ;;  %v586_v30 = vpop.f32.mrb[9].mxu0 }
 0x10d   : > { %938 = vst [vmem:[%s1355_s19 + $0xb8] sm:$0xff] %v906_v22  ;;  %v888_v26 = vsel %vm824_vm14, %v792_v15, %v856_v19  ;;  %v904_v27 = vsel %vm840_vm15, %v808_v16, %v872_v20  ;;  %v813_v29 = vadd.f32 %v1162_v25, %v1345_v24  ;;  %v650_v31 = vpop.f32.mrb[9].mxu1  ;;  %v795_v32 = vadd.f32 %v1345_v24, %v586_v30  ;;  %v1147_v34 = vpop.f32.mrb[10].mxu0 }
 0x10e   : > { %920 = vst [vmem:[%s1355_s19 + $0x28] sm:$0xff] %v888_v26  ;;  %936 = vst [vmem:[%s1355_s19 + $0xa8] sm:$0xff] %v904_v27  ;;  %v811_v33 = vadd.f32 %v1345_v24, %v650_v31  ;;  %v1163_v35 = vpop.f32.mrb[10].mxu1  ;;  %vm829_vm0 = vcmp.gt.f32.partialorder %v797_v28, 0.0  ;;  %v861_v36 = vmul.f32 0.2, %v797_v28  ;;  %v798_v42 = vadd.f32 %v1147_v34, %v1345_v24 }
 0x10f   : > { %vm845_vm1 = vcmp.gt.f32.partialorder %v813_v29, 0.0  ;;  %v877_v37 = vmul.f32 0.2, %v813_v29  ;;  %vm827_vm2 = vcmp.gt.f32.partialorder %v795_v32, 0.0  ;;  %v859_v38 = vmul.f32 0.2, %v795_v32 }
 0x110   : > { %vm843_vm3 = vcmp.gt.f32.partialorder %v811_v33, 0.0  ;;  %v875_v39 = vmul.f32 0.2, %v811_v33  ;;  %v893_v40 = vsel %vm829_vm0, %v797_v28, %v861_v36  ;;  %v814_v43 = vadd.f32 %v1163_v35, %v1345_v24  ;;  %v589_v44 = vpop.f32.mrb[11].mxu0  ;;  %v653_v45 = vpop.f32.mrb[11].mxu1 }
 0x111   : > { %v909_v41 = vsel %vm845_vm1, %v813_v29, %v877_v37  ;;  %925 = vst [vmem:[%s1355_s19 + $0x50] sm:$0xff] %v893_v40  ;;  %v891_v46 = vsel %vm827_vm2, %v795_v32, %v859_v38  ;;  %v796_v48 = vadd.f32 %v1345_v24, %v589_v44  ;;  %v812_v49 = vadd.f32 %v1345_v24, %v653_v45 }
 0x112   : > { %941 = vst [vmem:[%s1355_s19 + $0xd0] sm:$0xff] %v909_v41  ;;  %v907_v47 = vsel %vm843_vm3, %v811_v33, %v875_v39  ;;  %v1150_v50 = vpop.f32.mrb[12].mxu0  ;;  %v1166_v51 = vpop.f32.mrb[12].mxu1  ;;  %923 = vst [vmem:[%s1355_s19 + $0x40] sm:$0xff] %v891_v46  ;;  %vm830_vm4 = vcmp.gt.f32.partialorder %v798_v42, 0.0  ;;  %vm846_vm5 = vcmp.gt.f32.partialorder %v814_v43, 0.0 }
 0x113   : > { %939 = vst [vmem:[%s1355_s19 + $0xc0] sm:$0xff] %v907_v47  ;;  %v862_v52 = vmul.f32 0.2, %v798_v42  ;;  %v878_v53 = vmul.f32 0.2, %v814_v43  ;;  %vm828_vm6 = vcmp.gt.f32.partialorder %v796_v48, 0.0  ;;  %v801_v58 = vadd.f32 %v1150_v50, %v1345_v24 }
 0x114   : > { %v860_v54 = vmul.f32 0.2, %v796_v48  ;;  %vm844_vm7 = vcmp.gt.f32.partialorder %v812_v49, 0.0  ;;  %v876_v55 = vmul.f32 0.2, %v812_v49  ;;  %v817_v59 = vadd.f32 %v1166_v51, %v1345_v24  ;;  %v602_v60 = vpop.f32.mrb[13].mxu0 }
 0x115   : > { %v894_v56 = vsel %vm830_vm4, %v798_v42, %v862_v52  ;;  %v910_v57 = vsel %vm846_vm5, %v814_v43, %v878_v53  ;;  %v666_v61 = vpop.f32.mrb[13].mxu1  ;;  %v799_v0 = vadd.f32 %v1345_v24, %v602_v60  ;;  %v1151_v2 = vpop.f32.mrb[14].mxu0  ;;  %vm833_vm8 = vcmp.gt.f32.partialorder %v801_v58, 0.0 }
 0x116   : > { %926 = vst [vmem:[%s1355_s19 + $0x58] sm:$0xff] %v894_v56  ;;  %942 = vst [vmem:[%s1355_s19 + $0xd8] sm:$0xff] %v910_v57  ;;  %v892_v62 = vsel %vm828_vm6, %v796_v48, %v860_v54  ;;  %v908_v63 = vsel %vm844_vm7, %v812_v49, %v876_v55  ;;  %v815_v1 = vadd.f32 %v1345_v24, %v666_v61  ;;  %v1167_v3 = vpop.f32.mrb[14].mxu1  ;;  %v865_v4 = vmul.f32 0.2, %v801_v58  ;;  %v605_v12 = vpop.f32.mrb[15].mxu0 }
 0x117   : > { %924 = vst [vmem:[%s1355_s19 + $0x48] sm:$0xff] %v892_v62  ;;  %940 = vst [vmem:[%s1355_s19 + $0xc8] sm:$0xff] %v908_v63  ;;  %vm849_vm9 = vcmp.gt.f32.partialorder %v817_v59, 0.0  ;;  %v881_v5 = vmul.f32 0.2, %v817_v59  ;;  %vm831_vm10 = vcmp.gt.f32.partialorder %v799_v0, 0.0  ;;  %v802_v10 = vadd.f32 %v1151_v2, %v1345_v24 }
 0x118   : > { %v863_v6 = vmul.f32 0.2, %v799_v0  ;;  %vm847_vm11 = vcmp.gt.f32.partialorder %v815_v1, 0.0  ;;  %v879_v7 = vmul.f32 0.2, %v815_v1  ;;  %v897_v8 = vsel %vm833_vm8, %v801_v58, %v865_v4  ;;  %v669_v13 = vpop.f32.mrb[15].mxu1 }
 0x119   : > { %v913_v9 = vsel %vm849_vm9, %v817_v59, %v881_v5  ;;  %v818_v11 = vadd.f32 %v1167_v3, %v1345_v24  ;;  %929 = vst [vmem:[%s1355_s19 + $0x70] sm:$0xff] %v897_v8  ;;  %v800_v16 = vadd.f32 %v1345_v24, %v605_v12  ;;  %v816_v17 = vadd.f32 %v1345_v24, %v669_v13 }
 0x11a   : > { %945 = vst [vmem:[%s1355_s19 + $0xf0] sm:$0xff] %v913_v9  ;;  %v895_v14 = vsel %vm831_vm10, %v799_v0, %v863_v6  ;;  %v911_v15 = vsel %vm847_vm11, %v815_v1, %v879_v7  ;;  %vm834_vm12 = vcmp.gt.f32.partialorder %v802_v10, 0.0  ;;  %v866_v18 = vmul.f32 0.2, %v802_v10 }
 0x11b   : > { %927 = vst [vmem:[%s1355_s19 + $0x60] sm:$0xff] %v895_v14  ;;  %943 = vst [vmem:[%s1355_s19 + $0xe0] sm:$0xff] %v911_v15  ;;  %vm850_vm13 = vcmp.gt.f32.partialorder %v818_v11, 0.0  ;;  %v882_v19 = vmul.f32 0.2, %v818_v11  ;;  %vm832_vm14 = vcmp.gt.f32.partialorder %v800_v16, 0.0 }
 0x11c   : > { %v864_v20 = vmul.f32 0.2, %v800_v16  ;;  %vm848_vm15 = vcmp.gt.f32.partialorder %v816_v17, 0.0  ;;  %v880_v21 = vmul.f32 0.2, %v816_v17  ;;  %v898_v22 = vsel %vm834_vm12, %v802_v10, %v866_v18 }
 0x11d   : > { %v914_v23 = vsel %vm850_vm13, %v818_v11, %v882_v19  ;;  %930 = vst [vmem:[%s1355_s19 + $0x78] sm:$0xff] %v898_v22 }
 0x11e   : > { %946 = vst [vmem:[%s1355_s19 + $0xf8] sm:$0xff] %v914_v23  ;;  %v896_v25 = vsel %vm832_vm14, %v800_v16, %v864_v20  ;;  %v912_v26 = vsel %vm848_vm15, %v816_v17, %v880_v21 }
 0x11f   : > { %928 = vst [vmem:[%s1355_s19 + $0x68] sm:$0xff] %v896_v25  ;;  %944 = vst [vmem:[%s1355_s19 + $0xe8] sm:$0xff] %v912_v26 }
 0x120 PF: > { %s13_s14 = sadd.s32 1, %s1254_s14   ;;  %s1430_s12 = smov %s1250_s13 }
 0x121   : > { %p10_p5 = scmp.ge.s32.totalorder %s13_s14, 4   ;;  %s1431_s13 = smov %s1433_s15 }
 0x123   :  { %12 = sbr.rel (!%p10_p5) target bundleno = 2 (0x2), region = 76 }

// kernel: discriminator_forward.9
= control target key start
LH: loop header
LB: loop body
LE: loop exit
PB: predicated region body
PF: predicated region fallthrough
CT: control target
= control target key end

     0   :  { %s1760_s15 = smov 0   ;;  %s1762_s16 = smov 0   ;;  %s2017_s0 = inlined_call_operand.vmem [shape: bf16[128,1024], index: 0, kind: input, shape index: {}]   ;;  %s2018_s1 = inlined_call_operand.vmem [shape: bf16[1024,128], index: 1, kind: input, shape index: {}]   ;;  %s2019_s2 = inlined_call_operand.vmem [shape: f32[1,128], index: 2, kind: input, shape index: {}]   ;;  %s2020_s3 = inlined_call_operand.vmem [shape: f32[128,128], index: 3, kind: output, shape index: {0}]   ;;  %s2021_s4 = inlined_call_operand.vmem [shape: f32[1,2,128], index: 4, kind: output, shape index: {1}]  }
   0x1   :  { %s1764_s17 = smov 0   ;;  %s1766_s18 = smov 0  }
   0x2   :  { %s1768_s19 = smov 0  }
   0x3 LB: > { %s27_s20 = sadd.s32 1, %s1728_s18  ;;  %p50_p1 = scmp.ne.s32.totalorder %s1720_s16, %s1716_s15  ;;  %s1732_s19 = sphi %s1768_s19, %s15_s19   ;;  %s1728_s18 = sphi %s1766_s18, %s2025_s18   ;;  %s1724_s17 = sphi %s1764_s17, %s2024_s17   ;;  %s1720_s16 = sphi %s1762_s16, %s2023_s16   ;;  %s1716_s15 = sphi %s1760_s15, %s2022_s15  }
   0x4   : > { %p28_p0 = scmp.ge.s32.totalorder %s27_s20, 2  ;;  %p51_p2 = scmp.eq.s32.totalorder %s1732_s19, 0 }
   0x5   : > { %s43_s22 = sadd.s32 1, %s1720_s16  ;;  %p1364_p5 = scmp.ge.s32.totalorder %s1732_s19, 2 }
   0x6   : > { %s2027_s20 = smov (%p28_p0, %s27_s20), 0  ;;  %p52_p3 = por %p51_p2, %p50_p1 }
   0x7   : > { %s39_s21 = ssub.s32 %s1728_s18, %s2027_s20  ;;  %192 = sbr.rel (%p1364_p5) target bundleno = 34 (0x22), region = 20 }
   0x8   : > { %p41_p4 = scmp.eq.s32.totalorder %s39_s21, 0 }
   0xa   : > { %s1795_s23 = scalar_select %p41_p4, %s1720_s16, %s43_s22  }
   0xe   : > { %195 = sbr.rel (!%p52_p3) target bundleno = 34 (0x22), region = 24  ;;  %s197_s24 = sand.u32 (%p52_p3), 1, %s1720_s16  }
   0xf   : > { %s1444_s25 = sshll.u32 (%p52_p3), %s1728_s18, 4  ;;  %s1365_s26 = sshll.u32 (%p52_p3), %s197_s24, 8 }
  0x10   : > { %s1803_s29 = scalar_lea.vmem (%p52_p3), %s2017_s0, %s1444_s25  ;;  %s1808_s30 = scalar_lea.vmem (%p52_p3), [#allocation3], %s1365_s26 }
  0x11   : > { %v218_v0 = vld [vmem:[%s1803_s29] sm:$0xff] (%p52_p3)  ;;  %v220_v1 = vld [vmem:[%s1803_s29 + $0x8] sm:$0xff] (%p52_p3) }
  0x12   : > { %v222_v2 = vld [vmem:[%s1803_s29 + $0x20] sm:$0xff] (%p52_p3)  ;;  %219 = vst [vmem:[%s1808_s30] sm:$0xff] (%p52_p3), %v218_v0  ;;  %221 = vst [vmem:[%s1808_s30 + $0x8] sm:$0xff] (%p52_p3), %v220_v1  ;;  %v224_v3 = vld [vmem:[%s1803_s29 + $0x28] sm:$0xff] (%p52_p3) }
  0x13   : > { %223 = vst [vmem:[%s1808_s30 + $0x10] sm:$0xff] (%p52_p3), %v222_v2  ;;  %v226_v4 = vld [vmem:[%s1803_s29 + $0x40] sm:$0xff] (%p52_p3)  ;;  %v228_v5 = vld [vmem:[%s1803_s29 + $0x48] sm:$0xff] (%p52_p3)  ;;  %225 = vst [vmem:[%s1808_s30 + $0x18] sm:$0xff] (%p52_p3), %v224_v3 }
  0x14   : > { %227 = vst [vmem:[%s1808_s30 + $0x20] sm:$0xff] (%p52_p3), %v226_v4  ;;  %229 = vst [vmem:[%s1808_s30 + $0x28] sm:$0xff] (%p52_p3), %v228_v5  ;;  %v230_v6 = vld [vmem:[%s1803_s29 + $0x60] sm:$0xff] (%p52_p3)  ;;  %v232_v7 = vld [vmem:[%s1803_s29 + $0x68] sm:$0xff] (%p52_p3) }
  0x15   : > { %v234_v8 = vld [vmem:[%s1803_s29 + $0x80] sm:$0xff]  ;;  %231 = vst [vmem:[%s1808_s30 + $0x30] sm:$0xff] %v230_v6  ;;  %233 = vst [vmem:[%s1808_s30 + $0x38] sm:$0xff] %v232_v7  ;;  %v236_v9 = vld [vmem:[%s1803_s29 + $0x88] sm:$0xff] }
  0x16   : > { %235 = vst [vmem:[%s1808_s30 + $0x40] sm:$0xff] %v234_v8  ;;  %v238_v10 = vld [vmem:[%s1803_s29 + $0xa0] sm:$0xff]  ;;  %v240_v11 = vld [vmem:[%s1803_s29 + $0xa8] sm:$0xff]  ;;  %237 = vst [vmem:[%s1808_s30 + $0x48] sm:$0xff] %v236_v9 }
  0x17   : > { %239 = vst [vmem:[%s1808_s30 + $0x50] sm:$0xff] %v238_v10  ;;  %241 = vst [vmem:[%s1808_s30 + $0x58] sm:$0xff] %v240_v11  ;;  %v242_v12 = vld [vmem:[%s1803_s29 + $0xc0] sm:$0xff]  ;;  %v244_v13 = vld [vmem:[%s1803_s29 + $0xc8] sm:$0xff] }
  0x18   : > { %v246_v14 = vld [vmem:[%s1803_s29 + $0xe0] sm:$0xff]  ;;  %243 = vst [vmem:[%s1808_s30 + $0x60] sm:$0xff] %v242_v12  ;;  %245 = vst [vmem:[%s1808_s30 + $0x68] sm:$0xff] %v244_v13  ;;  %v248_v15 = vld [vmem:[%s1803_s29 + $0xe8] sm:$0xff] }
  0x19   : > { %247 = vst [vmem:[%s1808_s30 + $0x70] sm:$0xff] %v246_v14  ;;  %v250_v16 = vld [vmem:[%s1803_s29 + $0x100] sm:$0xff]  ;;  %v252_v17 = vld [vmem:[%s1803_s29 + $0x108] sm:$0xff]  ;;  %249 = vst [vmem:[%s1808_s30 + $0x78] sm:$0xff] %v248_v15 }
  0x1a   : > { %251 = vst [vmem:[%s1808_s30 + $0x80] sm:$0xff] %v250_v16  ;;  %253 = vst [vmem:[%s1808_s30 + $0x88] sm:$0xff] %v252_v17  ;;  %v254_v18 = vld [vmem:[%s1803_s29 + $0x120] sm:$0xff]  ;;  %v256_v19 = vld [vmem:[%s1803_s29 + $0x128] sm:$0xff] }
  0x1b   : > { %v258_v20 = vld [vmem:[%s1803_s29 + $0x140] sm:$0xff]  ;;  %255 = vst [vmem:[%s1808_s30 + $0x90] sm:$0xff] %v254_v18  ;;  %257 = vst [vmem:[%s1808_s30 + $0x98] sm:$0xff] %v256_v19  ;;  %v260_v21 = vld [vmem:[%s1803_s29 + $0x148] sm:$0xff] }
  0x1c   : > { %259 = vst [vmem:[%s1808_s30 + $0xa0] sm:$0xff] %v258_v20  ;;  %v262_v22 = vld [vmem:[%s1803_s29 + $0x160] sm:$0xff]  ;;  %v264_v23 = vld [vmem:[%s1803_s29 + $0x168] sm:$0xff]  ;;  %261 = vst [vmem:[%s1808_s30 + $0xa8] sm:$0xff] %v260_v21 }
  0x1d   : > { %263 = vst [vmem:[%s1808_s30 + $0xb0] sm:$0xff] %v262_v22  ;;  %265 = vst [vmem:[%s1808_s30 + $0xb8] sm:$0xff] %v264_v23  ;;  %v266_v24 = vld [vmem:[%s1803_s29 + $0x180] sm:$0xff]  ;;  %v268_v25 = vld [vmem:[%s1803_s29 + $0x188] sm:$0xff] }
  0x1e   : > { %v270_v26 = vld [vmem:[%s1803_s29 + $0x1a0] sm:$0xff]  ;;  %267 = vst [vmem:[%s1808_s30 + $0xc0] sm:$0xff] %v266_v24  ;;  %269 = vst [vmem:[%s1808_s30 + $0xc8] sm:$0xff] %v268_v25  ;;  %v272_v27 = vld [vmem:[%s1803_s29 + $0x1a8] sm:$0xff] }
  0x1f   : > { %271 = vst [vmem:[%s1808_s30 + $0xd0] sm:$0xff] %v270_v26  ;;  %v274_v28 = vld [vmem:[%s1803_s29 + $0x1c0] sm:$0xff]  ;;  %v276_v29 = vld [vmem:[%s1803_s29 + $0x1c8] sm:$0xff]  ;;  %273 = vst [vmem:[%s1808_s30 + $0xd8] sm:$0xff] %v272_v27 }
  0x20   : > { %275 = vst [vmem:[%s1808_s30 + $0xe0] sm:$0xff] %v274_v28  ;;  %277 = vst [vmem:[%s1808_s30 + $0xe8] sm:$0xff] %v276_v29  ;;  %v278_v30 = vld [vmem:[%s1803_s29 + $0x1e0] sm:$0xff]  ;;  %v280_v31 = vld [vmem:[%s1803_s29 + $0x1e8] sm:$0xff] }
  0x21   : > { %279 = vst [vmem:[%s1808_s30 + $0xf0] sm:$0xff] %v278_v30  ;;  %281 = vst [vmem:[%s1808_s30 + $0xf8] sm:$0xff] %v280_v31 }
  0x22 PF: > { %p1368_p6 = scmp.ge.s32.totalorder %s1732_s19, 1  ;;  %p298_p7 = scmp.lt.s32.totalorder %s1732_s19, 3 }
  0x24   : > { %p299_p8 = pnand %p1368_p6, %p298_p7 }
  0x25   : > { %s305_s5 = sand.u32 (!%p299_p8), 1, %s1716_s15   ;;  %s1370_s6 = sshll.u32 (!%p299_p8), %s1724_s17, 6 }
  0x26   : > { %302 = sbr.rel (%p299_p8) target bundleno = 399 (0x18f), region = 51  ;;  %s1369_s7 = sshll.u32 (!%p299_p8), %s305_s5, 8 }
  0x27   : > { %p354_p9 = scmp.lt.s32.totalorder (!%p299_p8), %s1370_s6, 127  ;;  %s1880_s12 = scalar_lea.vmem (!%p299_p8), [#allocation3], %s1369_s7 }
  0x28   : > { %p1372_p10 = scmp.ne.s32.totalorder (!%p299_p8), %s1724_s17, 0 }
  0x2d   : > { %s2029_s6 = smov (!%p354_p9, %s1370_s6), 127  ;;  %385 = sbr.rel (%p1372_p10) target bundleno = 55 (0x37), region = 59 }
  0x2e   : > { %s1371_s8 = sshll.u32 %s2029_s6, 2  ;;  %v1734_v32 = vmov (!%p1372_p10), 0.0  }
  0x2f   : > { %s1878_s11 = scalar_lea.vmem %s2018_s1, %s1371_s8  ;;  %386 = vst [vmem:[#allocation2] sm:$0xff] (!%p1372_p10), %v1734_v32  ;;  %387 = vst [vmem:[#allocation2 + $0x8] sm:$0xff] (!%p1372_p10), %v1734_v32 }
  0x30   : > { %388 = vst [vmem:[#allocation2 + $0x10] sm:$0xff] (!%p1372_p10), %v1734_v32  ;;  %389 = vst [vmem:[#allocation2 + $0x18] sm:$0xff] (!%p1372_p10), %v1734_v32 }
  0x31   : > { %390 = vst [vmem:[#allocation2 + $0x20] sm:$0xff] (!%p1372_p10), %v1734_v32  ;;  %391 = vst [vmem:[#allocation2 + $0x28] sm:$0xff] (!%p1372_p10), %v1734_v32 }
  0x32   : > { %392 = vst [vmem:[#allocation2 + $0x30] sm:$0xff] (!%p1372_p10), %v1734_v32  ;;  %393 = vst [vmem:[#allocation2 + $0x38] sm:$0xff] (!%p1372_p10), %v1734_v32 }
  0x33   : > { %394 = vst [vmem:[#allocation2 + $0x40] sm:$0xff] (!%p1372_p10), %v1734_v32  ;;  %395 = vst [vmem:[#allocation2 + $0x48] sm:$0xff] (!%p1372_p10), %v1734_v32 }
  0x34   : > { %396 = vst [vmem:[#allocation2 + $0x50] sm:$0xff] %v1734_v32  ;;  %397 = vst [vmem:[#allocation2 + $0x58] sm:$0xff] %v1734_v32 }
  0x35   : > { %398 = vst [vmem:[#allocation2 + $0x60] sm:$0xff] %v1734_v32  ;;  %399 = vst [vmem:[#allocation2 + $0x68] sm:$0xff] %v1734_v32 }
  0x36   : > { %400 = vst [vmem:[#allocation2 + $0x70] sm:$0xff] %v1734_v32  ;;  %401 = vst [vmem:[#allocation2 + $0x78] sm:$0xff] %v1734_v32 }
  0x37 PF: > { %v1614_v33 = vld [vmem:[%s1878_s11 + $0x40] sm:$0xff]   ;;  %v1618_v37 = vld [vmem:[%s1878_s11 + $0x48] sm:$0xff]   ;;  %v1622_v41 = vld [vmem:[%s1878_s11 + $0x50] sm:$0xff]   ;;  %p1437_p11 = scmp.ne.s32.totalorder %s1724_s17, 1 }
  0x38   : > { %v1615_v34 = vld [vmem:[%s1878_s11 + $0xc0] sm:$0xff]   ;;  %1445 = vmatprep.subr.bf16.mxu0 %v1614_v33  ;;  %v1619_v38 = vld [vmem:[%s1878_s11 + $0xc8] sm:$0xff]   ;;  %v1623_v42 = vld [vmem:[%s1878_s11 + $0xd0] sm:$0xff]   ;;  %vm1209_vm0 = vcmask (!%p1437_p11), 1040384  }
  0x39   : > { %v1616_v35 = vld [vmem:[%s1878_s11] sm:$0xff]   ;;  %1509 = vmatprep.subr.bf16.mxu1 %v1615_v34  ;;  %v1620_v39 = vld [vmem:[%s1878_s11 + $0x8] sm:$0xff]   ;;  %v1624_v43 = vld [vmem:[%s1878_s11 + $0x10] sm:$0xff]  }
  0x3a   : > { %v1617_v36 = vld [vmem:[%s1878_s11 + $0x80] sm:$0xff]   ;;  %1446 = vmatpush3.bf16.msra.mxu0 %v1616_v35  ;;  %v1621_v40 = vld [vmem:[%s1878_s11 + $0x88] sm:$0xff]   ;;  %v1625_v44 = vld [vmem:[%s1878_s11 + $0x90] sm:$0xff]  }
  0x3b   : > { %1510 = vmatpush3.bf16.msra.mxu1 %v1617_v36  ;;  %1447 = vmatprep.subr.bf16.mxu0 %v1618_v37  ;;  %v1626_v45 = vld [vmem:[%s1878_s11 + $0x58] sm:$0xff]   ;;  %v1630_v49 = vld [vmem:[%s1878_s11 + $0x60] sm:$0xff]   ;;  %v1634_v53 = vld [vmem:[%s1878_s11 + $0x68] sm:$0xff]  }
  0x3c   : > { %1511 = vmatprep.subr.bf16.mxu1 %v1619_v38  ;;  %v1627_v46 = vld [vmem:[%s1878_s11 + $0xd8] sm:$0xff]   ;;  %v1631_v50 = vld [vmem:[%s1878_s11 + $0xe0] sm:$0xff]   ;;  %v1635_v54 = vld [vmem:[%s1878_s11 + $0xe8] sm:$0xff]  }
  0x3d   : > { %v1628_v47 = vld [vmem:[%s1878_s11 + $0x18] sm:$0xff]   ;;  %v1632_v51 = vld [vmem:[%s1878_s11 + $0x20] sm:$0xff]   ;;  %v1636_v55 = vld [vmem:[%s1878_s11 + $0x28] sm:$0xff]  }
  0x3e   : > { %1448 = vmatpush3.bf16.msra.mxu0 %v1620_v39  ;;  %v1629_v48 = vld [vmem:[%s1878_s11 + $0x98] sm:$0xff]   ;;  %v1633_v52 = vld [vmem:[%s1878_s11 + $0xa0] sm:$0xff]   ;;  %v1637_v56 = vld [vmem:[%s1878_s11 + $0xa8] sm:$0xff]  }
  0x3f   : > { %1512 = vmatpush3.bf16.msra.mxu1 %v1621_v40  ;;  %1449 = vmatprep.subr.bf16.mxu0 %v1622_v41  ;;  %v1638_v57 = vld [vmem:[%s1878_s11 + $0x70] sm:$0xff]   ;;  %v1642_v61 = vld [vmem:[%s1878_s11 + $0x78] sm:$0xff]  }
  0x40   : > { %1513 = vmatprep.subr.bf16.mxu1 %v1623_v42  ;;  %v1639_v58 = vld [vmem:[%s1878_s11 + $0xf0] sm:$0xff]   ;;  %v1643_v62 = vld [vmem:[%s1878_s11 + $0xf8] sm:$0xff]   ;;  %v402_v42 = vld [vmem:[#allocation2] sm:$0xff] }
  0x41   : > { %v1640_v59 = vld [vmem:[%s1878_s11 + $0x30] sm:$0xff]   ;;  %v1644_v63 = vld [vmem:[%s1878_s11 + $0x38] sm:$0xff]  }
  0x42   : > { %1450 = vmatpush3.bf16.msra.mxu0 %v1624_v43  ;;  %v1641_v60 = vld [vmem:[%s1878_s11 + $0xb0] sm:$0xff]   ;;  %v1645_v0 = vld [vmem:[%s1878_s11 + $0xb8] sm:$0xff]  }
  0x43   : > { %1514 = vmatpush3.bf16.msra.mxu1 %v1625_v44  ;;  %1451 = vmatprep.subr.bf16.mxu0 %v1626_v45  ;;  %v1646_v1 = vld [vmem:[%s1880_s12] ss:$16 sps:$4 sm:$0xff]   ;;  %v1648_v2 = vld [vmem:[%s1880_s12 + $0x4] ss:$16 sps:$4 sm:$0xff]   ;;  %v1649_v3 = vld [vmem:[%s1880_s12 + $0x8] ss:$16 sps:$4 sm:$0xff]  }
  0x44   : > { %1515 = vmatprep.subr.bf16.mxu1 %v1627_v46  ;;  %v1651_v4 = vld [vmem:[%s1880_s12 + $0xc] ss:$16 sps:$4 sm:$0xff]   ;;  %898 = vmatprep.mubr.bf16.mxu0 %v1648_v2  ;;  %v1652_v5 = vld [vmem:[%s1880_s12 + $0x24] ss:$16 sps:$4 sm:$0xff]   ;;  %v1656_v7 = vld [vmem:[%s1880_s12 + $0x20] ss:$16 sps:$4 sm:$0xff]  }
  0x45   : > { %995 = vmatprep.mubr.bf16.mxu1 %v1651_v4  ;;  %v1654_v6 = vld [vmem:[%s1880_s12 + $0x2c] ss:$16 sps:$4 sm:$0xff]   ;;  %v1657_v8 = vld [vmem:[%s1880_s12 + $0x28] ss:$16 sps:$4 sm:$0xff]   ;;  %v1658_v9 = vld [vmem:[%s1880_s12 + $0x44] ss:$16 sps:$4 sm:$0xff]  }
  0x46   : > { %1452 = vmatpush3.bf16.msra.mxu0 %v1628_v47  ;;  %v1660_v10 = vld [vmem:[%s1880_s12 + $0x4c] ss:$16 sps:$4 sm:$0xff]   ;;  %v1662_v11 = vld [vmem:[%s1880_s12 + $0x40] ss:$16 sps:$4 sm:$0xff]   ;;  %v1663_v12 = vld [vmem:[%s1880_s12 + $0x48] ss:$16 sps:$4 sm:$0xff]  }
  0x47   : > { %1516 = vmatpush3.bf16.msra.mxu1 %v1629_v48  ;;  %1453 = vmatprep.subr.bf16.mxu0 %v1630_v49  ;;  %v1664_v13 = vld [vmem:[%s1880_s12 + $0x64] ss:$16 sps:$4 sm:$0xff]   ;;  %v1666_v14 = vld [vmem:[%s1880_s12 + $0x6c] ss:$16 sps:$4 sm:$0xff]   ;;  %v1668_v15 = vld [vmem:[%s1880_s12 + $0x60] ss:$16 sps:$4 sm:$0xff]  }
  0x48   : > { %1517 = vmatprep.subr.bf16.mxu1 %v1631_v50  ;;  %v1669_v16 = vld [vmem:[%s1880_s12 + $0x68] ss:$16 sps:$4 sm:$0xff]   ;;  %v1670_v17 = vld [vmem:[%s1880_s12 + $0x84] ss:$16 sps:$4 sm:$0xff]   ;;  %v1672_v18 = vld [vmem:[%s1880_s12 + $0x8c] ss:$16 sps:$4 sm:$0xff]  }
  0x49   : > { %v1674_v19 = vld [vmem:[%s1880_s12 + $0x80] ss:$16 sps:$4 sm:$0xff]   ;;  %v1675_v20 = vld [vmem:[%s1880_s12 + $0x88] ss:$16 sps:$4 sm:$0xff]   ;;  %v1676_v21 = vld [vmem:[%s1880_s12 + $0xa4] ss:$16 sps:$4 sm:$0xff]  }
  0x4a   : > { %1454 = vmatpush3.bf16.msra.mxu0 %v1632_v51  ;;  %v1678_v22 = vld [vmem:[%s1880_s12 + $0xac] ss:$16 sps:$4 sm:$0xff]   ;;  %v1680_v23 = vld [vmem:[%s1880_s12 + $0xa0] ss:$16 sps:$4 sm:$0xff]   ;;  %v1681_v24 = vld [vmem:[%s1880_s12 + $0xa8] ss:$16 sps:$4 sm:$0xff]  }
  0x4b   : > { %1518 = vmatpush3.bf16.msra.mxu1 %v1633_v52  ;;  %1455 = vmatprep.subr.bf16.mxu0 %v1634_v53  ;;  %v1682_v25 = vld [vmem:[%s1880_s12 + $0xc4] ss:$16 sps:$4 sm:$0xff]   ;;  %v1684_v26 = vld [vmem:[%s1880_s12 + $0xcc] ss:$16 sps:$4 sm:$0xff]   ;;  %v1686_v27 = vld [vmem:[%s1880_s12 + $0xc0] ss:$16 sps:$4 sm:$0xff]  }
  0x4c   : > { %1519 = vmatprep.subr.bf16.mxu1 %v1635_v54  ;;  %v1687_v28 = vld [vmem:[%s1880_s12 + $0xc8] ss:$16 sps:$4 sm:$0xff]   ;;  %v1688_v29 = vld [vmem:[%s1880_s12 + $0xe4] ss:$16 sps:$4 sm:$0xff]   ;;  %v1690_v30 = vld [vmem:[%s1880_s12 + $0xec] ss:$16 sps:$4 sm:$0xff]  }
  0x4d   : > { %v1692_v31 = vld [vmem:[%s1880_s12 + $0xe0] ss:$16 sps:$4 sm:$0xff]   ;;  %v1693_v32 = vld [vmem:[%s1880_s12 + $0xe8] ss:$16 sps:$4 sm:$0xff]  }
  0x4e   : > { %1456 = vmatpush3.bf16.msra.mxu0 %v1636_v55  ;;  %v403_v47 = vld [vmem:[#allocation2 + $0x8] sm:$0xff] }
  0x4f   : > { %1520 = vmatpush3.bf16.msra.mxu1 %v1637_v56  ;;  %1457 = vmatprep.subr.bf16.mxu0 %v1638_v57 }
  0x50   : > { %1521 = vmatprep.subr.bf16.mxu1 %v1639_v58 }
  0x52   : > { %1458 = vmatpush3.bf16.msra.mxu0 %v1640_v59 }
  0x53   : > { %1522 = vmatpush3.bf16.msra.mxu1 %v1641_v60  ;;  %1459 = vmatprep.subr.bf16.mxu0 %v1642_v61  ;;  %v404_v60 = vld [vmem:[#allocation2 + $0x10] sm:$0xff] }
  0x54   : > { %1523 = vmatprep.subr.bf16.mxu1 %v1643_v62 }
  0x56   : > { %1460 = vmatpush3.bf16.msra.mxu0 %v1644_v63 }
  0x57   : > { %1524 = vmatpush3.bf16.msra.mxu1 %v1645_v0 }
  0x59   : > { %899 = vmatmul.mubr.bf16.vlgmr.msra.gmra.mrb[0].mxu0 %v1646_v1  ;;  %v405_v1 = vld [vmem:[#allocation2 + $0x18] sm:$0xff] }
  0x5a   : > { %996 = vmatmul.mubr.bf16.vlgmr.msra.gmra.mrb[0].mxu1 %v1649_v3  ;;  %906 = vmatprep.mubr.bf16.mxu0 %v1652_v5 }
  0x5b   : > { %1003 = vmatprep.mubr.bf16.mxu1 %v1654_v6 }
  0x61   : > { %907 = vmatmul.mubr.bf16.gmra.mrb[4].mxu0 %v1656_v7 }
  0x62   : > { %1004 = vmatmul.mubr.bf16.gmra.mrb[4].mxu1 %v1657_v8  ;;  %914 = vmatprep.mubr.bf16.mxu0 %v1658_v9 }
  0x63   : > { %1011 = vmatprep.mubr.bf16.mxu1 %v1660_v10 }
  0x69   : > { %915 = vmatmul.mubr.bf16.gmra.mrb[8].mxu0 %v1662_v11 }
  0x6a   : > { %1012 = vmatmul.mubr.bf16.gmra.mrb[8].mxu1 %v1663_v12  ;;  %922 = vmatprep.mubr.bf16.mxu0 %v1664_v13 }
  0x6b   : > { %1019 = vmatprep.mubr.bf16.mxu1 %v1666_v14  ;;  %v406_v14 = vld [vmem:[#allocation2 + $0x20] sm:$0xff] }
  0x71   : > { %923 = vmatmul.mubr.bf16.gmra.mrb[12].mxu0 %v1668_v15 }
  0x72   : > { %1020 = vmatmul.mubr.bf16.gmra.mrb[12].mxu1 %v1669_v16  ;;  %930 = vmatprep.mubr.bf16.mxu0 %v1670_v17 }
  0x73   : > { %1027 = vmatprep.mubr.bf16.mxu1 %v1672_v18 }
  0x79   : > { %931 = vmatmul.mubr.bf16.gmra.mrb[16].mxu0 %v1674_v19  ;;  %v407_v19 = vld [vmem:[#allocation2 + $0x28] sm:$0xff] }
  0x7a   : > { %1028 = vmatmul.mubr.bf16.gmra.mrb[16].mxu1 %v1675_v20  ;;  %938 = vmatprep.mubr.bf16.mxu0 %v1676_v21 }
  0x7b   : > { %1035 = vmatprep.mubr.bf16.mxu1 %v1678_v22 }
  0x81   : > { %939 = vmatmul.mubr.bf16.gmra.mrb[20].mxu0 %v1680_v23 }
  0x82   : > { %1036 = vmatmul.mubr.bf16.gmra.mrb[20].mxu1 %v1681_v24  ;;  %946 = vmatprep.mubr.bf16.mxu0 %v1682_v25 }
  0x83   : > { %1043 = vmatprep.mubr.bf16.mxu1 %v1684_v26 }
  0x89   : > { %947 = vmatmul.mubr.bf16.gmra.mrb[24].mxu0 %v1686_v27 }
  0x8a   : > { %1044 = vmatmul.mubr.bf16.gmra.mrb[24].mxu1 %v1687_v28  ;;  %954 = vmatprep.mubr.bf16.mxu0 %v1688_v29 }
  0x8b   : > { %1051 = vmatprep.mubr.bf16.mxu1 %v1690_v30 }
  0x91   : > { %955 = vmatmul.mubr.bf16.gmra.mrb[28].mxu0 %v1692_v31 }
  0x92   : > { %1052 = vmatmul.mubr.bf16.gmra.mrb[28].mxu1 %v1693_v32  ;;  %v408_v32 = vld [vmem:[#allocation2 + $0x30] sm:$0xff] }
 0x12c   : > { %v1461_v33 = vpop.f32.mrb[0].mxu0 }
 0x12d   : > { %v1525_v34 = vpop.f32.mrb[0].mxu1  ;;  %v1462_v35 = vpop.f32.mrb[1].mxu0 }
 0x12e   : > { %v1463_v36 = vadd.f32 %v1462_v35, %v1461_v33  ;;  %v1526_v37 = vpop.f32.mrb[1].mxu1  ;;  %v1464_v38 = vpop.f32.mrb[2].mxu0 }
 0x12f   : > { %v1527_v39 = vadd.f32 %v1526_v37, %v1525_v34  ;;  %v1528_v40 = vpop.f32.mrb[2].mxu1  ;;  %v1465_v41 = vpop.f32.mrb[3].mxu0  ;;  %v409_v37 = vld [vmem:[#allocation2 + $0x38] sm:$0xff] }
 0x130   : > { %v1466_v43 = vadd.f32 %v1465_v41, %v1464_v38  ;;  %v1529_v44 = vpop.f32.mrb[3].mxu1 }
 0x131   : > { %v998_v45 = vadd.f32 %v1527_v39, %v1463_v36  ;;  %v1530_v46 = vadd.f32 %v1529_v44, %v1528_v40 }
 0x133   : > { %v1060_v48 = vadd.f32 %v998_v45, %v402_v42  ;;  %v1001_v49 = vadd.f32 %v1530_v46, %v1466_v43 }
 0x134   : > { %v1467_v50 = vpop.f32.mrb[4].mxu0 }
 0x135   : > { %1076 = vst [vmem:[#allocation2] sm:$0xff] %v1060_v48  ;;  %v1061_v51 = vadd.f32 %v1001_v49, %v403_v47  ;;  %v1531_v52 = vpop.f32.mrb[4].mxu1  ;;  %v1468_v53 = vpop.f32.mrb[5].mxu0 }
 0x136   : > { %v1469_v54 = vadd.f32 %v1468_v53, %v1467_v50  ;;  %v1532_v55 = vpop.f32.mrb[5].mxu1  ;;  %v1470_v56 = vpop.f32.mrb[6].mxu0  ;;  %v410_v50 = vld [vmem:[#allocation2 + $0x40] sm:$0xff] }
 0x137   : > { %1077 = vst [vmem:[#allocation2 + $0x8] sm:$0xff] %v1061_v51  ;;  %v1533_v57 = vadd.f32 %v1532_v55, %v1531_v52  ;;  %v1534_v58 = vpop.f32.mrb[6].mxu1  ;;  %v1471_v59 = vpop.f32.mrb[7].mxu0  ;;  %v411_v55 = vld [vmem:[#allocation2 + $0x48] sm:$0xff] }
 0x138   : > { %v1472_v61 = vadd.f32 %v1471_v59, %v1470_v56  ;;  %v1535_v62 = vpop.f32.mrb[7].mxu1 }
 0x139   : > { %v1006_v63 = vadd.f32 %v1533_v57, %v1469_v54  ;;  %v1536_v0 = vadd.f32 %v1535_v62, %v1534_v58 }
 0x13b   : > { %v1062_v2 = vadd.f32 %v1006_v63, %v404_v60  ;;  %v1009_v3 = vadd.f32 %v1536_v0, %v1472_v61 }
 0x13c   : > { %v1473_v4 = vpop.f32.mrb[8].mxu0 }
 0x13d   : > { %1078 = vst [vmem:[#allocation2 + $0x10] sm:$0xff] %v1062_v2  ;;  %v1063_v5 = vadd.f32 %v1009_v3, %v405_v1  ;;  %v1537_v6 = vpop.f32.mrb[8].mxu1  ;;  %v1474_v7 = vpop.f32.mrb[9].mxu0 }
 0x13e   : > { %v1475_v8 = vadd.f32 %v1474_v7, %v1473_v4  ;;  %v1538_v9 = vpop.f32.mrb[9].mxu1  ;;  %v1476_v10 = vpop.f32.mrb[10].mxu0  ;;  %v412_v4 = vld [vmem:[#allocation2 + $0x50] sm:$0xff] }
 0x13f   : > { %1079 = vst [vmem:[#allocation2 + $0x18] sm:$0xff] %v1063_v5  ;;  %v1539_v11 = vadd.f32 %v1538_v9, %v1537_v6  ;;  %v1540_v12 = vpop.f32.mrb[10].mxu1  ;;  %v1477_v13 = vpop.f32.mrb[11].mxu0  ;;  %v413_v9 = vld [vmem:[#allocation2 + $0x58] sm:$0xff] }
 0x140   : > { %v1478_v15 = vadd.f32 %v1477_v13, %v1476_v10  ;;  %v1541_v16 = vpop.f32.mrb[11].mxu1 }
 0x141   : > { %v1014_v17 = vadd.f32 %v1539_v11, %v1475_v8  ;;  %v1542_v18 = vadd.f32 %v1541_v16, %v1540_v12 }
 0x143   : > { %v1064_v20 = vadd.f32 %v1014_v17, %v406_v14  ;;  %v1017_v21 = vadd.f32 %v1542_v18, %v1478_v15 }
 0x144   : > { %v1479_v22 = vpop.f32.mrb[12].mxu0 }
 0x145   : > { %1080 = vst [vmem:[#allocation2 + $0x20] sm:$0xff] %v1064_v20  ;;  %v1065_v23 = vadd.f32 %v1017_v21, %v407_v19  ;;  %v1543_v24 = vpop.f32.mrb[12].mxu1  ;;  %v1480_v25 = vpop.f32.mrb[13].mxu0 }
 0x146   : > { %v1481_v26 = vadd.f32 %v1480_v25, %v1479_v22  ;;  %v1544_v27 = vpop.f32.mrb[13].mxu1  ;;  %v1482_v28 = vpop.f32.mrb[14].mxu0  ;;  %v414_v22 = vld [vmem:[#allocation2 + $0x60] sm:$0xff] }
 0x147   : > { %1081 = vst [vmem:[#allocation2 + $0x28] sm:$0xff] %v1065_v23  ;;  %v1545_v29 = vadd.f32 %v1544_v27, %v1543_v24  ;;  %v1546_v30 = vpop.f32.mrb[14].mxu1  ;;  %v1483_v31 = vpop.f32.mrb[15].mxu0  ;;  %v415_v27 = vld [vmem:[#allocation2 + $0x68] sm:$0xff] }
 0x148   : > { %v1484_v33 = vadd.f32 %v1483_v31, %v1482_v28  ;;  %v1547_v34 = vpop.f32.mrb[15].mxu1 }
 0x149   : > { %v1022_v35 = vadd.f32 %v1545_v29, %v1481_v26  ;;  %v1548_v36 = vadd.f32 %v1547_v34, %v1546_v30 }
 0x14b   : > { %v1066_v38 = vadd.f32 %v1022_v35, %v408_v32  ;;  %v1025_v39 = vadd.f32 %v1548_v36, %v1484_v33 }
 0x14c   : > { %v1485_v40 = vpop.f32.mrb[16].mxu0 }
 0x14d   : > { %1082 = vst [vmem:[#allocation2 + $0x30] sm:$0xff] %v1066_v38  ;;  %v1067_v41 = vadd.f32 %v1025_v39, %v409_v37  ;;  %v1549_v42 = vpop.f32.mrb[16].mxu1  ;;  %v1486_v43 = vpop.f32.mrb[17].mxu0 }
 0x14e   : > { %v1487_v44 = vadd.f32 %v1486_v43, %v1485_v40  ;;  %v1550_v45 = vpop.f32.mrb[17].mxu1  ;;  %v1488_v46 = vpop.f32.mrb[18].mxu0  ;;  %v416_v40 = vld [vmem:[#allocation2 + $0x70] sm:$0xff] }
 0x14f   : > { %1083 = vst [vmem:[#allocation2 + $0x38] sm:$0xff] %v1067_v41  ;;  %v1551_v47 = vadd.f32 %v1550_v45, %v1549_v42  ;;  %v1552_v48 = vpop.f32.mrb[18].mxu1  ;;  %v1489_v49 = vpop.f32.mrb[19].mxu0  ;;  %v417_v45 = vld [vmem:[#allocation2 + $0x78] sm:$0xff] }
 0x150   : > { %v1490_v51 = vadd.f32 %v1489_v49, %v1488_v46  ;;  %v1553_v52 = vpop.f32.mrb[19].mxu1  ;;  %v1096_v49 = vld [vmem:[#allocation2] sm:$0xff] (!%p1437_p11) }
 0x151   : > { %v1030_v53 = vadd.f32 %v1551_v47, %v1487_v44  ;;  %v1554_v54 = vadd.f32 %v1553_v52, %v1552_v48 }
 0x153   : > { %v1068_v56 = vadd.f32 %v1030_v53, %v410_v50  ;;  %v1033_v57 = vadd.f32 %v1554_v54, %v1490_v51  ;;  %v1438_v50 = vld [vmem:[%s2019_s2] ss:$0 sm:$0xff] (!%p1437_p11)  ;;  %v1097_v51 = vld [vmem:[#allocation2 + $0x8] sm:$0xff] (!%p1437_p11)  ;;  %v1098_v54 = vld [vmem:[#allocation2 + $0x10] sm:$0xff] (!%p1437_p11) }
 0x154   : > { %v1491_v58 = vpop.f32.mrb[20].mxu0  ;;  %v1119_v52 = vadd.f32 (!%p1437_p11), %v1438_v50, %v1096_v49  ;;  %v1120_v53 = vadd.f32 (!%p1437_p11), %v1438_v50, %v1097_v51 }
 0x155   : > { %1084 = vst [vmem:[#allocation2 + $0x40] sm:$0xff] %v1068_v56  ;;  %v1069_v59 = vadd.f32 %v1033_v57, %v411_v55  ;;  %v1555_v60 = vpop.f32.mrb[20].mxu1  ;;  %v1492_v61 = vpop.f32.mrb[21].mxu0  ;;  %v1099_v55 = vld [vmem:[#allocation2 + $0x18] sm:$0xff] (!%p1437_p11)  ;;  %v1100_v56 = vld [vmem:[#allocation2 + $0x20] sm:$0xff] (!%p1437_p11)  ;;  %v1121_v57 = vadd.f32 (!%p1437_p11), %v1438_v50, %v1098_v54 }
 0x156   : > { %v1493_v62 = vadd.f32 %v1492_v61, %v1491_v58  ;;  %v1556_v63 = vpop.f32.mrb[21].mxu1  ;;  %v1494_v0 = vpop.f32.mrb[22].mxu0  ;;  %v1122_v58 = vadd.f32 (!%p1437_p11), %v1438_v50, %v1099_v55  ;;  %v1102_v61 = vld [vmem:[#allocation2 + $0x30] sm:$0xff] (!%p1437_p11)  ;;  %1135 = vst [vmem:[%s2020_s3] sm:$0xff] (!%p1437_p11), %v1119_v52  ;;  %1136 = vst [vmem:[%s2020_s3 + $0x8] sm:$0xff] (!%p1437_p11), %v1120_v53 }
 0x157   : > { %1085 = vst [vmem:[#allocation2 + $0x48] sm:$0xff] %v1069_v59  ;;  %v1557_v1 = vadd.f32 %v1556_v63, %v1555_v60  ;;  %v1558_v2 = vpop.f32.mrb[22].mxu1  ;;  %v1495_v3 = vpop.f32.mrb[23].mxu0  ;;  %v1123_v59 = vadd.f32 (!%p1437_p11), %v1438_v50, %v1100_v56  ;;  %v1101_v60 = vld [vmem:[#allocation2 + $0x28] sm:$0xff] (!%p1437_p11)  ;;  %v1151_v63 = vmul.f32 (!%p1437_p11), %v1119_v52, %v1119_v52  ;;  %1137 = vst [vmem:[%s2020_s3 + $0x10] sm:$0xff] (!%p1437_p11), %v1121_v57 }
 0x158   : > { %v1496_v5 = vadd.f32 %v1495_v3, %v1494_v0  ;;  %v1559_v6 = vpop.f32.mrb[23].mxu1  ;;  %v1152_v0 = vmul.f32 (!%p1437_p11), %v1120_v53, %v1120_v53  ;;  %1138 = vst [vmem:[%s2020_s3 + $0x18] sm:$0xff] (!%p1437_p11), %v1122_v58 }
 0x159   : > { %v1038_v7 = vadd.f32 %v1557_v1, %v1493_v62  ;;  %v1560_v8 = vadd.f32 %v1559_v6, %v1558_v2  ;;  %v1103_v62 = vld [vmem:[#allocation2 + $0x38] sm:$0xff] (!%p1437_p11)  ;;  %v1167_v1 = vadd.f32 (!%p1437_p11), %v1120_v53, %v1119_v52  ;;  %v1124_v2 = vadd.f32 (!%p1437_p11), %v1438_v50, %v1101_v60  ;;  %1139 = vst [vmem:[%s2020_s3 + $0x20] sm:$0xff] (!%p1437_p11), %v1123_v59 }
 0x15a   : > { %v1153_v6 = vmul.f32 (!%p1437_p11), %v1121_v57, %v1121_v57 }
 0x15b   : > { %v1070_v10 = vadd.f32 %v1038_v7, %v412_v4  ;;  %v1041_v11 = vadd.f32 %v1560_v8, %v1496_v5  ;;  %v1125_v7 = vadd.f32 (!%p1437_p11), %v1438_v50, %v1102_v61  ;;  %1140 = vst [vmem:[%s2020_s3 + $0x28] sm:$0xff] (!%p1437_p11), %v1124_v2 }
 0x15c   : > { %v1497_v12 = vpop.f32.mrb[24].mxu0  ;;  %v1104_v3 = vld [vmem:[#allocation2 + $0x40] sm:$0xff] (!%p1437_p11) }
 0x15d   : > { %1086 = vst [vmem:[#allocation2 + $0x50] sm:$0xff] %v1070_v10  ;;  %v1071_v13 = vadd.f32 %v1041_v11, %v413_v9  ;;  %v1561_v14 = vpop.f32.mrb[24].mxu1  ;;  %v1498_v15 = vpop.f32.mrb[25].mxu0  ;;  %v1188_v9 = vadd.f32 (!%p1437_p11), %v1152_v0, %v1151_v63  ;;  %v1168_v10 = vadd.f32 (!%p1437_p11), %v1167_v1, %v1121_v57  ;;  %v1154_v11 = vmul.f32 (!%p1437_p11), %v1122_v58, %v1122_v58 }
 0x15e   : > { %v1499_v16 = vadd.f32 %v1498_v15, %v1497_v12  ;;  %v1562_v17 = vpop.f32.mrb[25].mxu1  ;;  %v1500_v18 = vpop.f32.mrb[26].mxu0  ;;  %v1105_v4 = vld [vmem:[#allocation2 + $0x48] sm:$0xff] (!%p1437_p11)  ;;  %v1126_v12 = vadd.f32 (!%p1437_p11), %v1438_v50, %v1103_v62  ;;  %1141 = vst [vmem:[%s2020_s3 + $0x30] sm:$0xff] (!%p1437_p11), %v1125_v7 }
 0x15f   : > { %1087 = vst [vmem:[#allocation2 + $0x58] sm:$0xff] %v1071_v13  ;;  %v1563_v19 = vadd.f32 %v1562_v17, %v1561_v14  ;;  %v1564_v20 = vpop.f32.mrb[26].mxu1  ;;  %v1501_v21 = vpop.f32.mrb[27].mxu0  ;;  %v1127_v14 = vadd.f32 (!%p1437_p11), %v1438_v50, %v1104_v3  ;;  %v1128_v15 = vadd.f32 (!%p1437_p11), %v1438_v50, %v1105_v4 }
 0x160   : > { %v1502_v23 = vadd.f32 %v1501_v21, %v1500_v18  ;;  %v1565_v24 = vpop.f32.mrb[27].mxu1  ;;  %v1189_v18 = vadd.f32 (!%p1437_p11), %v1188_v9, %v1153_v6  ;;  %1142 = vst [vmem:[%s2020_s3 + $0x38] sm:$0xff] (!%p1437_p11), %v1126_v12 }
 0x161   : > { %v1046_v25 = vadd.f32 %v1563_v19, %v1499_v16  ;;  %v1566_v26 = vadd.f32 %v1565_v24, %v1564_v20  ;;  %v1169_v19 = vadd.f32 (!%p1437_p11), %v1168_v10, %v1122_v58  ;;  %v1155_v20 = vmul.f32 (!%p1437_p11), %v1123_v59, %v1123_v59  ;;  %1143 = vst [vmem:[%s2020_s3 + $0x40] sm:$0xff] (!%p1437_p11), %v1127_v14 }
 0x162   : > { %1144 = vst [vmem:[%s2020_s3 + $0x48] sm:$0xff] (!%p1437_p11), %v1128_v15 }
 0x163   : > { %v1072_v28 = vadd.f32 %v1046_v25, %v414_v22  ;;  %v1049_v29 = vadd.f32 %v1566_v26, %v1502_v23  ;;  %v1190_v25 = vadd.f32 (!%p1437_p11), %v1189_v18, %v1154_v11  ;;  %v1170_v26 = vadd.f32 (!%p1437_p11), %v1169_v19, %v1123_v59 }
 0x164   : > { %v1503_v30 = vpop.f32.mrb[28].mxu0  ;;  %v1106_v5 = vld [vmem:[#allocation2 + $0x50] sm:$0xff] (!%p1437_p11) }
 0x165   : > { %1088 = vst [vmem:[#allocation2 + $0x60] sm:$0xff] %v1072_v28  ;;  %v1073_v31 = vadd.f32 %v1049_v29, %v415_v27  ;;  %v1567_v32 = vpop.f32.mrb[28].mxu1  ;;  %v1504_v33 = vpop.f32.mrb[29].mxu0  ;;  %v1129_v16 = vadd.f32 (!%p1437_p11), %v1438_v50, %v1106_v5  ;;  %v1156_v27 = vmul.f32 (!%p1437_p11), %v1124_v2, %v1124_v2 }
 0x166   : > { %v1505_v34 = vadd.f32 %v1504_v33, %v1503_v30  ;;  %v1568_v35 = vpop.f32.mrb[29].mxu1  ;;  %v1506_v36 = vpop.f32.mrb[30].mxu0  ;;  %v1107_v8 = vld [vmem:[#allocation2 + $0x58] sm:$0xff] (!%p1437_p11)  ;;  %v1157_v33 = vmul.f32 (!%p1437_p11), %v1125_v7, %v1125_v7 }
 0x167   : > { %1089 = vst [vmem:[#allocation2 + $0x68] sm:$0xff] %v1073_v31  ;;  %v1569_v37 = vadd.f32 %v1568_v35, %v1567_v32  ;;  %v1570_v38 = vpop.f32.mrb[30].mxu1  ;;  %v1507_v39 = vpop.f32.mrb[31].mxu0  ;;  %v1130_v21 = vadd.f32 (!%p1437_p11), %v1438_v50, %v1107_v8  ;;  %1145 = vst [vmem:[%s2020_s3 + $0x50] sm:$0xff] (!%p1437_p11), %v1129_v16  ;;  %v1191_v31 = vadd.f32 (!%p1437_p11), %v1190_v25, %v1155_v20 }
 0x168   : > { %v1508_v41 = vadd.f32 %v1507_v39, %v1506_v36  ;;  %v1571_v42 = vpop.f32.mrb[31].mxu1  ;;  %v1171_v32 = vadd.f32 (!%p1437_p11), %v1170_v26, %v1124_v2  ;;  %v1158_v36 = vmul.f32 (!%p1437_p11), %v1126_v12, %v1126_v12  ;;  %v1159_v39 = vmul.f32 (!%p1437_p11), %v1127_v14, %v1127_v14 }
 0x169   : > { %v1054_v43 = vadd.f32 %v1569_v37, %v1505_v34  ;;  %v1572_v44 = vadd.f32 %v1571_v42, %v1570_v38  ;;  %1095 = sbr.rel (%p1437_p11) target bundleno = 399 (0x18f), region = 63  ;;  %1146 = vst [vmem:[%s2020_s3 + $0x58] sm:$0xff] (!%p1437_p11), %v1130_v21  ;;  %v1192_v34 = vadd.f32 (!%p1437_p11), %v1191_v31, %v1156_v27  ;;  %v1160_v42 = vmul.f32 (!%p1437_p11), %v1128_v15, %v1128_v15 }
 0x16a   : > { %v1172_v35 = vadd.f32 (!%p1437_p11), %v1171_v32, %v1125_v7 }
 0x16b   : > { %v1074_v46 = vadd.f32 %v1054_v43, %v416_v40  ;;  %v1057_v47 = vadd.f32 %v1572_v44, %v1508_v41  ;;  %v1193_v37 = vadd.f32 (!%p1437_p11), %v1192_v34, %v1157_v33 }
 0x16c   : > { %v1108_v13 = vld [vmem:[#allocation2 + $0x60] sm:$0xff] (!%p1437_p11)  ;;  %v1173_v38 = vadd.f32 (!%p1437_p11), %v1172_v35, %v1126_v12 }
 0x16d   : > { %1090 = vst [vmem:[#allocation2 + $0x70] sm:$0xff] %v1074_v46  ;;  %v1075_v48 = vadd.f32 %v1057_v47, %v417_v45  ;;  %v1131_v24 = vadd.f32 (!%p1437_p11), %v1438_v50, %v1108_v13  ;;  %v1194_v40 = vadd.f32 (!%p1437_p11), %v1193_v37, %v1158_v36  ;;  %v1161_v45 = vmul.f32 (!%p1437_p11), %v1129_v16, %v1129_v16 }
 0x16e   : > { %v1109_v17 = vld [vmem:[#allocation2 + $0x68] sm:$0xff] (!%p1437_p11)  ;;  %v1174_v41 = vadd.f32 (!%p1437_p11), %v1173_v38, %v1127_v14 }
 0x16f   : > { %1091 = vst [vmem:[#allocation2 + $0x78] sm:$0xff] %v1075_v48  ;;  %v1132_v28 = vadd.f32 (!%p1437_p11), %v1438_v50, %v1109_v17  ;;  %1147 = vst [vmem:[%s2020_s3 + $0x60] sm:$0xff] (!%p1437_p11), %v1131_v24  ;;  %v1195_v43 = vadd.f32 (!%p1437_p11), %v1194_v40, %v1159_v39  ;;  %v1162_v48 = vmul.f32 (!%p1437_p11), %v1130_v21, %v1130_v21 }
 0x170   : > { %v1175_v44 = vadd.f32 %v1174_v41, %v1128_v15  ;;  %v1163_v51 = vmul.f32 %v1131_v24, %v1131_v24 }
 0x171   : > { %1148 = vst [vmem:[%s2020_s3 + $0x68] sm:$0xff] %v1132_v28  ;;  %v1196_v46 = vadd.f32 %v1195_v43, %v1160_v42  ;;  %v1164_v54 = vmul.f32 %v1132_v28, %v1132_v28 }
 0x172   : > { %v1176_v47 = vadd.f32 %v1175_v44, %v1129_v16 }
 0x173   : > { %v1197_v49 = vadd.f32 %v1196_v46, %v1161_v45 }
 0x174   : > { %v1110_v22 = vld [vmem:[#allocation2 + $0x70] sm:$0xff] }
 0x175   : > { %v1133_v29 = vadd.f32 %v1438_v50, %v1110_v22  ;;  %v1198_v52 = vadd.f32 %v1197_v49, %v1162_v48 }
 0x176   : > { %v1111_v23 = vld [vmem:[#allocation2 + $0x78] sm:$0xff] }
 0x177   : > { %v1134_v30 = vadd.f32 %v1438_v50, %v1111_v23  ;;  %1149 = vst [vmem:[%s2020_s3 + $0x70] sm:$0xff] %v1133_v29  ;;  %v1177_v50 = vadd.f32 %v1176_v47, %v1130_v21  ;;  %v1199_v55 = vadd.f32 %v1198_v52, %v1163_v51  ;;  %v1165_v57 = vmul.f32 %v1133_v29, %v1133_v29 }
 0x179   : > { %1150 = vst [vmem:[%s2020_s3 + $0x78] sm:$0xff] %v1134_v30  ;;  %v1178_v53 = vadd.f32 %v1177_v50, %v1131_v24  ;;  %v1200_v58 = vadd.f32 %v1199_v55, %v1164_v54  ;;  %v1166_v60 = vmul.f32 %v1134_v30, %v1134_v30 }
 0x17b   : > { %v1179_v56 = vadd.f32 %v1178_v53, %v1132_v28  ;;  %v1201_v61 = vadd.f32 %v1200_v58, %v1165_v57 }
 0x17d   : > { %v1180_v59 = vadd.f32 %v1179_v56, %v1133_v29  ;;  %v1202_v0 = vadd.f32 %v1201_v61, %v1166_v60 }
 0x17f   : > { %v1181_v62 = vadd.f32 %v1180_v59, %v1134_v30  ;;  %v1203_v2 = vrot.slane %v1202_v0, 4 }
 0x181   : > { %v1182_v63 = vrot.slane %v1181_v62, 4  ;;  %v1204_v4 = vadd.f32 %v1203_v2, %v1202_v0 }
 0x183   : > { %v1183_v1 = vadd.f32 %v1182_v63, %v1181_v62  ;;  %v1205_v6 = vrot.slane %v1204_v4, 2 }
 0x185   : > { %v1184_v3 = vrot.slane %v1183_v1, 2  ;;  %v1206_v8 = vadd.f32 %v1205_v6, %v1204_v4 }
 0x187   : > { %v1185_v5 = vadd.f32 %v1184_v3, %v1183_v1  ;;  %v1207_v10 = vrot.slane %v1206_v8, 1 }
 0x189   : > { %v1186_v7 = vrot.slane %v1185_v5, 1  ;;  %v1208_v11 = vadd.f32 %v1207_v10, %v1206_v8 }
 0x18b   : > { %v1187_v9 = vadd.f32 %v1186_v7, %v1185_v5 }
 0x18d   : > { %v1210_v12 = vsel %vm1209_vm0, %v1187_v9, %v1208_v11 }
 0x18e   : > { %1211 = vst [vmem:[%s2021_s4] sm:$0x3] %v1210_v12 }
 0x18f PF: > { %s15_s19 = sadd.s32 1, %s1732_s19   ;;  %s2022_s15 = smov %s1720_s16 }
 0x190   : > { %p12_p12 = scmp.ge.s32.totalorder %s15_s19, 4   ;;  %s2023_s16 = smov %s1795_s23 }
 0x191   : > { %s2024_s17 = smov %s1728_s18  ;;  %s2025_s18 = smov %s2027_s20 }
 0x192   :  { %14 = sbr.rel (!%p12_p12) target bundleno = 3 (0x3), region = 116 }

// kernel: discriminator_forward.10
= control target key start
LH: loop header
LB: loop body
LE: loop exit
PB: predicated region body
PF: predicated region fallthrough
CT: control target
= control target key end

     0   :  { %s305_s0 = inlined_call_operand.vmem [shape: f32[128,128], index: 0, kind: input, shape index: {}]   ;;  %s306_s1 = inlined_call_operand.vmem [shape: f32[1,128], index: 1, kind: input, shape index: {}]   ;;  %s307_s2 = inlined_call_operand.vmem [shape: f32[1,128], index: 2, kind: input, shape index: {}]   ;;  %s308_s3 = inlined_call_operand.vmem [shape: f32[128,128], index: 3, kind: output, shape index: {}]  }
   0x1   :  { %v14_v0 = vld [vmem:[%s305_s0] sm:$0xff]  ;;  %v15_v4 = vld [vmem:[%s305_s0 + $0x8] sm:$0xff]  ;;  %v16_v5 = vld [vmem:[%s305_s0 + $0x10] sm:$0xff] }
   0x2   :  { %v172_v1 = vld [vmem:[%s306_s1] ss:$0 sm:$0xff]  ;;  %v17_v6 = vld [vmem:[%s305_s0 + $0x18] sm:$0xff]  ;;  %v19_v11 = vld [vmem:[%s305_s0 + $0x28] sm:$0xff] }
   0x3   :  { %v177_v2 = vld [vmem:[%s307_s2] ss:$0 sm:$0xff]  ;;  %v37_v3 = vmul.f32 %v172_v1, %v14_v0  ;;  %v38_v7 = vmul.f32 %v172_v1, %v15_v4  ;;  %v39_v8 = vmul.f32 %v172_v1, %v16_v5  ;;  %v40_v9 = vmul.f32 %v172_v1, %v17_v6  ;;  %v20_v12 = vld [vmem:[%s305_s0 + $0x30] sm:$0xff]  ;;  %v21_v17 = vld [vmem:[%s305_s0 + $0x38] sm:$0xff] }
   0x4   :  { %v18_v10 = vld [vmem:[%s305_s0 + $0x20] sm:$0xff]  ;;  %v42_v15 = vmul.f32 %v172_v1, %v19_v11  ;;  %v43_v16 = vmul.f32 %v172_v1, %v20_v12  ;;  %v44_v21 = vmul.f32 %v172_v1, %v21_v17  ;;  %v23_v30 = vld [vmem:[%s305_s0 + $0x48] sm:$0xff]  ;;  %v24_v31 = vld [vmem:[%s305_s0 + $0x50] sm:$0xff] }
   0x5   :  { %v60_v13 = vadd.f32 %v177_v2, %v37_v3  ;;  %v41_v14 = vmul.f32 %v172_v1, %v18_v10  ;;  %v61_v18 = vadd.f32 %v177_v2, %v38_v7  ;;  %v62_v19 = vadd.f32 %v177_v2, %v39_v8  ;;  %v22_v25 = vld [vmem:[%s305_s0 + $0x40] sm:$0xff]  ;;  %v25_v43 = vld [vmem:[%s305_s0 + $0x58] sm:$0xff]  ;;  %v27_v45 = vld [vmem:[%s305_s0 + $0x68] sm:$0xff] }
   0x6   :  { %v63_v20 = vadd.f32 %v177_v2, %v40_v9  ;;  %v65_v24 = vadd.f32 %v177_v2, %v42_v15  ;;  %v66_v37 = vadd.f32 %v177_v2, %v43_v16  ;;  %v67_v38 = vadd.f32 %v177_v2, %v44_v21  ;;  %v26_v44 = vld [vmem:[%s305_s0 + $0x60] sm:$0xff]  ;;  %v28_v56 = vld [vmem:[%s305_s0 + $0x70] sm:$0xff]  ;;  %v29_v4 = vld [vmem:[%s305_s0 + $0x78] sm:$0xff] }
   0x7   :  { %vm76_vm0 = vcmp.gt.f32.partialorder %v60_v13, 0.0  ;;  %v92_v22 = vmul.f32 0.2, %v60_v13  ;;  %v64_v23 = vadd.f32 %v177_v2, %v41_v14  ;;  %vm77_vm1 = vcmp.gt.f32.partialorder %v61_v18, 0.0 }
   0x8   :  { %v93_v26 = vmul.f32 0.2, %v61_v18  ;;  %vm78_vm2 = vcmp.gt.f32.partialorder %v62_v19, 0.0  ;;  %v94_v27 = vmul.f32 0.2, %v62_v19  ;;  %vm79_vm3 = vcmp.gt.f32.partialorder %v63_v20, 0.0 }
   0x9   :  { %v108_v28 = vsel %vm76_vm0, %v60_v13, %v92_v22  ;;  %v95_v29 = vmul.f32 0.2, %v63_v20  ;;  %vm80_vm4 = vcmp.gt.f32.partialorder %v64_v23, 0.0  ;;  %v96_v34 = vmul.f32 0.2, %v64_v23 }
   0xa   :  { %124 = vst [vmem:[%s308_s3] sm:$0xff] %v108_v28  ;;  %v109_v32 = vsel %vm77_vm1, %v61_v18, %v93_v26  ;;  %v110_v33 = vsel %vm78_vm2, %v62_v19, %v94_v27  ;;  %vm81_vm5 = vcmp.gt.f32.partialorder %v65_v24, 0.0  ;;  %v97_v36 = vmul.f32 0.2, %v65_v24 }
   0xb   :  { %125 = vst [vmem:[%s308_s3 + $0x8] sm:$0xff] %v109_v32  ;;  %126 = vst [vmem:[%s308_s3 + $0x10] sm:$0xff] %v110_v33  ;;  %v111_v35 = vsel %vm79_vm3, %v63_v20, %v95_v29  ;;  %v112_v39 = vsel %vm80_vm4, %v64_v23, %v96_v34  ;;  %v45_v40 = vmul.f32 %v172_v1, %v22_v25  ;;  %vm82_vm6 = vcmp.gt.f32.partialorder %v66_v37, 0.0 }
   0xc   :  { %127 = vst [vmem:[%s308_s3 + $0x18] sm:$0xff] %v111_v35  ;;  %v46_v41 = vmul.f32 %v172_v1, %v23_v30  ;;  %v47_v42 = vmul.f32 %v172_v1, %v24_v31  ;;  %128 = vst [vmem:[%s308_s3 + $0x20] sm:$0xff] %v112_v39  ;;  %v113_v46 = vsel %vm81_vm5, %v65_v24, %v97_v36  ;;  %v98_v47 = vmul.f32 0.2, %v66_v37 }
   0xd   :  { %vm83_vm7 = vcmp.gt.f32.partialorder %v67_v38, 0.0  ;;  %129 = vst [vmem:[%s308_s3 + $0x28] sm:$0xff] %v113_v46  ;;  %v99_v48 = vmul.f32 0.2, %v67_v38  ;;  %v68_v49 = vadd.f32 %v177_v2, %v45_v40  ;;  %v48_v53 = vmul.f32 %v172_v1, %v25_v43 }
   0xe   :  { %v69_v50 = vadd.f32 %v177_v2, %v46_v41  ;;  %v70_v51 = vadd.f32 %v177_v2, %v47_v42  ;;  %v114_v52 = vsel %vm82_vm6, %v66_v37, %v98_v47  ;;  %v49_v54 = vmul.f32 %v172_v1, %v26_v44 }
   0xf   :  { %v50_v55 = vmul.f32 %v172_v1, %v27_v45  ;;  %130 = vst [vmem:[%s308_s3 + $0x30] sm:$0xff] %v114_v52  ;;  %v115_v57 = vsel %vm83_vm7, %v67_v38, %v99_v48  ;;  %vm84_vm8 = vcmp.gt.f32.partialorder %v68_v49, 0.0  ;;  %v100_v58 = vmul.f32 0.2, %v68_v49 }
  0x10   :  { %vm85_vm9 = vcmp.gt.f32.partialorder %v69_v50, 0.0  ;;  %131 = vst [vmem:[%s308_s3 + $0x38] sm:$0xff] %v115_v57  ;;  %v101_v59 = vmul.f32 0.2, %v69_v50  ;;  %vm86_vm10 = vcmp.gt.f32.partialorder %v70_v51, 0.0  ;;  %v71_v61 = vadd.f32 %v177_v2, %v48_v53 }
  0x11   :  { %v102_v60 = vmul.f32 0.2, %v70_v51  ;;  %v116_v62 = vsel %vm84_vm8, %v68_v49, %v100_v58  ;;  %v72_v63 = vadd.f32 %v177_v2, %v49_v54  ;;  %v73_v0 = vadd.f32 %v177_v2, %v50_v55 }
  0x12   :  { %v51_v3 = vmul.f32 %v172_v1, %v28_v56  ;;  %132 = vst [vmem:[%s308_s3 + $0x40] sm:$0xff] %v116_v62  ;;  %v117_v5 = vsel %vm85_vm9, %v69_v50, %v101_v59  ;;  %vm87_vm11 = vcmp.gt.f32.partialorder %v71_v61, 0.0  ;;  %v103_v7 = vmul.f32 0.2, %v71_v61 }
  0x13   :  { %v118_v6 = vsel %vm86_vm10, %v70_v51, %v102_v60  ;;  %133 = vst [vmem:[%s308_s3 + $0x48] sm:$0xff] %v117_v5  ;;  %vm88_vm12 = vcmp.gt.f32.partialorder %v72_v63, 0.0  ;;  %v104_v8 = vmul.f32 0.2, %v72_v63  ;;  %vm89_vm13 = vcmp.gt.f32.partialorder %v73_v0, 0.0 }
  0x14   :  { %134 = vst [vmem:[%s308_s3 + $0x50] sm:$0xff] %v118_v6  ;;  %v105_v9 = vmul.f32 0.2, %v73_v0  ;;  %v119_v10 = vsel %vm87_vm11, %v71_v61, %v103_v7  ;;  %v74_v11 = vadd.f32 %v177_v2, %v51_v3  ;;  %v52_v12 = vmul.f32 %v172_v1, %v29_v4 }
  0x15   :  { %135 = vst [vmem:[%s308_s3 + $0x58] sm:$0xff] %v119_v10  ;;  %v120_v13 = vsel %vm88_vm12, %v72_v63, %v104_v8 }
  0x16   :  { %v121_v14 = vsel %vm89_vm13, %v73_v0, %v105_v9  ;;  %136 = vst [vmem:[%s308_s3 + $0x60] sm:$0xff] %v120_v13  ;;  %vm90_vm14 = vcmp.gt.f32.partialorder %v74_v11, 0.0  ;;  %v106_v15 = vmul.f32 0.2, %v74_v11  ;;  %v75_v16 = vadd.f32 %v177_v2, %v52_v12 }
  0x17   :  { %137 = vst [vmem:[%s308_s3 + $0x68] sm:$0xff] %v121_v14 }
  0x18   :  { %v122_v17 = vsel %vm90_vm14, %v74_v11, %v106_v15  ;;  %vm91_vm15 = vcmp.gt.f32.partialorder %v75_v16, 0.0  ;;  %v107_v1 = vmul.f32 0.2, %v75_v16 }
  0x19   :  { %138 = vst [vmem:[%s308_s3 + $0x70] sm:$0xff] %v122_v17 }
  0x1a   :  { %v123_v18 = vsel %vm91_vm15, %v75_v16, %v107_v1 }
  0x1b   :  { %139 = vst [vmem:[%s308_s3 + $0x78] sm:$0xff] %v123_v18 }

// kernel: discriminator_forward.12
= control target key start
LH: loop header
LB: loop body
LE: loop exit
PB: predicated region body
PF: predicated region fallthrough
CT: control target
= control target key end

     0   :  { %v24_v0 = vlaneseq  ;;  %s172_s1 = inlined_call_operand.vmem [shape: f32[1,256], index: 1, kind: input, shape index: {}]   ;;  %s173_s2 = inlined_call_operand.vmem [shape: f32[1,256], index: 2, kind: input, shape index: {}]   ;;  %s174_s0 = inlined_call_operand.vmem [shape: f32[32,256], index: 0, kind: input, shape index: {}]   ;;  %s175_s3 = inlined_call_operand.vmem [shape: f32[32,256], index: 3, kind: output, shape index: {}]  }
   0x1   :  { %v22_v2 = vld [vmem:[%s172_s1] sm:$0x3]  ;;  %v15_v6 = vld [vmem:[%s174_s0 + $0x8] sm:$0xff]  ;;  %v16_v8 = vld [vmem:[%s174_s0 + $0x10] sm:$0xff] }
   0x2   :  { %v25_v1 = vshrl.u32 %v24_v0, 7  ;;  %v42_v3 = vld [vmem:[%s173_s2] sm:$0x3]  ;;  %v17_v9 = vld [vmem:[%s174_s0 + $0x18] sm:$0xff]  ;;  %v19_v15 = vld [vmem:[%s174_s0 + $0x28] sm:$0xff] }
   0x3   :  { %v14_v4 = vld [vmem:[%s174_s0] sm:$0xff]  ;;  %v20_v16 = vld [vmem:[%s174_s0 + $0x30] sm:$0xff]  ;;  %v21_v17 = vld [vmem:[%s174_s0 + $0x38] sm:$0xff] }
   0x4   :  { %v26_v5 = vsub.s32 0, %v25_v1  ;;  %v30_v7 = vsub.s32 1, %v25_v1  ;;  %v18_v10 = vld [vmem:[%s174_s0 + $0x20] sm:$0xff] }
   0x6   :  { %v27_v11 = vrot.slane %v22_v2, %v26_v5  ;;  %v47_v12 = vrot.slane %v42_v3, %v26_v5  ;;  %v31_v13 = vrot.slane %v22_v2, %v30_v7  ;;  %v51_v14 = vrot.slane %v42_v3, %v30_v7 }
   0x8   :  { %v34_v18 = vmul.f32 %v27_v11, %v14_v4  ;;  %v35_v19 = vmul.f32 %v31_v13, %v15_v6  ;;  %v36_v20 = vmul.f32 %v27_v11, %v16_v8  ;;  %v37_v21 = vmul.f32 %v31_v13, %v17_v9 }
   0x9   :  { %v38_v22 = vmul.f32 %v27_v11, %v18_v10  ;;  %v39_v23 = vmul.f32 %v31_v13, %v19_v15  ;;  %v40_v24 = vmul.f32 %v27_v11, %v20_v16  ;;  %v41_v25 = vmul.f32 %v31_v13, %v21_v17 }
   0xa   :  { %v54_v26 = vadd.f32 %v47_v12, %v34_v18  ;;  %v55_v27 = vadd.f32 %v51_v14, %v35_v19  ;;  %v56_v28 = vadd.f32 %v47_v12, %v36_v20  ;;  %v57_v29 = vadd.f32 %v51_v14, %v37_v21 }
   0xb   :  { %v58_v30 = vadd.f32 %v47_v12, %v38_v22  ;;  %v59_v31 = vadd.f32 %v51_v14, %v39_v23  ;;  %v60_v32 = vadd.f32 %v47_v12, %v40_v24  ;;  %v61_v33 = vadd.f32 %v51_v14, %v41_v25 }
   0xc   :  { %vm62_vm0 = vcmp.gt.f32.partialorder %v54_v26, 0.0  ;;  %v70_v34 = vmul.f32 0.2, %v54_v26  ;;  %vm63_vm1 = vcmp.gt.f32.partialorder %v55_v27, 0.0  ;;  %v71_v35 = vmul.f32 0.2, %v55_v27 }
   0xd   :  { %vm64_vm2 = vcmp.gt.f32.partialorder %v56_v28, 0.0  ;;  %v72_v36 = vmul.f32 0.2, %v56_v28  ;;  %vm65_vm3 = vcmp.gt.f32.partialorder %v57_v29, 0.0  ;;  %v73_v37 = vmul.f32 0.2, %v57_v29 }
   0xe   :  { %v78_v38 = vsel %vm62_vm0, %v54_v26, %v70_v34  ;;  %v79_v39 = vsel %vm63_vm1, %v55_v27, %v71_v35  ;;  %vm66_vm4 = vcmp.gt.f32.partialorder %v58_v30, 0.0  ;;  %v74_v40 = vmul.f32 0.2, %v58_v30 }
   0xf   :  { %86 = vst [vmem:[%s175_s3] sm:$0xff] %v78_v38  ;;  %87 = vst [vmem:[%s175_s3 + $0x8] sm:$0xff] %v79_v39  ;;  %v80_v41 = vsel %vm64_vm2, %v56_v28, %v72_v36  ;;  %v81_v42 = vsel %vm65_vm3, %v57_v29, %v73_v37  ;;  %vm67_vm5 = vcmp.gt.f32.partialorder %v59_v31, 0.0  ;;  %v75_v43 = vmul.f32 0.2, %v59_v31 }
  0x10   :  { %88 = vst [vmem:[%s175_s3 + $0x10] sm:$0xff] %v80_v41  ;;  %89 = vst [vmem:[%s175_s3 + $0x18] sm:$0xff] %v81_v42  ;;  %v82_v44 = vsel %vm66_vm4, %v58_v30, %v74_v40  ;;  %vm68_vm6 = vcmp.gt.f32.partialorder %v60_v32, 0.0  ;;  %v76_v45 = vmul.f32 0.2, %v60_v32  ;;  %vm69_vm7 = vcmp.gt.f32.partialorder %v61_v33, 0.0 }
  0x11   :  { %90 = vst [vmem:[%s175_s3 + $0x20] sm:$0xff] %v82_v44  ;;  %v83_v46 = vsel %vm67_vm5, %v59_v31, %v75_v43  ;;  %v77_v47 = vmul.f32 0.2, %v61_v33 }
  0x12   :  { %91 = vst [vmem:[%s175_s3 + $0x28] sm:$0xff] %v83_v46  ;;  %v84_v48 = vsel %vm68_vm6, %v60_v32, %v76_v45 }
  0x13   :  { %92 = vst [vmem:[%s175_s3 + $0x30] sm:$0xff] %v84_v48  ;;  %v85_v49 = vsel %vm69_vm7, %v61_v33, %v77_v47 }
  0x14   :  { %93 = vst [vmem:[%s175_s3 + $0x38] sm:$0xff] %v85_v49 }

// kernel: discriminator_forward.11
= control target key start
LH: loop header
LB: loop body
LE: loop exit
PB: predicated region body
PF: predicated region fallthrough
CT: control target
= control target key end

     0   :  { %s1517_s15 = smov 0   ;;  %s1519_s16 = smov 0   ;;  %s1690_s0 = inlined_call_operand.vmem [shape: bf16[32,2048], index: 0, kind: input, shape index: {}]   ;;  %s1691_s1 = inlined_call_operand.vmem [shape: bf16[2048,256], index: 1, kind: input, shape index: {}]   ;;  %s1692_s2 = inlined_call_operand.vmem [shape: f32[1,256], index: 2, kind: input, shape index: {}]   ;;  %s1693_s3 = inlined_call_operand.vmem [shape: f32[32,256], index: 3, kind: output, shape index: {0}]   ;;  %s1694_s4 = inlined_call_operand.vmem [shape: f32[1,2,256], index: 4, kind: output, shape index: {1}]  }
   0x1   :  { %s1521_s17 = smov 0   ;;  %s1523_s18 = smov 0  }
   0x2   :  { %s1525_s19 = smov 0  }
   0x3 LB: > { %s27_s20 = sadd.s32 1, %s1485_s18  ;;  %p50_p1 = scmp.ne.s32.totalorder %s1477_s16, %s1473_s15  ;;  %s1489_s19 = sphi %s1525_s19, %s15_s19   ;;  %s1485_s18 = sphi %s1523_s18, %s1698_s18   ;;  %s1481_s17 = sphi %s1521_s17, %s1697_s17   ;;  %s1477_s16 = sphi %s1519_s16, %s1696_s16   ;;  %s1473_s15 = sphi %s1517_s15, %s1695_s15  }
   0x4   : > { %p28_p0 = scmp.ge.s32.totalorder %s27_s20, 4  ;;  %p51_p2 = scmp.eq.s32.totalorder %s1489_s19, 0 }
   0x5   : > { %s43_s22 = sadd.s32 1, %s1477_s16  ;;  %p1202_p5 = scmp.ge.s32.totalorder %s1489_s19, 4 }
   0x6   : > { %s1700_s20 = smov (%p28_p0, %s27_s20), 0  ;;  %p52_p3 = por %p51_p2, %p50_p1 }
   0x7   : > { %s39_s21 = ssub.s32 %s1485_s18, %s1700_s20  ;;  %194 = sbr.rel (%p1202_p5) target bundleno = 22 (0x16), region = 20 }
   0x8   : > { %p41_p4 = scmp.eq.s32.totalorder %s39_s21, 0 }
   0xa   : > { %s1552_s23 = scalar_select %p41_p4, %s1477_s16, %s43_s22  }
   0xe   : > { %197 = sbr.rel (!%p52_p3) target bundleno = 22 (0x16), region = 24  ;;  %s199_s24 = sand.u32 (%p52_p3), 1, %s1477_s16  }
   0xf   : > { %s1292_s25 = sshll.u32 (%p52_p3), %s1485_s18, 4  ;;  %s1203_s26 = sshll.u32 (%p52_p3), %s199_s24, 6 }
  0x10   : > { %s207_s29 = scalar_lea.vmem (%p52_p3), %s1690_s0, %s1292_s25  ;;  %s201_s30 = scalar_lea.vmem (%p52_p3), [#allocation3], %s1203_s26 }
  0x11   : > { %v220_v0 = vld [vmem:[%s207_s29] sm:$0xff] (%p52_p3)  ;;  %v222_v1 = vld [vmem:[%s207_s29 + $0x8] sm:$0xff] (%p52_p3) }
  0x12   : > { %v224_v2 = vld [vmem:[%s207_s29 + $0x40] sm:$0xff] (%p52_p3)  ;;  %221 = vst [vmem:[%s201_s30] sm:$0xff] (%p52_p3), %v220_v0  ;;  %223 = vst [vmem:[%s201_s30 + $0x8] sm:$0xff] (%p52_p3), %v222_v1  ;;  %v226_v3 = vld [vmem:[%s207_s29 + $0x48] sm:$0xff] (%p52_p3) }
  0x13   : > { %225 = vst [vmem:[%s201_s30 + $0x10] sm:$0xff] (%p52_p3), %v224_v2  ;;  %v228_v4 = vld [vmem:[%s207_s29 + $0x80] sm:$0xff] (%p52_p3)  ;;  %v230_v5 = vld [vmem:[%s207_s29 + $0x88] sm:$0xff] (%p52_p3)  ;;  %227 = vst [vmem:[%s201_s30 + $0x18] sm:$0xff] (%p52_p3), %v226_v3 }
  0x14   : > { %229 = vst [vmem:[%s201_s30 + $0x20] sm:$0xff] (%p52_p3), %v228_v4  ;;  %231 = vst [vmem:[%s201_s30 + $0x28] sm:$0xff] (%p52_p3), %v230_v5  ;;  %v232_v6 = vld [vmem:[%s207_s29 + $0xc0] sm:$0xff] (%p52_p3)  ;;  %v234_v7 = vld [vmem:[%s207_s29 + $0xc8] sm:$0xff] (%p52_p3) }
  0x15   : > { %233 = vst [vmem:[%s201_s30 + $0x30] sm:$0xff] %v232_v6  ;;  %235 = vst [vmem:[%s201_s30 + $0x38] sm:$0xff] %v234_v7 }
  0x16 PF: > { %p1206_p6 = scmp.ge.s32.totalorder %s1489_s19, 1  ;;  %p255_p7 = scmp.lt.s32.totalorder %s1489_s19, 5 }
  0x18   : > { %p256_p8 = pnand %p1206_p6, %p255_p7 }
  0x19   : > { %s262_s5 = sand.u32 (!%p256_p8), 1, %s1473_s15   ;;  %s1208_s6 = sshll.u32 (!%p256_p8), %s1481_s17, 6 }
  0x1a   : > { %259 = sbr.rel (%p256_p8) target bundleno = 363 (0x16b), region = 51  ;;  %s1207_s7 = sshll.u32 (!%p256_p8), %s262_s5, 6 }
  0x1b   : > { %p319_p9 = scmp.lt.s32.totalorder (!%p256_p8), %s1208_s6, 255  ;;  %s1569_s12 = scalar_lea.vmem (!%p256_p8), [#allocation3], %s1207_s7 }
  0x1c   : > { %p1211_p10 = scmp.ne.s32.totalorder (!%p256_p8), %s1481_s17, 0 }
  0x21   : > { %s1702_s6 = smov (!%p319_p9, %s1208_s6), 255  ;;  %359 = sbr.rel (%p1211_p10) target bundleno = 40 (0x28), region = 59 }
  0x22   : > { %s1293_s8 = sshll.u32 %s1702_s6, 3  ;;  %v1491_v8 = vmov (!%p1211_p10), 0.0  }
  0x23   : > { %s1567_s11 = scalar_lea.vmem %s1691_s1, %s1293_s8  ;;  %360 = vst [vmem:[#allocation2] sm:$0xff] (!%p1211_p10), %v1491_v8  ;;  %361 = vst [vmem:[#allocation2 + $0x8] sm:$0xff] (!%p1211_p10), %v1491_v8 }
  0x24   : > { %362 = vst [vmem:[#allocation2 + $0x10] sm:$0xff] (!%p1211_p10), %v1491_v8  ;;  %363 = vst [vmem:[#allocation2 + $0x18] sm:$0xff] (!%p1211_p10), %v1491_v8 }
  0x25   : > { %364 = vst [vmem:[#allocation2 + $0x20] sm:$0xff] (!%p1211_p10), %v1491_v8  ;;  %365 = vst [vmem:[#allocation2 + $0x28] sm:$0xff] (!%p1211_p10), %v1491_v8 }
  0x26   : > { %366 = vst [vmem:[#allocation2 + $0x30] sm:$0xff] (!%p1211_p10), %v1491_v8  ;;  %367 = vst [vmem:[#allocation2 + $0x38] sm:$0xff] (!%p1211_p10), %v1491_v8 }
  0x28 PF: > { %v1343_v9 = vld [vmem:[%s1567_s11 + $0x4] ss:$8 sps:$4 sm:$0xff]   ;;  %v1347_v11 = vld [vmem:[%s1567_s11] ss:$8 sps:$4 sm:$0xff]   ;;  %v1349_v13 = vld [vmem:[%s1567_s11 + $0x14] ss:$8 sps:$4 sm:$0xff]  }
  0x29   : > { %v1345_v10 = vld [vmem:[%s1567_s11 + $0x104] ss:$8 sps:$4 sm:$0xff]   ;;  %808 = vmatprep.subr.bf16.mxu1 %v1343_v9  ;;  %v1348_v12 = vld [vmem:[%s1567_s11 + $0x100] ss:$8 sps:$4 sm:$0xff]   ;;  %v1351_v14 = vld [vmem:[%s1567_s11 + $0x114] ss:$8 sps:$4 sm:$0xff]  }
  0x2a   : > { %861 = vmatprep.subr.bf16.mxu0 %v1345_v10  ;;  %809 = vmatpush1.bf16.msra.mxu1 %v1347_v11  ;;  %v1353_v15 = vld [vmem:[%s1567_s11 + $0x10] ss:$8 sps:$4 sm:$0xff]   ;;  %v1355_v17 = vld [vmem:[%s1567_s11 + $0x24] ss:$8 sps:$4 sm:$0xff]   ;;  %v1359_v19 = vld [vmem:[%s1567_s11 + $0x20] ss:$8 sps:$4 sm:$0xff]  }
  0x2b   : > { %862 = vmatpush1.bf16.msra.mxu0 %v1348_v12  ;;  %810 = vmatprep.subr.bf16.mxu1 %v1349_v13  ;;  %v1354_v16 = vld [vmem:[%s1567_s11 + $0x110] ss:$8 sps:$4 sm:$0xff]   ;;  %v1357_v18 = vld [vmem:[%s1567_s11 + $0x124] ss:$8 sps:$4 sm:$0xff]   ;;  %v1360_v20 = vld [vmem:[%s1567_s11 + $0x120] ss:$8 sps:$4 sm:$0xff]  }
  0x2c   : > { %863 = vmatprep.subr.bf16.mxu0 %v1351_v14  ;;  %v1361_v21 = vld [vmem:[%s1567_s11 + $0x34] ss:$8 sps:$4 sm:$0xff]   ;;  %v1365_v23 = vld [vmem:[%s1567_s11 + $0x30] ss:$8 sps:$4 sm:$0xff]   ;;  %v1367_v25 = vld [vmem:[%s1567_s11 + $0x44] ss:$8 sps:$4 sm:$0xff]  }
  0x2d   : > { %v1363_v22 = vld [vmem:[%s1567_s11 + $0x134] ss:$8 sps:$4 sm:$0xff]   ;;  %v1366_v24 = vld [vmem:[%s1567_s11 + $0x130] ss:$8 sps:$4 sm:$0xff]   ;;  %v1369_v26 = vld [vmem:[%s1567_s11 + $0x144] ss:$8 sps:$4 sm:$0xff]  }
  0x2e   : > { %811 = vmatpush1.bf16.msra.mxu1 %v1353_v15  ;;  %v1371_v27 = vld [vmem:[%s1567_s11 + $0x40] ss:$8 sps:$4 sm:$0xff]   ;;  %v1373_v29 = vld [vmem:[%s1567_s11 + $0x54] ss:$8 sps:$4 sm:$0xff]   ;;  %v1377_v31 = vld [vmem:[%s1567_s11 + $0x50] ss:$8 sps:$4 sm:$0xff]  }
  0x2f   : > { %864 = vmatpush1.bf16.msra.mxu0 %v1354_v16  ;;  %812 = vmatprep.subr.bf16.mxu1 %v1355_v17  ;;  %v1372_v28 = vld [vmem:[%s1567_s11 + $0x140] ss:$8 sps:$4 sm:$0xff]   ;;  %v1375_v30 = vld [vmem:[%s1567_s11 + $0x154] ss:$8 sps:$4 sm:$0xff]   ;;  %v1378_v32 = vld [vmem:[%s1567_s11 + $0x150] ss:$8 sps:$4 sm:$0xff]  }
  0x30   : > { %865 = vmatprep.subr.bf16.mxu0 %v1357_v18  ;;  %v1379_v33 = vld [vmem:[%s1567_s11 + $0x64] ss:$8 sps:$4 sm:$0xff]   ;;  %v1383_v35 = vld [vmem:[%s1567_s11 + $0x60] ss:$8 sps:$4 sm:$0xff]   ;;  %v1385_v37 = vld [vmem:[%s1567_s11 + $0x74] ss:$8 sps:$4 sm:$0xff]  }
  0x31   : > { %v1381_v34 = vld [vmem:[%s1567_s11 + $0x164] ss:$8 sps:$4 sm:$0xff]   ;;  %v1384_v36 = vld [vmem:[%s1567_s11 + $0x160] ss:$8 sps:$4 sm:$0xff]   ;;  %v1387_v38 = vld [vmem:[%s1567_s11 + $0x174] ss:$8 sps:$4 sm:$0xff]  }
  0x32   : > { %813 = vmatpush1.bf16.msra.mxu1 %v1359_v19  ;;  %v1389_v39 = vld [vmem:[%s1567_s11 + $0x70] ss:$8 sps:$4 sm:$0xff]   ;;  %v1391_v41 = vld [vmem:[%s1567_s11 + $0x84] ss:$8 sps:$4 sm:$0xff]   ;;  %v1395_v43 = vld [vmem:[%s1567_s11 + $0x80] ss:$8 sps:$4 sm:$0xff]  }
  0x33   : > { %866 = vmatpush1.bf16.msra.mxu0 %v1360_v20  ;;  %814 = vmatprep.subr.bf16.mxu1 %v1361_v21  ;;  %v1390_v40 = vld [vmem:[%s1567_s11 + $0x170] ss:$8 sps:$4 sm:$0xff]   ;;  %v1393_v42 = vld [vmem:[%s1567_s11 + $0x184] ss:$8 sps:$4 sm:$0xff]   ;;  %v1396_v44 = vld [vmem:[%s1567_s11 + $0x180] ss:$8 sps:$4 sm:$0xff]  }
  0x34   : > { %867 = vmatprep.subr.bf16.mxu0 %v1363_v22  ;;  %v1397_v45 = vld [vmem:[%s1567_s11 + $0x94] ss:$8 sps:$4 sm:$0xff]   ;;  %v1401_v47 = vld [vmem:[%s1567_s11 + $0x90] ss:$8 sps:$4 sm:$0xff]   ;;  %v1403_v49 = vld [vmem:[%s1567_s11 + $0xa4] ss:$8 sps:$4 sm:$0xff]  }
  0x35   : > { %v1399_v46 = vld [vmem:[%s1567_s11 + $0x194] ss:$8 sps:$4 sm:$0xff]   ;;  %v1402_v48 = vld [vmem:[%s1567_s11 + $0x190] ss:$8 sps:$4 sm:$0xff]   ;;  %v1405_v50 = vld [vmem:[%s1567_s11 + $0x1a4] ss:$8 sps:$4 sm:$0xff]  }
  0x36   : > { %815 = vmatpush1.bf16.msra.mxu1 %v1365_v23  ;;  %v1407_v51 = vld [vmem:[%s1567_s11 + $0xa0] ss:$8 sps:$4 sm:$0xff]   ;;  %v1409_v53 = vld [vmem:[%s1567_s11 + $0xb4] ss:$8 sps:$4 sm:$0xff]   ;;  %v1413_v55 = vld [vmem:[%s1567_s11 + $0xb0] ss:$8 sps:$4 sm:$0xff]  }
  0x37   : > { %868 = vmatpush1.bf16.msra.mxu0 %v1366_v24  ;;  %816 = vmatprep.subr.bf16.mxu1 %v1367_v25  ;;  %v1408_v52 = vld [vmem:[%s1567_s11 + $0x1a0] ss:$8 sps:$4 sm:$0xff]   ;;  %v1411_v54 = vld [vmem:[%s1567_s11 + $0x1b4] ss:$8 sps:$4 sm:$0xff]   ;;  %v1414_v56 = vld [vmem:[%s1567_s11 + $0x1b0] ss:$8 sps:$4 sm:$0xff]  }
  0x38   : > { %869 = vmatprep.subr.bf16.mxu0 %v1369_v26  ;;  %v1415_v57 = vld [vmem:[%s1567_s11 + $0xc4] ss:$8 sps:$4 sm:$0xff]   ;;  %v1419_v61 = vld [vmem:[%s1567_s11 + $0xc0] ss:$8 sps:$4 sm:$0xff]   ;;  %v1421_v63 = vld [vmem:[%s1567_s11 + $0xd4] ss:$8 sps:$4 sm:$0xff]  }
  0x39   : > { %v1441_v58 = vld [vmem:[%s1569_s12 + $0x4] ss:$16 sps:$4 sm:$0xff]   ;;  %v1444_v60 = vld [vmem:[%s1569_s12 + $0xc] ss:$16 sps:$4 sm:$0xff]   ;;  %v1420_v62 = vld [vmem:[%s1567_s11 + $0x1c0] ss:$8 sps:$4 sm:$0xff]  }
  0x3a   : > { %817 = vmatpush1.bf16.msra.mxu1 %v1371_v27  ;;  %v1417_v59 = vld [vmem:[%s1567_s11 + $0x1c4] ss:$8 sps:$4 sm:$0xff]   ;;  %840 = vmatprep.mubr.bf16.mxu1 %v1441_v58  ;;  %v1423_v0 = vld [vmem:[%s1567_s11 + $0x1d4] ss:$8 sps:$4 sm:$0xff]   ;;  %v1425_v1 = vld [vmem:[%s1567_s11 + $0xd0] ss:$8 sps:$4 sm:$0xff]  }
  0x3b   : > { %870 = vmatpush1.bf16.msra.mxu0 %v1372_v28  ;;  %818 = vmatprep.subr.bf16.mxu1 %v1373_v29  ;;  %v1426_v2 = vld [vmem:[%s1567_s11 + $0x1d0] ss:$8 sps:$4 sm:$0xff]   ;;  %v1427_v3 = vld [vmem:[%s1567_s11 + $0xe4] ss:$8 sps:$4 sm:$0xff]   ;;  %v1431_v5 = vld [vmem:[%s1567_s11 + $0xe0] ss:$8 sps:$4 sm:$0xff]  }
  0x3c   : > { %871 = vmatprep.subr.bf16.mxu0 %v1375_v30  ;;  %893 = vmatprep.mubr.bf16.mxu0 %v1444_v60  ;;  %v1429_v4 = vld [vmem:[%s1567_s11 + $0x1e4] ss:$8 sps:$4 sm:$0xff]   ;;  %v1432_v6 = vld [vmem:[%s1567_s11 + $0x1e0] ss:$8 sps:$4 sm:$0xff]   ;;  %v1433_v7 = vld [vmem:[%s1567_s11 + $0xf4] ss:$8 sps:$4 sm:$0xff]  }
  0x3d   : > { %v1435_v8 = vld [vmem:[%s1567_s11 + $0x1f4] ss:$8 sps:$4 sm:$0xff]   ;;  %v1437_v9 = vld [vmem:[%s1567_s11 + $0xf0] ss:$8 sps:$4 sm:$0xff]   ;;  %v368_v18 = vld [vmem:[#allocation2] sm:$0xff]  ;;  %p1284_p11 = scmp.ne.s32.totalorder %s1481_s17, 3 }
  0x3e   : > { %819 = vmatpush1.bf16.msra.mxu1 %v1377_v31  ;;  %v1438_v10 = vld [vmem:[%s1567_s11 + $0x1f0] ss:$8 sps:$4 sm:$0xff]   ;;  %v1445_v13 = vld [vmem:[%s1569_s12 + $0x24] ss:$16 sps:$4 sm:$0xff]   ;;  %v1447_v14 = vld [vmem:[%s1569_s12 + $0x2c] ss:$16 sps:$4 sm:$0xff]  }
  0x3f   : > { %872 = vmatpush1.bf16.msra.mxu0 %v1378_v32  ;;  %820 = vmatprep.subr.bf16.mxu1 %v1379_v33  ;;  %v1439_v11 = vld [vmem:[%s1569_s12] ss:$16 sps:$4 sm:$0xff]   ;;  %v1442_v12 = vld [vmem:[%s1569_s12 + $0x8] ss:$16 sps:$4 sm:$0xff]   ;;  %vm1014_vm0 = vcmask (!%p1284_p11), 1040384  }
  0x40   : > { %873 = vmatprep.subr.bf16.mxu0 %v1381_v34  ;;  %v1449_v15 = vld [vmem:[%s1569_s12 + $0x20] ss:$16 sps:$4 sm:$0xff]   ;;  %v1450_v16 = vld [vmem:[%s1569_s12 + $0x28] ss:$16 sps:$4 sm:$0xff]  }
  0x41   : > { %v369_v22 = vld [vmem:[#allocation2 + $0x8] sm:$0xff]  ;;  %v370_v26 = vld [vmem:[#allocation2 + $0x10] sm:$0xff]  ;;  %v371_v31 = vld [vmem:[#allocation2 + $0x18] sm:$0xff] }
  0x42   : > { %821 = vmatpush1.bf16.msra.mxu1 %v1383_v35 }
  0x43   : > { %874 = vmatpush1.bf16.msra.mxu0 %v1384_v36  ;;  %822 = vmatprep.subr.bf16.mxu1 %v1385_v37 }
  0x44   : > { %875 = vmatprep.subr.bf16.mxu0 %v1387_v38  ;;  %v372_v38 = vld [vmem:[#allocation2 + $0x20] sm:$0xff] }
  0x46   : > { %823 = vmatpush1.bf16.msra.mxu1 %v1389_v39 }
  0x47   : > { %876 = vmatpush1.bf16.msra.mxu0 %v1390_v40  ;;  %824 = vmatprep.subr.bf16.mxu1 %v1391_v41 }
  0x48   : > { %877 = vmatprep.subr.bf16.mxu0 %v1393_v42  ;;  %v373_v42 = vld [vmem:[#allocation2 + $0x28] sm:$0xff] }
  0x4a   : > { %825 = vmatpush1.bf16.msra.mxu1 %v1395_v43 }
  0x4b   : > { %878 = vmatpush1.bf16.msra.mxu0 %v1396_v44  ;;  %826 = vmatprep.subr.bf16.mxu1 %v1397_v45 }
  0x4c   : > { %879 = vmatprep.subr.bf16.mxu0 %v1399_v46  ;;  %v374_v46 = vld [vmem:[#allocation2 + $0x30] sm:$0xff] }
  0x4e   : > { %827 = vmatpush1.bf16.msra.mxu1 %v1401_v47 }
  0x4f   : > { %880 = vmatpush1.bf16.msra.mxu0 %v1402_v48  ;;  %828 = vmatprep.subr.bf16.mxu1 %v1403_v49 }
  0x50   : > { %881 = vmatprep.subr.bf16.mxu0 %v1405_v50 }
  0x52   : > { %829 = vmatpush1.bf16.msra.mxu1 %v1407_v51  ;;  %v375_v51 = vld [vmem:[#allocation2 + $0x38] sm:$0xff] }
  0x53   : > { %882 = vmatpush1.bf16.msra.mxu0 %v1408_v52  ;;  %830 = vmatprep.subr.bf16.mxu1 %v1409_v53 }
  0x54   : > { %883 = vmatprep.subr.bf16.mxu0 %v1411_v54 }
  0x56   : > { %831 = vmatpush1.bf16.msra.mxu1 %v1413_v55 }
  0x57   : > { %884 = vmatpush1.bf16.msra.mxu0 %v1414_v56  ;;  %832 = vmatprep.subr.bf16.mxu1 %v1415_v57  ;;  %v944_v57 = vlaneseq (!%p1284_p11) }
  0x58   : > { %885 = vmatprep.subr.bf16.mxu0 %v1417_v59  ;;  %v942_v59 = vld [vmem:[%s1692_s2] sm:$0x3] (!%p1284_p11) }
  0x59   : > { %v945_v58 = vshrl.u32 (!%p1284_p11), %v944_v57, 7 }
  0x5a   : > { %833 = vmatpush1.bf16.msra.mxu1 %v1419_v61 }
  0x5b   : > { %886 = vmatpush1.bf16.msra.mxu0 %v1420_v62  ;;  %834 = vmatprep.subr.bf16.mxu1 %v1421_v63  ;;  %v946_v61 = vsub.s32 (!%p1284_p11), 0, %v945_v58  ;;  %v950_v63 = vsub.s32 (!%p1284_p11), 1, %v945_v58 }
  0x5c   : > { %887 = vmatprep.subr.bf16.mxu0 %v1423_v0 }
  0x5e   : > { %835 = vmatpush1.bf16.msra.mxu1 %v1425_v1 }
  0x5f   : > { %888 = vmatpush1.bf16.msra.mxu0 %v1426_v2  ;;  %836 = vmatprep.subr.bf16.mxu1 %v1427_v3  ;;  %v947_v3 = vrot.slane (!%p1284_p11), %v942_v59, %v946_v61 }
  0x60   : > { %889 = vmatprep.subr.bf16.mxu0 %v1429_v4  ;;  %v951_v4 = vrot.slane (!%p1284_p11), %v942_v59, %v950_v63 }
  0x62   : > { %837 = vmatpush1.bf16.msra.mxu1 %v1431_v5 }
  0x63   : > { %890 = vmatpush1.bf16.msra.mxu0 %v1432_v6  ;;  %838 = vmatprep.subr.bf16.mxu1 %v1433_v7 }
  0x64   : > { %891 = vmatprep.subr.bf16.mxu0 %v1435_v8 }
  0x66   : > { %839 = vmatpush1.bf16.msra.mxu1 %v1437_v9 }
  0x67   : > { %892 = vmatpush1.bf16.msra.mxu0 %v1438_v10 }
  0x69   : > { %841 = vmatmul.mubr.bf16.vlgmr.msra.gmra.mrb[0].mxu1 %v1439_v11 }
  0x6a   : > { %894 = vmatmul.mubr.bf16.vlgmr.msra.gmra.mrb[0].mxu0 %v1442_v12  ;;  %850 = vmatprep.mubr.bf16.mxu1 %v1445_v13 }
  0x6b   : > { %903 = vmatprep.mubr.bf16.mxu0 %v1447_v14 }
  0x71   : > { %851 = vmatmul.mubr.bf16.gmra.mrb[4].mxu1 %v1449_v15 }
  0x72   : > { %904 = vmatmul.mubr.bf16.gmra.mrb[4].mxu0 %v1450_v16 }
 0x13c   : > { %v842_v17 = vpop.f32.mrb[0].mxu1 }
 0x13d   : > { %v895_v19 = vpop.f32.mrb[0].mxu0  ;;  %v844_v21 = vpop.f32.mrb[1].mxu1 }
 0x13e   : > { %v896_v20 = vadd.f32 %v895_v19, %v842_v17  ;;  %v897_v23 = vpop.f32.mrb[1].mxu0  ;;  %v846_v25 = vpop.f32.mrb[2].mxu1 }
 0x13f   : > { %v898_v24 = vadd.f32 %v897_v23, %v844_v21  ;;  %v899_v27 = vpop.f32.mrb[2].mxu0  ;;  %v848_v30 = vpop.f32.mrb[3].mxu1 }
 0x140   : > { %v914_v28 = vadd.f32 %v896_v20, %v368_v18  ;;  %v900_v29 = vadd.f32 %v899_v27, %v846_v25  ;;  %v901_v32 = vpop.f32.mrb[3].mxu0 }
 0x141   : > { %v915_v33 = vadd.f32 %v898_v24, %v369_v22  ;;  %v902_v34 = vadd.f32 %v901_v32, %v848_v30 }
 0x142   : > { %922 = vst [vmem:[#allocation2] sm:$0xff] %v914_v28  ;;  %v916_v35 = vadd.f32 %v900_v29, %v370_v26 }
 0x143   : > { %923 = vst [vmem:[#allocation2 + $0x8] sm:$0xff] %v915_v33  ;;  %v917_v36 = vadd.f32 %v902_v34, %v371_v31 }
 0x144   : > { %924 = vst [vmem:[#allocation2 + $0x10] sm:$0xff] %v916_v35  ;;  %v852_v37 = vpop.f32.mrb[4].mxu1 }
 0x145   : > { %925 = vst [vmem:[#allocation2 + $0x18] sm:$0xff] %v917_v36  ;;  %v905_v39 = vpop.f32.mrb[4].mxu0  ;;  %v854_v41 = vpop.f32.mrb[5].mxu1 }
 0x146   : > { %v906_v40 = vadd.f32 %v905_v39, %v852_v37  ;;  %v907_v43 = vpop.f32.mrb[5].mxu0  ;;  %v856_v45 = vpop.f32.mrb[6].mxu1 }
 0x147   : > { %v908_v44 = vadd.f32 %v907_v43, %v854_v41  ;;  %v909_v47 = vpop.f32.mrb[6].mxu0  ;;  %v858_v50 = vpop.f32.mrb[7].mxu1  ;;  %933 = sbr.rel (%p1284_p11) target bundleno = 363 (0x16b), region = 63 }
 0x148   : > { %v918_v48 = vadd.f32 %v906_v40, %v372_v38  ;;  %v910_v49 = vadd.f32 %v909_v47, %v856_v45  ;;  %v911_v52 = vpop.f32.mrb[7].mxu0 }
 0x149   : > { %v919_v53 = vadd.f32 %v908_v44, %v373_v42  ;;  %v912_v54 = vadd.f32 %v911_v52, %v858_v50  ;;  %v934_v60 = vld [vmem:[#allocation2] sm:$0xff] (!%p1284_p11) }
 0x14a   : > { %926 = vst [vmem:[#allocation2 + $0x20] sm:$0xff] %v918_v48  ;;  %v920_v55 = vadd.f32 %v910_v49, %v374_v46  ;;  %v935_v62 = vld [vmem:[#allocation2 + $0x8] sm:$0xff] (!%p1284_p11)  ;;  %v954_v8 = vadd.f32 (!%p1284_p11), %v947_v3, %v934_v60 }
 0x14b   : > { %927 = vst [vmem:[#allocation2 + $0x28] sm:$0xff] %v919_v53  ;;  %v921_v56 = vadd.f32 %v912_v54, %v375_v51  ;;  %v936_v0 = vld [vmem:[#allocation2 + $0x10] sm:$0xff] (!%p1284_p11)  ;;  %v955_v9 = vadd.f32 (!%p1284_p11), %v951_v4, %v935_v62 }
 0x14c   : > { %928 = vst [vmem:[#allocation2 + $0x30] sm:$0xff] %v920_v55  ;;  %v937_v1 = vld [vmem:[#allocation2 + $0x18] sm:$0xff] (!%p1284_p11)  ;;  %v956_v10 = vadd.f32 (!%p1284_p11), %v947_v3, %v936_v0  ;;  %962 = vst [vmem:[%s1693_s3] sm:$0xff] (!%p1284_p11), %v954_v8  ;;  %v970_v16 = vmul.f32 (!%p1284_p11), %v954_v8, %v954_v8 }
 0x14d   : > { %929 = vst [vmem:[#allocation2 + $0x38] sm:$0xff] %v921_v56  ;;  %v957_v11 = vadd.f32 (!%p1284_p11), %v951_v4, %v937_v1  ;;  %963 = vst [vmem:[%s1693_s3 + $0x8] sm:$0xff] (!%p1284_p11), %v955_v9  ;;  %v971_v17 = vmul.f32 (!%p1284_p11), %v955_v9, %v955_v9 }
 0x14e   : > { %964 = vst [vmem:[%s1693_s3 + $0x10] sm:$0xff] %v956_v10  ;;  %v972_v18 = vmul.f32 %v956_v10, %v956_v10  ;;  %v978_v19 = vadd.f32 %v956_v10, %v954_v8 }
 0x14f   : > { %965 = vst [vmem:[%s1693_s3 + $0x18] sm:$0xff] %v957_v11  ;;  %v973_v20 = vmul.f32 %v957_v11, %v957_v11  ;;  %v987_v21 = vadd.f32 %v957_v11, %v955_v9 }
 0x150   : > { %v996_v24 = vadd.f32 %v972_v18, %v970_v16 }
 0x151   : > { %v938_v2 = vld [vmem:[#allocation2 + $0x20] sm:$0xff]  ;;  %v1005_v27 = vadd.f32 %v973_v20, %v971_v17 }
 0x152   : > { %v939_v5 = vld [vmem:[#allocation2 + $0x28] sm:$0xff]  ;;  %v958_v12 = vadd.f32 %v947_v3, %v938_v2 }
 0x153   : > { %v940_v6 = vld [vmem:[#allocation2 + $0x30] sm:$0xff]  ;;  %v959_v13 = vadd.f32 %v951_v4, %v939_v5 }
 0x154   : > { %v941_v7 = vld [vmem:[#allocation2 + $0x38] sm:$0xff]  ;;  %v960_v14 = vadd.f32 %v947_v3, %v940_v6  ;;  %966 = vst [vmem:[%s1693_s3 + $0x20] sm:$0xff] %v958_v12  ;;  %v974_v22 = vmul.f32 %v958_v12, %v958_v12  ;;  %v979_v25 = vadd.f32 %v978_v19, %v958_v12 }
 0x155   : > { %v961_v15 = vadd.f32 %v951_v4, %v941_v7  ;;  %967 = vst [vmem:[%s1693_s3 + $0x28] sm:$0xff] %v959_v13  ;;  %v975_v23 = vmul.f32 %v959_v13, %v959_v13  ;;  %v988_v28 = vadd.f32 %v987_v21, %v959_v13 }
 0x156   : > { %968 = vst [vmem:[%s1693_s3 + $0x30] sm:$0xff] %v960_v14  ;;  %v976_v26 = vmul.f32 %v960_v14, %v960_v14  ;;  %v997_v30 = vadd.f32 %v996_v24, %v974_v22  ;;  %v980_v31 = vadd.f32 %v979_v25, %v960_v14 }
 0x157   : > { %969 = vst [vmem:[%s1693_s3 + $0x38] sm:$0xff] %v961_v15  ;;  %v977_v29 = vmul.f32 %v961_v15, %v961_v15  ;;  %v1006_v32 = vadd.f32 %v1005_v27, %v975_v23  ;;  %v989_v33 = vadd.f32 %v988_v28, %v961_v15 }
 0x158   : > { %v981_v34 = vrot.slane %v980_v31, 4  ;;  %v998_v35 = vadd.f32 %v997_v30, %v976_v26 }
 0x159   : > { %v990_v36 = vrot.slane %v989_v33, 4  ;;  %v1007_v37 = vadd.f32 %v1006_v32, %v977_v29 }
 0x15a   : > { %v982_v38 = vadd.f32 %v981_v34, %v980_v31  ;;  %v999_v39 = vrot.slane %v998_v35, 4 }
 0x15b   : > { %v991_v40 = vadd.f32 %v990_v36, %v989_v33  ;;  %v1008_v41 = vrot.slane %v1007_v37, 4 }
 0x15c   : > { %v983_v42 = vrot.slane %v982_v38, 2  ;;  %v1000_v43 = vadd.f32 %v999_v39, %v998_v35 }
 0x15d   : > { %v992_v44 = vrot.slane %v991_v40, 2  ;;  %v1009_v45 = vadd.f32 %v1008_v41, %v1007_v37 }
 0x15e   : > { %v984_v46 = vadd.f32 %v983_v42, %v982_v38  ;;  %v1001_v47 = vrot.slane %v1000_v43, 2 }
 0x15f   : > { %v993_v48 = vadd.f32 %v992_v44, %v991_v40  ;;  %v1010_v49 = vrot.slane %v1009_v45, 2 }
 0x160   : > { %v985_v50 = vrot.slane %v984_v46, 1  ;;  %v1002_v51 = vadd.f32 %v1001_v47, %v1000_v43 }
 0x161   : > { %v994_v52 = vrot.slane %v993_v48, 1  ;;  %v1011_v53 = vadd.f32 %v1010_v49, %v1009_v45 }
 0x162   : > { %v986_v54 = vadd.f32 %v985_v50, %v984_v46  ;;  %v1003_v55 = vrot.slane %v1002_v51, 1 }
 0x163   : > { %v995_v56 = vadd.f32 %v994_v52, %v993_v48  ;;  %v1012_v57 = vrot.slane %v1011_v53, 1 }
 0x164   : > { %v1004_v58 = vadd.f32 %v1003_v55, %v1002_v51 }
 0x165   : > { %v1013_v59 = vadd.f32 %v1012_v57, %v1011_v53 }
 0x166   : > { %v1015_v60 = vsel %vm1014_vm0, %v986_v54, %v1004_v58 }
 0x167   : > { %v1016_v61 = vsel %vm1014_vm0, %v995_v56, %v1013_v59 }
 0x168   : > { %v1019_v62 = vcombine.low %v1015_v60, %v1016_v61 }
 0x16a   : > { %1285 = vst.sshfl [vmem:[%s1694_s4] sm:$0x33 pattern:$0x76325410] %v1019_v62 }
 0x16b PF: > { %s15_s19 = sadd.s32 1, %s1489_s19   ;;  %s1695_s15 = smov %s1477_s16 }
 0x16c   : > { %p12_p12 = scmp.ge.s32.totalorder %s15_s19, 6   ;;  %s1696_s16 = smov %s1552_s23 }
 0x16d   : > { %s1697_s17 = smov %s1485_s18  ;;  %s1698_s18 = smov %s1700_s20 }
 0x16e   :  { %14 = sbr.rel (!%p12_p12) target bundleno = 3 (0x3), region = 116 }

// kernel: discriminator_forward.14
= control target key start
LH: loop header
LB: loop body
LE: loop exit
PB: predicated region body
PF: predicated region fallthrough
CT: control target
= control target key end

     0   :  { %s472_s12 = smov 0   ;;  %s474_s13 = smov 0   ;;  %s511_s0 = inlined_call_operand.vmem [shape: f32[8,512], index: 0, kind: input, shape index: {}]   ;;  %s512_s1 = inlined_call_operand.vmem [shape: f32[1,512], index: 1, kind: input, shape index: {}]   ;;  %s513_s2 = inlined_call_operand.vmem [shape: f32[1,512], index: 2, kind: input, shape index: {}]   ;;  %s514_s3 = inlined_call_operand.vmem [shape: f32[8,512], index: 3, kind: output, shape index: {}]  }
   0x1   :  { %s476_s14 = smov 0  }
   0x2 LB: > { %s22_s15 = sadd.s32 1, %s446_s13  ;;  %p395_p0 = scmp.ge.s32.totalorder %s450_s14, 1  ;;  %s450_s14 = sphi %s476_s14, %s13_s14   ;;  %s446_s13 = sphi %s474_s13, %s516_s13   ;;  %s442_s12 = sphi %s472_s12, %s515_s12  }
   0x3   : > { %p23_p1 = scmp.ge.s32.totalorder %s22_s15, 2  ;;  %p178_p2 = scmp.lt.s32.totalorder %s450_s14, 3 }
   0x5   : > { %s518_s15 = smov (%p23_p1, %s22_s15), 0  ;;  %p179_p3 = pnand %p395_p0, %p178_p2 }
   0x6   : > { %s396_s16 = sshll.u32 (!%p179_p3), %s442_s12, 1  ;;  %v252_v0 = vlaneseq (!%p179_p3) }
   0x7   : > { %182 = sbr.rel (%p179_p3) target bundleno = 27 (0x1b), region = 32  ;;  %p221_p4 = scmp.lt.s32.totalorder (!%p179_p3), %s396_s16, 3 }
   0x8   : > { %v253_v1 = vshrl.u32 (!%p179_p3), %v252_v0, 7 }
   0xa   : > { %v254_v2 = vsub.s32 (!%p179_p3), 0, %v253_v1  ;;  %v258_v3 = vsub.s32 (!%p179_p3), 1, %v253_v1 }
   0xe   : > { %s520_s16 = smov (!%p221_p4, %s396_s16), 3 }
   0xf   : > { %s397_s17 = sshll.u32 %s520_s16, 3  ;;  %s231_s20 = scalar_lea.vmem %s512_s1, %s520_s16 }
  0x10   : > { %s226_s23 = scalar_lea.vmem %s511_s0, %s397_s17  ;;  %s236_s26 = scalar_lea.vmem %s513_s2, %s520_s16  ;;  %v250_v4 = vld [vmem:[%s231_s20] sm:$0x3] }
  0x11   : > { %v248_v5 = vld [vmem:[%s226_s23] sm:$0xff]  ;;  %v249_v6 = vld [vmem:[%s226_s23 + $0x8] sm:$0xff]  ;;  %v255_v7 = vrot.slane %v250_v4, %v254_v2  ;;  %v259_v8 = vrot.slane %v250_v4, %v258_v3  ;;  %s246_s29 = scalar_lea.vmem %s514_s3, %s397_s17 }
  0x12   : > { %v264_v9 = vld [vmem:[%s236_s26] sm:$0x3] }
  0x13   : > { %v269_v10 = vrot.slane %v264_v9, %v254_v2  ;;  %v273_v11 = vrot.slane %v264_v9, %v258_v3  ;;  %v262_v12 = vmul.f32 %v255_v7, %v248_v5  ;;  %v263_v13 = vmul.f32 %v259_v8, %v249_v6 }
  0x15   : > { %v276_v14 = vadd.f32 %v269_v10, %v262_v12  ;;  %v277_v15 = vadd.f32 %v273_v11, %v263_v13 }
  0x17   : > { %vm278_vm0 = vcmp.gt.f32.partialorder %v276_v14, 0.0  ;;  %v280_v16 = vmul.f32 0.2, %v276_v14  ;;  %vm279_vm1 = vcmp.gt.f32.partialorder %v277_v15, 0.0  ;;  %v281_v17 = vmul.f32 0.2, %v277_v15 }
  0x19   : > { %v282_v18 = vsel %vm278_vm0, %v276_v14, %v280_v16  ;;  %v283_v19 = vsel %vm279_vm1, %v277_v15, %v281_v17 }
  0x1a   : > { %284 = vst [vmem:[%s246_s29] sm:$0xff] %v282_v18  ;;  %285 = vst [vmem:[%s246_s29 + $0x8] sm:$0xff] %v283_v19 }
  0x1b PF: > { %s13_s14 = sadd.s32 1, %s450_s14   ;;  %s515_s12 = smov %s446_s13 }
  0x1c   : > { %p10_p5 = scmp.ge.s32.totalorder %s13_s14, 4   ;;  %s516_s13 = smov %s518_s15 }
  0x1e   :  { %12 = sbr.rel (!%p10_p5) target bundleno = 2 (0x2), region = 68 }

// kernel: discriminator_forward.13
= control target key start
LH: loop header
LB: loop body
LE: loop exit
PB: predicated region body
PF: predicated region fallthrough
CT: control target
= control target key end

     0   :  { %s1662_s15 = smov 0   ;;  %s1664_s16 = smov 0   ;;  %s1981_s0 = inlined_call_operand.vmem [shape: bf16[8,4096], index: 0, kind: input, shape index: {}]   ;;  %s1982_s1 = inlined_call_operand.vmem [shape: bf16[4096,512], index: 1, kind: input, shape index: {}]   ;;  %s1983_s2 = inlined_call_operand.vmem [shape: f32[1,512], index: 2, kind: input, shape index: {}]   ;;  %s1984_s3 = inlined_call_operand.vmem [shape: f32[8,512], index: 3, kind: output, shape index: {0}]   ;;  %s1985_s4 = inlined_call_operand.vmem [shape: f32[1,2,512], index: 4, kind: output, shape index: {1}]  }
   0x1   :  { %s1666_s17 = smov 0   ;;  %s1668_s18 = smov 0  }
   0x2   :  { %s1670_s19 = smov 0   ;;  %s1672_s20 = smov 0  }
   0x3   :  { %s1674_s21 = smov 0  }
   0x4 LB: > { %s27_s22 = sadd.s32 1, %s1626_s19  ;;  %s30_s23 = sadd.s32 1, %s1630_s20  ;;  %s1634_s21 = sphi %s1674_s21, %s15_s21   ;;  %s1630_s20 = sphi %s1672_s20, %s1991_s20   ;;  %s1626_s19 = sphi %s1670_s19, %s1990_s19   ;;  %s1622_s18 = sphi %s1668_s18, %s1989_s18   ;;  %s1618_s17 = sphi %s1666_s17, %s1988_s17   ;;  %s1614_s16 = sphi %s1664_s16, %s1987_s16   ;;  %s1610_s15 = sphi %s1662_s15, %s1986_s15  }
   0x5   : > { %p28_p0 = scmp.ge.s32.totalorder %s27_s22, 8  ;;  %p78_p1 = scmp.ne.s32.totalorder %s1614_s16, %s1610_s15 }
   0x6   : > { %p79_p2 = scmp.eq.s32.totalorder %s1634_s21, 0  ;;  %s71_s27 = sadd.s32 1, %s1614_s16 }
   0x7   : > { %s1993_s22 = smov (%p28_p0, %s27_s22), 0  ;;  %s1995_s23 = smov (!%p28_p0, %s30_s23), %s1630_s20 }
   0x8   : > { %p80_p3 = por %p79_p2, %p78_p1  ;;  %p32_p4 = scmp.ge.s32.totalorder %s1995_s23, 2 }
   0x9   : > { %s66_s24 = ssub.s32 %s1626_s19, %s1993_s22  ;;  %p1334_p6 = scmp.ge.s32.totalorder %s1634_s21, 16 }
   0xa   : > { %s1997_s23 = smov (%p32_p4, %s1995_s23), 0 }
   0xb   : > { %s67_s25 = ssub.s32 %s1630_s20, %s1997_s23  ;;  %186 = sbr.rel (%p1334_p6) target bundleno = 57 (0x39), region = 16 }
   0xc   : > { %s68_s26 = sor.u32 %s67_s25, %s66_s24 }
   0xd   : > { %p69_p5 = scmp.eq.s32.totalorder %s68_s26, 0 }
   0xf   : > { %s1713_s28 = scalar_select %p69_p5, %s1614_s16, %s71_s27  }
  0x12   : > { %202 = sbr.rel (!%p80_p3) target bundleno = 57 (0x39), region = 24  ;;  %s204_s29 = sand.u32 (%p80_p3), 1, %s1614_s16  }
  0x13   : > { %s1337_s30 = sshll.u32 (%p80_p3), %s1630_s20, 1  ;;  %s1335_s5 = sshll.u32 (%p80_p3), %s204_s29, 9 }
  0x14   : > { %s1422_s6 = sshll.u32 (%p80_p3), %s1626_s19, 8  ;;  %s1727_s12 = scalar_lea.vmem (%p80_p3), [#allocation3], %s1335_s5 }
  0x15   : > { %s210_s7 = sadd.s32 (%p80_p3), %s1422_s6, %s1337_s30 }
  0x16   : > { %s1339_s8 = sshll.u32 (%p80_p3), %s210_s7, 2 }
  0x17   : > { %s1722_s11 = scalar_lea.vmem (%p80_p3), %s1982_s1, %s1339_s8 }
  0x18   : > { %v366_v0 = vld [vmem:[%s1722_s11] sm:$0xff] (%p80_p3)  ;;  %v368_v1 = vld [vmem:[%s1722_s11 + $0x10] sm:$0xff] (%p80_p3) }
  0x19   : > { %v370_v2 = vld [vmem:[%s1722_s11 + $0x20] sm:$0xff]  ;;  %367 = vst [vmem:[%s1727_s12] sm:$0xff] %v366_v0  ;;  %369 = vst [vmem:[%s1727_s12 + $0x8] sm:$0xff] %v368_v1  ;;  %v372_v3 = vld [vmem:[%s1722_s11 + $0x30] sm:$0xff] }
  0x1a   : > { %371 = vst [vmem:[%s1727_s12 + $0x10] sm:$0xff] %v370_v2  ;;  %v374_v4 = vld [vmem:[%s1722_s11 + $0x40] sm:$0xff]  ;;  %v376_v5 = vld [vmem:[%s1722_s11 + $0x50] sm:$0xff]  ;;  %373 = vst [vmem:[%s1727_s12 + $0x18] sm:$0xff] %v372_v3 }
  0x1b   : > { %375 = vst [vmem:[%s1727_s12 + $0x20] sm:$0xff] %v374_v4  ;;  %377 = vst [vmem:[%s1727_s12 + $0x28] sm:$0xff] %v376_v5  ;;  %v378_v6 = vld [vmem:[%s1722_s11 + $0x60] sm:$0xff]  ;;  %v380_v7 = vld [vmem:[%s1722_s11 + $0x70] sm:$0xff] }
  0x1c   : > { %v382_v8 = vld [vmem:[%s1722_s11 + $0x80] sm:$0xff]  ;;  %379 = vst [vmem:[%s1727_s12 + $0x30] sm:$0xff] %v378_v6  ;;  %381 = vst [vmem:[%s1727_s12 + $0x38] sm:$0xff] %v380_v7  ;;  %v384_v9 = vld [vmem:[%s1722_s11 + $0x90] sm:$0xff] }
  0x1d   : > { %383 = vst [vmem:[%s1727_s12 + $0x40] sm:$0xff] %v382_v8  ;;  %v386_v10 = vld [vmem:[%s1722_s11 + $0xa0] sm:$0xff]  ;;  %v388_v11 = vld [vmem:[%s1722_s11 + $0xb0] sm:$0xff]  ;;  %385 = vst [vmem:[%s1727_s12 + $0x48] sm:$0xff] %v384_v9 }
  0x1e   : > { %387 = vst [vmem:[%s1727_s12 + $0x50] sm:$0xff] %v386_v10  ;;  %389 = vst [vmem:[%s1727_s12 + $0x58] sm:$0xff] %v388_v11  ;;  %v390_v12 = vld [vmem:[%s1722_s11 + $0xc0] sm:$0xff]  ;;  %v392_v13 = vld [vmem:[%s1722_s11 + $0xd0] sm:$0xff] }
  0x1f   : > { %v394_v14 = vld [vmem:[%s1722_s11 + $0xe0] sm:$0xff]  ;;  %391 = vst [vmem:[%s1727_s12 + $0x60] sm:$0xff] %v390_v12  ;;  %393 = vst [vmem:[%s1727_s12 + $0x68] sm:$0xff] %v392_v13  ;;  %v396_v15 = vld [vmem:[%s1722_s11 + $0xf0] sm:$0xff] }
  0x20   : > { %395 = vst [vmem:[%s1727_s12 + $0x70] sm:$0xff] %v394_v14  ;;  %v398_v16 = vld [vmem:[%s1722_s11 + $0x100] sm:$0xff]  ;;  %v400_v17 = vld [vmem:[%s1722_s11 + $0x110] sm:$0xff]  ;;  %397 = vst [vmem:[%s1727_s12 + $0x78] sm:$0xff] %v396_v15 }
  0x21   : > { %399 = vst [vmem:[%s1727_s12 + $0x80] sm:$0xff] %v398_v16  ;;  %401 = vst [vmem:[%s1727_s12 + $0x88] sm:$0xff] %v400_v17  ;;  %v402_v18 = vld [vmem:[%s1722_s11 + $0x120] sm:$0xff]  ;;  %v404_v19 = vld [vmem:[%s1722_s11 + $0x130] sm:$0xff] }
  0x22   : > { %v406_v20 = vld [vmem:[%s1722_s11 + $0x140] sm:$0xff]  ;;  %403 = vst [vmem:[%s1727_s12 + $0x90] sm:$0xff] %v402_v18  ;;  %405 = vst [vmem:[%s1727_s12 + $0x98] sm:$0xff] %v404_v19  ;;  %v408_v21 = vld [vmem:[%s1722_s11 + $0x150] sm:$0xff] }
  0x23   : > { %407 = vst [vmem:[%s1727_s12 + $0xa0] sm:$0xff] %v406_v20  ;;  %v410_v22 = vld [vmem:[%s1722_s11 + $0x160] sm:$0xff]  ;;  %v412_v23 = vld [vmem:[%s1722_s11 + $0x170] sm:$0xff]  ;;  %409 = vst [vmem:[%s1727_s12 + $0xa8] sm:$0xff] %v408_v21 }
  0x24   : > { %411 = vst [vmem:[%s1727_s12 + $0xb0] sm:$0xff] %v410_v22  ;;  %413 = vst [vmem:[%s1727_s12 + $0xb8] sm:$0xff] %v412_v23  ;;  %v414_v24 = vld [vmem:[%s1722_s11 + $0x180] sm:$0xff]  ;;  %v416_v25 = vld [vmem:[%s1722_s11 + $0x190] sm:$0xff] }
  0x25   : > { %v418_v26 = vld [vmem:[%s1722_s11 + $0x1a0] sm:$0xff]  ;;  %415 = vst [vmem:[%s1727_s12 + $0xc0] sm:$0xff] %v414_v24  ;;  %417 = vst [vmem:[%s1727_s12 + $0xc8] sm:$0xff] %v416_v25  ;;  %v420_v27 = vld [vmem:[%s1722_s11 + $0x1b0] sm:$0xff] }
  0x26   : > { %419 = vst [vmem:[%s1727_s12 + $0xd0] sm:$0xff] %v418_v26  ;;  %v422_v28 = vld [vmem:[%s1722_s11 + $0x1c0] sm:$0xff]  ;;  %v424_v29 = vld [vmem:[%s1722_s11 + $0x1d0] sm:$0xff]  ;;  %421 = vst [vmem:[%s1727_s12 + $0xd8] sm:$0xff] %v420_v27 }
  0x27   : > { %423 = vst [vmem:[%s1727_s12 + $0xe0] sm:$0xff] %v422_v28  ;;  %425 = vst [vmem:[%s1727_s12 + $0xe8] sm:$0xff] %v424_v29  ;;  %v426_v30 = vld [vmem:[%s1722_s11 + $0x1e0] sm:$0xff]  ;;  %v428_v31 = vld [vmem:[%s1722_s11 + $0x1f0] sm:$0xff] }
  0x28   : > { %v430_v32 = vld [vmem:[%s1722_s11 + $0x200] sm:$0xff]  ;;  %427 = vst [vmem:[%s1727_s12 + $0xf0] sm:$0xff] %v426_v30  ;;  %429 = vst [vmem:[%s1727_s12 + $0xf8] sm:$0xff] %v428_v31  ;;  %v432_v33 = vld [vmem:[%s1722_s11 + $0x210] sm:$0xff] }
  0x29   : > { %431 = vst [vmem:[%s1727_s12 + $0x100] sm:$0xff] %v430_v32  ;;  %v434_v34 = vld [vmem:[%s1722_s11 + $0x220] sm:$0xff]  ;;  %v436_v35 = vld [vmem:[%s1722_s11 + $0x230] sm:$0xff]  ;;  %433 = vst [vmem:[%s1727_s12 + $0x108] sm:$0xff] %v432_v33 }
  0x2a   : > { %435 = vst [vmem:[%s1727_s12 + $0x110] sm:$0xff] %v434_v34  ;;  %437 = vst [vmem:[%s1727_s12 + $0x118] sm:$0xff] %v436_v35  ;;  %v438_v36 = vld [vmem:[%s1722_s11 + $0x240] sm:$0xff]  ;;  %v440_v37 = vld [vmem:[%s1722_s11 + $0x250] sm:$0xff] }
  0x2b   : > { %v442_v38 = vld [vmem:[%s1722_s11 + $0x260] sm:$0xff]  ;;  %439 = vst [vmem:[%s1727_s12 + $0x120] sm:$0xff] %v438_v36  ;;  %441 = vst [vmem:[%s1727_s12 + $0x128] sm:$0xff] %v440_v37  ;;  %v444_v39 = vld [vmem:[%s1722_s11 + $0x270] sm:$0xff] }
  0x2c   : > { %443 = vst [vmem:[%s1727_s12 + $0x130] sm:$0xff] %v442_v38  ;;  %v446_v40 = vld [vmem:[%s1722_s11 + $0x280] sm:$0xff]  ;;  %v448_v41 = vld [vmem:[%s1722_s11 + $0x290] sm:$0xff]  ;;  %445 = vst [vmem:[%s1727_s12 + $0x138] sm:$0xff] %v444_v39 }
  0x2d   : > { %447 = vst [vmem:[%s1727_s12 + $0x140] sm:$0xff] %v446_v40  ;;  %449 = vst [vmem:[%s1727_s12 + $0x148] sm:$0xff] %v448_v41  ;;  %v450_v42 = vld [vmem:[%s1722_s11 + $0x2a0] sm:$0xff]  ;;  %v452_v43 = vld [vmem:[%s1722_s11 + $0x2b0] sm:$0xff] }
  0x2e   : > { %v454_v44 = vld [vmem:[%s1722_s11 + $0x2c0] sm:$0xff]  ;;  %451 = vst [vmem:[%s1727_s12 + $0x150] sm:$0xff] %v450_v42  ;;  %453 = vst [vmem:[%s1727_s12 + $0x158] sm:$0xff] %v452_v43  ;;  %v456_v45 = vld [vmem:[%s1722_s11 + $0x2d0] sm:$0xff] }
  0x2f   : > { %455 = vst [vmem:[%s1727_s12 + $0x160] sm:$0xff] %v454_v44  ;;  %v458_v46 = vld [vmem:[%s1722_s11 + $0x2e0] sm:$0xff]  ;;  %v460_v47 = vld [vmem:[%s1722_s11 + $0x2f0] sm:$0xff]  ;;  %457 = vst [vmem:[%s1727_s12 + $0x168] sm:$0xff] %v456_v45 }
  0x30   : > { %459 = vst [vmem:[%s1727_s12 + $0x170] sm:$0xff] %v458_v46  ;;  %461 = vst [vmem:[%s1727_s12 + $0x178] sm:$0xff] %v460_v47  ;;  %v462_v48 = vld [vmem:[%s1722_s11 + $0x300] sm:$0xff]  ;;  %v464_v49 = vld [vmem:[%s1722_s11 + $0x310] sm:$0xff] }
  0x31   : > { %v466_v50 = vld [vmem:[%s1722_s11 + $0x320] sm:$0xff]  ;;  %463 = vst [vmem:[%s1727_s12 + $0x180] sm:$0xff] %v462_v48  ;;  %465 = vst [vmem:[%s1727_s12 + $0x188] sm:$0xff] %v464_v49  ;;  %v468_v51 = vld [vmem:[%s1722_s11 + $0x330] sm:$0xff] }
  0x32   : > { %467 = vst [vmem:[%s1727_s12 + $0x190] sm:$0xff] %v466_v50  ;;  %v470_v52 = vld [vmem:[%s1722_s11 + $0x340] sm:$0xff]  ;;  %v472_v53 = vld [vmem:[%s1722_s11 + $0x350] sm:$0xff]  ;;  %469 = vst [vmem:[%s1727_s12 + $0x198] sm:$0xff] %v468_v51 }
  0x33   : > { %471 = vst [vmem:[%s1727_s12 + $0x1a0] sm:$0xff] %v470_v52  ;;  %473 = vst [vmem:[%s1727_s12 + $0x1a8] sm:$0xff] %v472_v53  ;;  %v474_v54 = vld [vmem:[%s1722_s11 + $0x360] sm:$0xff]  ;;  %v476_v55 = vld [vmem:[%s1722_s11 + $0x370] sm:$0xff] }
  0x34   : > { %v478_v56 = vld [vmem:[%s1722_s11 + $0x380] sm:$0xff]  ;;  %475 = vst [vmem:[%s1727_s12 + $0x1b0] sm:$0xff] %v474_v54  ;;  %477 = vst [vmem:[%s1727_s12 + $0x1b8] sm:$0xff] %v476_v55  ;;  %v480_v57 = vld [vmem:[%s1722_s11 + $0x390] sm:$0xff] }
  0x35   : > { %479 = vst [vmem:[%s1727_s12 + $0x1c0] sm:$0xff] %v478_v56  ;;  %v482_v58 = vld [vmem:[%s1722_s11 + $0x3a0] sm:$0xff]  ;;  %v484_v59 = vld [vmem:[%s1722_s11 + $0x3b0] sm:$0xff]  ;;  %481 = vst [vmem:[%s1727_s12 + $0x1c8] sm:$0xff] %v480_v57 }
  0x36   : > { %483 = vst [vmem:[%s1727_s12 + $0x1d0] sm:$0xff] %v482_v58  ;;  %485 = vst [vmem:[%s1727_s12 + $0x1d8] sm:$0xff] %v484_v59  ;;  %v486_v60 = vld [vmem:[%s1722_s11 + $0x3c0] sm:$0xff]  ;;  %v488_v61 = vld [vmem:[%s1722_s11 + $0x3d0] sm:$0xff] }
  0x37   : > { %v490_v62 = vld [vmem:[%s1722_s11 + $0x3e0] sm:$0xff]  ;;  %487 = vst [vmem:[%s1727_s12 + $0x1e0] sm:$0xff] %v486_v60  ;;  %489 = vst [vmem:[%s1727_s12 + $0x1e8] sm:$0xff] %v488_v61  ;;  %v492_v63 = vld [vmem:[%s1722_s11 + $0x3f0] sm:$0xff] }
  0x38   : > { %491 = vst [vmem:[%s1727_s12 + $0x1f0] sm:$0xff] %v490_v62  ;;  %493 = vst [vmem:[%s1727_s12 + $0x1f8] sm:$0xff] %v492_v63 }
  0x39 PF: > { %p1340_p7 = scmp.ge.s32.totalorder %s1634_s21, 1  ;;  %p506_p8 = scmp.lt.s32.totalorder %s1634_s21, 17 }
  0x3b   : > { %p507_p9 = pnand %p1340_p7, %p506_p8 }
  0x3c   : > { %s513_s13 = sand.u32 (!%p507_p9), 1, %s1610_s15   ;;  %s1342_s14 = sshll.u32 (!%p507_p9), %s1618_s17, 2 }
  0x3d   : > { %510 = sbr.rel (%p507_p9) target bundleno = 391 (0x187), region = 66  ;;  %s1341_s24 = sshll.u32 (!%p507_p9), %s513_s13, 9 }
  0x3e   : > { %p567_p10 = scmp.lt.s32.totalorder (!%p507_p9), %s1342_s14, 31  ;;  %s1344_s25 = sshll.u32 (!%p507_p9), %s1622_s18, 1 }
  0x3f   : > { %p577_p11 = scmp.lt.s32.totalorder (!%p507_p9), %s1344_s25, 3  ;;  %p1349_p12 = scmp.ne.s32.totalorder (!%p507_p9), %s1618_s17, 0 }
  0x44   : > { %s1999_s14 = smov (!%p567_p10, %s1342_s14), 31  ;;  %s2001_s25 = smov (!%p577_p11, %s1344_s25), 3 }
  0x45   : > { %s1343_s26 = sshll.u32 %s1999_s14, 2  ;;  %s579_s15 = scalar_lea.vmem %s1983_s2, %s2001_s25  ;;  %v1636_v0 = vmov (!%p1349_p12), 0.0  }
  0x46   : > { %s1862_s30 = scalar_lea.vmem %s1981_s0, %s1343_s26  ;;  %s1346_s7 = sshll.u32 %s2001_s25, 3  ;;  %605 = vst [vmem:[#allocation2] sm:$0xff] (!%p1349_p12), %v1636_v0  ;;  %606 = vst [vmem:[#allocation2 + $0x8] sm:$0xff] (!%p1349_p12), %v1636_v0 }
  0x47   : > { %s1874_s9 = scalar_lea.vmem %s1984_s3, %s1346_s7  ;;  %s1348_s10 = sshll.u32 %s2001_s25, 1 }
  0x48   : > { %s1880_s13 = scalar_lea.vmem %s1985_s4, %s1348_s10  ;;  %s1882_s14 = scalar_lea.vmem [#allocation3], %s1341_s24 }
  0x49   : > { %604 = sbr.rel (%p1349_p12) target bundleno = 80 (0x50), region = 74 }
  0x50 PF: > { %v1480_v1 = vld [vmem:[%s1882_s14 + $0x4] ss:$8 sps:$4 sm:$0xff]   ;;  %v1484_v3 = vld [vmem:[%s1882_s14] ss:$8 sps:$4 sm:$0xff]   ;;  %v1486_v5 = vld [vmem:[%s1882_s14 + $0x14] ss:$8 sps:$4 sm:$0xff]  }
  0x51   : > { %v1482_v2 = vld [vmem:[%s1882_s14 + $0x104] ss:$8 sps:$4 sm:$0xff]   ;;  %1009 = vmatprep.subr.bf16.mxu0 %v1480_v1  ;;  %v1485_v4 = vld [vmem:[%s1882_s14 + $0x100] ss:$8 sps:$4 sm:$0xff]   ;;  %v1488_v6 = vld [vmem:[%s1882_s14 + $0x114] ss:$8 sps:$4 sm:$0xff]  }
  0x52   : > { %1050 = vmatprep.subr.bf16.mxu1 %v1482_v2  ;;  %1010 = vmatpush1.bf16.msra.mxu0 %v1484_v3  ;;  %v1490_v7 = vld [vmem:[%s1882_s14 + $0x10] ss:$8 sps:$4 sm:$0xff]   ;;  %v1492_v9 = vld [vmem:[%s1882_s14 + $0x24] ss:$8 sps:$4 sm:$0xff]   ;;  %v1496_v11 = vld [vmem:[%s1882_s14 + $0x20] ss:$8 sps:$4 sm:$0xff]  }
  0x53   : > { %1051 = vmatpush1.bf16.msra.mxu1 %v1485_v4  ;;  %1011 = vmatprep.subr.bf16.mxu0 %v1486_v5  ;;  %v1491_v8 = vld [vmem:[%s1882_s14 + $0x110] ss:$8 sps:$4 sm:$0xff]   ;;  %v1494_v10 = vld [vmem:[%s1882_s14 + $0x124] ss:$8 sps:$4 sm:$0xff]   ;;  %v1497_v12 = vld [vmem:[%s1882_s14 + $0x120] ss:$8 sps:$4 sm:$0xff]  }
  0x54   : > { %1052 = vmatprep.subr.bf16.mxu1 %v1488_v6  ;;  %v1498_v13 = vld [vmem:[%s1882_s14 + $0x34] ss:$8 sps:$4 sm:$0xff]   ;;  %v1502_v15 = vld [vmem:[%s1882_s14 + $0x30] ss:$8 sps:$4 sm:$0xff]   ;;  %v1504_v17 = vld [vmem:[%s1882_s14 + $0x44] ss:$8 sps:$4 sm:$0xff]  }
  0x55   : > { %v1500_v14 = vld [vmem:[%s1882_s14 + $0x134] ss:$8 sps:$4 sm:$0xff]   ;;  %v1503_v16 = vld [vmem:[%s1882_s14 + $0x130] ss:$8 sps:$4 sm:$0xff]   ;;  %v1506_v18 = vld [vmem:[%s1882_s14 + $0x144] ss:$8 sps:$4 sm:$0xff]  }
  0x56   : > { %1012 = vmatpush1.bf16.msra.mxu0 %v1490_v7  ;;  %v1508_v19 = vld [vmem:[%s1882_s14 + $0x40] ss:$8 sps:$4 sm:$0xff]   ;;  %v1510_v21 = vld [vmem:[%s1882_s14 + $0x54] ss:$8 sps:$4 sm:$0xff]   ;;  %v1514_v23 = vld [vmem:[%s1882_s14 + $0x50] ss:$8 sps:$4 sm:$0xff]  }
  0x57   : > { %1053 = vmatpush1.bf16.msra.mxu1 %v1491_v8  ;;  %1013 = vmatprep.subr.bf16.mxu0 %v1492_v9  ;;  %v1509_v20 = vld [vmem:[%s1882_s14 + $0x140] ss:$8 sps:$4 sm:$0xff]   ;;  %v1512_v22 = vld [vmem:[%s1882_s14 + $0x154] ss:$8 sps:$4 sm:$0xff]   ;;  %v1515_v24 = vld [vmem:[%s1882_s14 + $0x150] ss:$8 sps:$4 sm:$0xff]  }
  0x58   : > { %1054 = vmatprep.subr.bf16.mxu1 %v1494_v10  ;;  %v1516_v25 = vld [vmem:[%s1882_s14 + $0x64] ss:$8 sps:$4 sm:$0xff]   ;;  %v1520_v27 = vld [vmem:[%s1882_s14 + $0x60] ss:$8 sps:$4 sm:$0xff]   ;;  %v1522_v29 = vld [vmem:[%s1882_s14 + $0x74] ss:$8 sps:$4 sm:$0xff]  }
  0x59   : > { %v1518_v26 = vld [vmem:[%s1882_s14 + $0x164] ss:$8 sps:$4 sm:$0xff]   ;;  %v1521_v28 = vld [vmem:[%s1882_s14 + $0x160] ss:$8 sps:$4 sm:$0xff]   ;;  %v1524_v30 = vld [vmem:[%s1882_s14 + $0x174] ss:$8 sps:$4 sm:$0xff]  }
  0x5a   : > { %1014 = vmatpush1.bf16.msra.mxu0 %v1496_v11  ;;  %v1526_v31 = vld [vmem:[%s1882_s14 + $0x70] ss:$8 sps:$4 sm:$0xff]   ;;  %v1528_v33 = vld [vmem:[%s1882_s14 + $0x84] ss:$8 sps:$4 sm:$0xff]   ;;  %v1532_v35 = vld [vmem:[%s1882_s14 + $0x80] ss:$8 sps:$4 sm:$0xff]  }
  0x5b   : > { %1055 = vmatpush1.bf16.msra.mxu1 %v1497_v12  ;;  %1015 = vmatprep.subr.bf16.mxu0 %v1498_v13  ;;  %v1527_v32 = vld [vmem:[%s1882_s14 + $0x170] ss:$8 sps:$4 sm:$0xff]   ;;  %v1530_v34 = vld [vmem:[%s1882_s14 + $0x184] ss:$8 sps:$4 sm:$0xff]   ;;  %v1533_v36 = vld [vmem:[%s1882_s14 + $0x180] ss:$8 sps:$4 sm:$0xff]  }
  0x5c   : > { %1056 = vmatprep.subr.bf16.mxu1 %v1500_v14  ;;  %v1534_v37 = vld [vmem:[%s1882_s14 + $0x94] ss:$8 sps:$4 sm:$0xff]   ;;  %v1538_v39 = vld [vmem:[%s1882_s14 + $0x90] ss:$8 sps:$4 sm:$0xff]   ;;  %v1540_v41 = vld [vmem:[%s1882_s14 + $0xa4] ss:$8 sps:$4 sm:$0xff]  }
  0x5d   : > { %v1536_v38 = vld [vmem:[%s1882_s14 + $0x194] ss:$8 sps:$4 sm:$0xff]   ;;  %v1539_v40 = vld [vmem:[%s1882_s14 + $0x190] ss:$8 sps:$4 sm:$0xff]   ;;  %v1542_v42 = vld [vmem:[%s1882_s14 + $0x1a4] ss:$8 sps:$4 sm:$0xff]  }
  0x5e   : > { %1016 = vmatpush1.bf16.msra.mxu0 %v1502_v15  ;;  %v1544_v43 = vld [vmem:[%s1882_s14 + $0xa0] ss:$8 sps:$4 sm:$0xff]   ;;  %v1546_v45 = vld [vmem:[%s1882_s14 + $0xb4] ss:$8 sps:$4 sm:$0xff]   ;;  %v1550_v50 = vld [vmem:[%s1882_s14 + $0xb0] ss:$8 sps:$4 sm:$0xff]  }
  0x5f   : > { %1057 = vmatpush1.bf16.msra.mxu1 %v1503_v16  ;;  %1017 = vmatprep.subr.bf16.mxu0 %v1504_v17  ;;  %v1545_v44 = vld [vmem:[%s1882_s14 + $0x1a0] ss:$8 sps:$4 sm:$0xff]   ;;  %v1548_v46 = vld [vmem:[%s1882_s14 + $0x1b4] ss:$8 sps:$4 sm:$0xff]   ;;  %v1551_v51 = vld [vmem:[%s1882_s14 + $0x1b0] ss:$8 sps:$4 sm:$0xff]  }
  0x60   : > { %1058 = vmatprep.subr.bf16.mxu1 %v1506_v18  ;;  %v609_v47 = vld [vmem:[%s1862_s30] sm:$0xff]  ;;  %v610_v49 = vld [vmem:[%s1862_s30 + $0x8] sm:$0xff]  ;;  %v1552_v53 = vld [vmem:[%s1882_s14 + $0xc4] ss:$8 sps:$4 sm:$0xff]   ;;  %p1418_p13 = scmp.ne.s32.totalorder %s1618_s17, 7 }
  0x61   : > { %v1351_v48 = vcombine.high %v609_v47, %v609_v47  ;;  %v1353_v52 = vcombine.high %v610_v49, %v610_v49  ;;  %v1554_v54 = vld [vmem:[%s1882_s14 + $0x1c4] ss:$8 sps:$4 sm:$0xff]   ;;  %v1556_v55 = vld [vmem:[%s1882_s14 + $0xc0] ss:$8 sps:$4 sm:$0xff]   ;;  %v1558_v57 = vld [vmem:[%s1882_s14 + $0xd4] ss:$8 sps:$4 sm:$0xff]   ;;  %v1350_v5 = vcombine.low %v609_v47, %v609_v47  ;;  %v1352_v6 = vcombine.low %v610_v49, %v610_v49 }
  0x62   : > { %1018 = vmatpush1.bf16.msra.mxu0 %v1508_v19  ;;  %v1557_v56 = vld [vmem:[%s1882_s14 + $0x1c0] ss:$8 sps:$4 sm:$0xff]   ;;  %v1560_v58 = vld [vmem:[%s1882_s14 + $0x1d4] ss:$8 sps:$4 sm:$0xff]   ;;  %v1562_v59 = vld [vmem:[%s1882_s14 + $0xd0] ss:$8 sps:$4 sm:$0xff]  }
  0x63   : > { %1059 = vmatpush1.bf16.msra.mxu1 %v1509_v20  ;;  %1019 = vmatprep.subr.bf16.mxu0 %v1510_v21  ;;  %v1563_v60 = vld [vmem:[%s1882_s14 + $0x1d0] ss:$8 sps:$4 sm:$0xff]   ;;  %v1564_v61 = vld [vmem:[%s1882_s14 + $0xe4] ss:$8 sps:$4 sm:$0xff]   ;;  %v1568_v63 = vld [vmem:[%s1882_s14 + $0xe0] ss:$8 sps:$4 sm:$0xff]   ;;  %v1103_v21 = vlaneseq (!%p1418_p13) }
  0x64   : > { %1060 = vmatprep.subr.bf16.mxu1 %v1512_v22  ;;  %1041 = vmatprep.mubr.bf16.mxu0 %v1351_v48  ;;  %v1566_v62 = vld [vmem:[%s1882_s14 + $0x1e4] ss:$8 sps:$4 sm:$0xff]   ;;  %v1569_v0 = vld [vmem:[%s1882_s14 + $0x1e0] ss:$8 sps:$4 sm:$0xff]   ;;  %v1570_v1 = vld [vmem:[%s1882_s14 + $0xf4] ss:$8 sps:$4 sm:$0xff]  }
  0x65   : > { %1082 = vmatprep.mubr.bf16.mxu1 %v1353_v52  ;;  %v1572_v2 = vld [vmem:[%s1882_s14 + $0x1f4] ss:$8 sps:$4 sm:$0xff]   ;;  %v1574_v3 = vld [vmem:[%s1882_s14 + $0xf0] ss:$8 sps:$4 sm:$0xff]   ;;  %v1104_v22 = vshrl.u32 (!%p1418_p13), %v1103_v21, 7  ;;  %vm1143_vm0 = vcmask (!%p1418_p13), 1040384  }
  0x66   : > { %1020 = vmatpush1.bf16.msra.mxu0 %v1514_v23  ;;  %v1575_v4 = vld [vmem:[%s1882_s14 + $0x1f0] ss:$8 sps:$4 sm:$0xff]  }
  0x67   : > { %1061 = vmatpush1.bf16.msra.mxu1 %v1515_v24  ;;  %1021 = vmatprep.subr.bf16.mxu0 %v1516_v25  ;;  %v607_v8 = vld [vmem:[#allocation2] sm:$0xff]  ;;  %v608_v12 = vld [vmem:[#allocation2 + $0x8] sm:$0xff]  ;;  %v1105_v24 = vsub.s32 (!%p1418_p13), 0, %v1104_v22  ;;  %v1109_v25 = vsub.s32 (!%p1418_p13), 1, %v1104_v22 }
  0x68   : > { %1062 = vmatprep.subr.bf16.mxu1 %v1518_v26  ;;  %v1101_v23 = vld [vmem:[%s579_s15] sm:$0x3] (!%p1418_p13) }
  0x6a   : > { %1022 = vmatpush1.bf16.msra.mxu0 %v1520_v27 }
  0x6b   : > { %1063 = vmatpush1.bf16.msra.mxu1 %v1521_v28  ;;  %1023 = vmatprep.subr.bf16.mxu0 %v1522_v29  ;;  %v1106_v28 = vrot.slane (!%p1418_p13), %v1101_v23, %v1105_v24  ;;  %v1110_v29 = vrot.slane (!%p1418_p13), %v1101_v23, %v1109_v25 }
  0x6c   : > { %1064 = vmatprep.subr.bf16.mxu1 %v1524_v30 }
  0x6e   : > { %1024 = vmatpush1.bf16.msra.mxu0 %v1526_v31 }
  0x6f   : > { %1065 = vmatpush1.bf16.msra.mxu1 %v1527_v32  ;;  %1025 = vmatprep.subr.bf16.mxu0 %v1528_v33 }
  0x70   : > { %1066 = vmatprep.subr.bf16.mxu1 %v1530_v34 }
  0x72   : > { %1026 = vmatpush1.bf16.msra.mxu0 %v1532_v35 }
  0x73   : > { %1067 = vmatpush1.bf16.msra.mxu1 %v1533_v36  ;;  %1027 = vmatprep.subr.bf16.mxu0 %v1534_v37 }
  0x74   : > { %1068 = vmatprep.subr.bf16.mxu1 %v1536_v38 }
  0x76   : > { %1028 = vmatpush1.bf16.msra.mxu0 %v1538_v39 }
  0x77   : > { %1069 = vmatpush1.bf16.msra.mxu1 %v1539_v40  ;;  %1029 = vmatprep.subr.bf16.mxu0 %v1540_v41 }
  0x78   : > { %1070 = vmatprep.subr.bf16.mxu1 %v1542_v42 }
  0x7a   : > { %1030 = vmatpush1.bf16.msra.mxu0 %v1544_v43 }
  0x7b   : > { %1071 = vmatpush1.bf16.msra.mxu1 %v1545_v44  ;;  %1031 = vmatprep.subr.bf16.mxu0 %v1546_v45 }
  0x7c   : > { %1072 = vmatprep.subr.bf16.mxu1 %v1548_v46 }
  0x7e   : > { %1032 = vmatpush1.bf16.msra.mxu0 %v1550_v50 }
  0x7f   : > { %1073 = vmatpush1.bf16.msra.mxu1 %v1551_v51  ;;  %1033 = vmatprep.subr.bf16.mxu0 %v1552_v53 }
  0x80   : > { %1074 = vmatprep.subr.bf16.mxu1 %v1554_v54 }
  0x82   : > { %1034 = vmatpush1.bf16.msra.mxu0 %v1556_v55 }
  0x83   : > { %1075 = vmatpush1.bf16.msra.mxu1 %v1557_v56  ;;  %1035 = vmatprep.subr.bf16.mxu0 %v1558_v57 }
  0x84   : > { %1076 = vmatprep.subr.bf16.mxu1 %v1560_v58 }
  0x86   : > { %1036 = vmatpush1.bf16.msra.mxu0 %v1562_v59 }
  0x87   : > { %1077 = vmatpush1.bf16.msra.mxu1 %v1563_v60  ;;  %1037 = vmatprep.subr.bf16.mxu0 %v1564_v61 }
  0x88   : > { %1078 = vmatprep.subr.bf16.mxu1 %v1566_v62 }
  0x8a   : > { %1038 = vmatpush1.bf16.msra.mxu0 %v1568_v63 }
  0x8b   : > { %1079 = vmatpush1.bf16.msra.mxu1 %v1569_v0  ;;  %1039 = vmatprep.subr.bf16.mxu0 %v1570_v1 }
  0x8c   : > { %1080 = vmatprep.subr.bf16.mxu1 %v1572_v2 }
  0x8e   : > { %1040 = vmatpush1.bf16.msra.mxu0 %v1574_v3 }
  0x8f   : > { %1081 = vmatpush1.bf16.msra.mxu1 %v1575_v4 }
  0x91   : > { %1042 = vmatmul.mubr.bf16.vlgmr.msra.gmra.mrb[0].mxu0 %v1350_v5 }
  0x92   : > { %1083 = vmatmul.mubr.bf16.vlgmr.msra.gmra.mrb[0].mxu1 %v1352_v6 }
 0x164   : > { %v1043_v7 = vpop.f32.mrb[0].mxu0 }
 0x165   : > { %v1084_v9 = vpop.f32.mrb[0].mxu1  ;;  %v1045_v11 = vpop.f32.mrb[1].mxu0  ;;  %1098 = sbr.rel (%p1418_p13) target bundleno = 391 (0x187), region = 78 }
 0x166   : > { %v1085_v10 = vadd.f32 %v1084_v9, %v1043_v7  ;;  %v1086_v13 = vpop.f32.mrb[1].mxu1  ;;  %v1047_v15 = vpop.f32.mrb[2].mxu0 }
 0x167   : > { %v1087_v14 = vadd.f32 %v1086_v13, %v1045_v11  ;;  %v1088_v16 = vpop.f32.mrb[2].mxu1  ;;  %v1048_v18 = vpop.f32.mrb[3].mxu0 }
 0x168   : > { %v1091_v17 = vadd.f32 %v1085_v10, %v607_v8  ;;  %v1089_v19 = vpop.f32.mrb[3].mxu1 }
 0x169   : > { %v1092_v20 = vadd.f32 %v1087_v14, %v608_v12 }
 0x16a   : > { %1093 = vst [vmem:[#allocation2] sm:$0xff] %v1091_v17 }
 0x16b   : > { %1094 = vst [vmem:[#allocation2 + $0x8] sm:$0xff] %v1092_v20 }
 0x171   : > { %v1099_v26 = vld [vmem:[#allocation2] sm:$0xff] }
 0x172   : > { %v1100_v27 = vld [vmem:[#allocation2 + $0x8] sm:$0xff]  ;;  %v1113_v30 = vadd.f32 %v1106_v28, %v1099_v26 }
 0x173   : > { %v1114_v31 = vadd.f32 %v1110_v29, %v1100_v27 }
 0x174   : > { %1115 = vst [vmem:[%s1874_s9] sm:$0xff] %v1113_v30  ;;  %v1117_v32 = vmul.f32 %v1113_v30, %v1113_v30  ;;  %v1119_v34 = vrot.slane %v1113_v30, 4 }
 0x175   : > { %v1118_v33 = vmul.f32 %v1114_v31, %v1114_v31  ;;  %v1125_v35 = vrot.slane %v1114_v31, 4  ;;  %1116 = vst [vmem:[%s1874_s9 + $0x8] sm:$0xff] %v1114_v31 }
 0x176   : > { %v1120_v36 = vadd.f32 %v1119_v34, %v1113_v30  ;;  %v1131_v38 = vrot.slane %v1117_v32, 4 }
 0x177   : > { %v1126_v37 = vadd.f32 %v1125_v35, %v1114_v31  ;;  %v1137_v39 = vrot.slane %v1118_v33, 4 }
 0x178   : > { %v1121_v40 = vrot.slane %v1120_v36, 2  ;;  %v1132_v42 = vadd.f32 %v1131_v38, %v1117_v32 }
 0x179   : > { %v1127_v41 = vrot.slane %v1126_v37, 2  ;;  %v1138_v43 = vadd.f32 %v1137_v39, %v1118_v33 }
 0x17a   : > { %v1122_v44 = vadd.f32 %v1121_v40, %v1120_v36  ;;  %v1133_v46 = vrot.slane %v1132_v42, 2 }
 0x17b   : > { %v1128_v45 = vadd.f32 %v1127_v41, %v1126_v37  ;;  %v1139_v47 = vrot.slane %v1138_v43, 2 }
 0x17c   : > { %v1123_v48 = vrot.slane %v1122_v44, 1  ;;  %v1134_v50 = vadd.f32 %v1133_v46, %v1132_v42 }
 0x17d   : > { %v1129_v49 = vrot.slane %v1128_v45, 1  ;;  %v1140_v51 = vadd.f32 %v1139_v47, %v1138_v43 }
 0x17e   : > { %v1124_v52 = vadd.f32 %v1123_v48, %v1122_v44  ;;  %v1135_v54 = vrot.slane %v1134_v50, 1 }
 0x17f   : > { %v1130_v53 = vadd.f32 %v1129_v49, %v1128_v45  ;;  %v1141_v55 = vrot.slane %v1140_v51, 1 }
 0x180   : > { %v1136_v56 = vadd.f32 %v1135_v54, %v1134_v50 }
 0x181   : > { %v1142_v57 = vadd.f32 %v1141_v55, %v1140_v51 }
 0x182   : > { %v1144_v58 = vsel %vm1143_vm0, %v1124_v52, %v1136_v56 }
 0x183   : > { %v1145_v59 = vsel %vm1143_vm0, %v1130_v53, %v1142_v57 }
 0x184   : > { %v1148_v60 = vcombine.low %v1144_v58, %v1145_v59 }
 0x186   : > { %1419 = vst.sshfl [vmem:[%s1880_s13] sm:$0x33 pattern:$0x76325410] %v1148_v60 }
 0x187 PF: > { %s15_s21 = sadd.s32 1, %s1634_s21   ;;  %s1986_s15 = smov %s1614_s16 }
 0x188   : > { %p12_p0 = scmp.ge.s32.totalorder %s15_s21, 18   ;;  %s1987_s16 = smov %s1713_s28 }
 0x189   : > { %s1988_s17 = smov %s1626_s19  ;;  %s1989_s18 = smov %s1630_s20 }
 0x18a   : > { %s1990_s19 = smov %s1993_s22  ;;  %s1991_s20 = smov %s1997_s23 }
 0x18b   :  { %14 = sbr.rel (!%p12_p0) target bundleno = 4 (0x4), region = 131 }

// kernel: discriminator_forward.15
= control target key start
LH: loop header
LB: loop body
LE: loop exit
PB: predicated region body
PF: predicated region fallthrough
CT: control target
= control target key end

     0   :  { %s940_s12 = smov 0   ;;  %s942_s13 = smov 0   ;;  %s1023_s0 = inlined_call_operand.vmem [shape: bf16[8,8192], index: 0, kind: input, shape index: {}]   ;;  %s1024_s1 = inlined_call_operand.vmem [shape: bf16[8192,128], index: 1, kind: input, shape index: {}]   ;;  %s1025_s2 = inlined_call_operand.vmem [shape: f32[1,128], index: 2, kind: input, shape index: {}]   ;;  %s1026_s3 = inlined_call_operand.vmem [shape: f32[8,128], index: 3, kind: output, shape index: {}]  }
   0x1   :  { %s944_s14 = smov 0  }
   0x2 LB: > { %s25_s15 = sadd.s32 1, %s913_s13  ;;  %p743_p0 = scmp.ge.s32.totalorder %s917_s14, 1  ;;  %s917_s14 = sphi %s944_s14, %s13_s14   ;;  %s913_s13 = sphi %s942_s13, %s1028_s13   ;;  %s909_s12 = sphi %s940_s12, %s1027_s12  }
   0x3   : > { %p26_p1 = scmp.ge.s32.totalorder %s25_s15, 16  ;;  %p189_p2 = scmp.lt.s32.totalorder %s917_s14, 17 }
   0x5   : > { %s1030_s15 = smov (%p26_p1, %s25_s15), 0  ;;  %p190_p3 = pnand %p743_p0, %p189_p2 }
   0x6   : > { %s744_s16 = sshll.u32 (!%p190_p3), %s909_s12, 2  ;;  %s746_s17 = sshll.u32 (!%p190_p3), %s909_s12, 6 }
   0x7   : > { %193 = sbr.rel (%p190_p3) target bundleno = 289 (0x121), region = 32  ;;  %p233_p4 = scmp.lt.s32.totalorder (!%p190_p3), %s744_s16, 63 }
   0x8   : > { %p241_p5 = scmp.lt.s32.totalorder (!%p190_p3), %s746_s17, 1023  ;;  %p748_p6 = scmp.ne.s32.totalorder (!%p190_p3), %s909_s12, 0 }
   0xe   : > { %s1032_s16 = smov (!%p233_p4, %s744_s16), 63  ;;  %s1034_s17 = smov (!%p241_p5, %s746_s17), 1023 }
   0xf   : > { %s745_s18 = sshll.u32 %s1032_s16, 2  ;;  %s747_s22 = sshll.u32 %s1034_s17, 2  ;;  %v919_v0 = vmov (!%p748_p6), 0.0  }
  0x10   : > { %s965_s21 = scalar_lea.vmem %s1023_s0, %s745_s18  ;;  %s970_s25 = scalar_lea.vmem %s1024_s1, %s747_s22  ;;  %264 = vst [vmem:[#allocation2] sm:$0xff] (!%p748_p6), %v919_v0 }
  0x11   : > { %263 = sbr.rel (%p748_p6) target bundleno = 24 (0x18), region = 36 }
  0x18 PF: > { %v859_v1 = vld [vmem:[%s970_s25 + $0x40] sm:$0xff]   ;;  %v863_v5 = vld [vmem:[%s970_s25 + $0x48] sm:$0xff]   ;;  %v867_v9 = vld [vmem:[%s970_s25 + $0x50] sm:$0xff]   ;;  %p785_p7 = scmp.ne.s32.totalorder %s909_s12, 15 }
  0x19   : > { %v860_v2 = vld [vmem:[%s970_s25 + $0xc0] sm:$0xff]   ;;  %790 = vmatprep.subr.bf16.mxu0 %v859_v1  ;;  %v864_v6 = vld [vmem:[%s970_s25 + $0xc8] sm:$0xff]   ;;  %v868_v10 = vld [vmem:[%s970_s25 + $0xd0] sm:$0xff]  }
  0x1a   : > { %v861_v3 = vld [vmem:[%s970_s25] sm:$0xff]   ;;  %812 = vmatprep.subr.bf16.mxu1 %v860_v2  ;;  %v865_v7 = vld [vmem:[%s970_s25 + $0x8] sm:$0xff]   ;;  %v869_v11 = vld [vmem:[%s970_s25 + $0x10] sm:$0xff]  }
  0x1b   : > { %v862_v4 = vld [vmem:[%s970_s25 + $0x80] sm:$0xff]   ;;  %791 = vmatpush3.bf16.msra.mxu0 %v861_v3  ;;  %v866_v8 = vld [vmem:[%s970_s25 + $0x88] sm:$0xff]   ;;  %v870_v12 = vld [vmem:[%s970_s25 + $0x90] sm:$0xff]  }
  0x1c   : > { %813 = vmatpush3.bf16.msra.mxu1 %v862_v4  ;;  %792 = vmatprep.subr.bf16.mxu0 %v863_v5  ;;  %v871_v13 = vld [vmem:[%s970_s25 + $0x58] sm:$0xff]   ;;  %v875_v17 = vld [vmem:[%s970_s25 + $0x60] sm:$0xff]   ;;  %v879_v21 = vld [vmem:[%s970_s25 + $0x68] sm:$0xff]  }
  0x1d   : > { %814 = vmatprep.subr.bf16.mxu1 %v864_v6  ;;  %v872_v14 = vld [vmem:[%s970_s25 + $0xd8] sm:$0xff]   ;;  %v876_v18 = vld [vmem:[%s970_s25 + $0xe0] sm:$0xff]   ;;  %v880_v22 = vld [vmem:[%s970_s25 + $0xe8] sm:$0xff]  }
  0x1e   : > { %v873_v15 = vld [vmem:[%s970_s25 + $0x18] sm:$0xff]   ;;  %v877_v19 = vld [vmem:[%s970_s25 + $0x20] sm:$0xff]   ;;  %v881_v23 = vld [vmem:[%s970_s25 + $0x28] sm:$0xff]  }
  0x1f   : > { %793 = vmatpush3.bf16.msra.mxu0 %v865_v7  ;;  %v874_v16 = vld [vmem:[%s970_s25 + $0x98] sm:$0xff]   ;;  %v878_v20 = vld [vmem:[%s970_s25 + $0xa0] sm:$0xff]   ;;  %v882_v24 = vld [vmem:[%s970_s25 + $0xa8] sm:$0xff]  }
  0x20   : > { %815 = vmatpush3.bf16.msra.mxu1 %v866_v8  ;;  %794 = vmatprep.subr.bf16.mxu0 %v867_v9  ;;  %v883_v25 = vld [vmem:[%s970_s25 + $0x70] sm:$0xff]   ;;  %v887_v29 = vld [vmem:[%s970_s25 + $0x78] sm:$0xff]   ;;  %v266_v33 = vld [vmem:[%s965_s21] sm:$0xff] }
  0x21   : > { %816 = vmatprep.subr.bf16.mxu1 %v868_v10  ;;  %v884_v26 = vld [vmem:[%s970_s25 + $0xf0] sm:$0xff]   ;;  %v888_v30 = vld [vmem:[%s970_s25 + $0xf8] sm:$0xff]   ;;  %v267_v34 = vld [vmem:[%s965_s21 + $0x8] sm:$0xff]  ;;  %v749_v35 = vcombine.low %v266_v33, %v266_v33  ;;  %v750_v36 = vcombine.high %v266_v33, %v266_v33 }
  0x22   : > { %v885_v27 = vld [vmem:[%s970_s25 + $0x30] sm:$0xff]   ;;  %v889_v31 = vld [vmem:[%s970_s25 + $0x38] sm:$0xff]   ;;  %v751_v37 = vcombine.low %v267_v34, %v267_v34  ;;  %v752_v38 = vcombine.high %v267_v34, %v267_v34  ;;  %v265_v47 = vld [vmem:[#allocation2] sm:$0xff] }
  0x23   : > { %795 = vmatpush3.bf16.msra.mxu0 %v869_v11  ;;  %v886_v28 = vld [vmem:[%s970_s25 + $0xb0] sm:$0xff]   ;;  %v890_v32 = vld [vmem:[%s970_s25 + $0xb8] sm:$0xff]   ;;  %570 = vmatprep.mubr.bf16.mxu0 %v750_v36  ;;  %v786_v53 = vld [vmem:[%s1025_s2] ss:$0 sm:$0xff] (!%p785_p7) }
  0x24   : > { %817 = vmatpush3.bf16.msra.mxu1 %v870_v12  ;;  %796 = vmatprep.subr.bf16.mxu0 %v871_v13 }
  0x25   : > { %818 = vmatprep.subr.bf16.mxu1 %v872_v14  ;;  %610 = vmatprep.mubr.bf16.mxu1 %v752_v38 }
  0x27   : > { %797 = vmatpush3.bf16.msra.mxu0 %v873_v15 }
  0x28   : > { %819 = vmatpush3.bf16.msra.mxu1 %v874_v16  ;;  %798 = vmatprep.subr.bf16.mxu0 %v875_v17 }
  0x29   : > { %820 = vmatprep.subr.bf16.mxu1 %v876_v18 }
  0x2b   : > { %799 = vmatpush3.bf16.msra.mxu0 %v877_v19 }
  0x2c   : > { %821 = vmatpush3.bf16.msra.mxu1 %v878_v20  ;;  %800 = vmatprep.subr.bf16.mxu0 %v879_v21 }
  0x2d   : > { %822 = vmatprep.subr.bf16.mxu1 %v880_v22 }
  0x2f   : > { %801 = vmatpush3.bf16.msra.mxu0 %v881_v23 }
  0x30   : > { %823 = vmatpush3.bf16.msra.mxu1 %v882_v24  ;;  %802 = vmatprep.subr.bf16.mxu0 %v883_v25 }
  0x31   : > { %824 = vmatprep.subr.bf16.mxu1 %v884_v26 }
  0x33   : > { %803 = vmatpush3.bf16.msra.mxu0 %v885_v27 }
  0x34   : > { %825 = vmatpush3.bf16.msra.mxu1 %v886_v28  ;;  %804 = vmatprep.subr.bf16.mxu0 %v887_v29 }
  0x35   : > { %826 = vmatprep.subr.bf16.mxu1 %v888_v30 }
  0x37   : > { %805 = vmatpush3.bf16.msra.mxu0 %v889_v31 }
  0x38   : > { %827 = vmatpush3.bf16.msra.mxu1 %v890_v32 }
  0x3a   : > { %571 = vmatmul.mubr.bf16.vlgmr.msra.gmra.mrb[0].mxu0 %v749_v35 }
  0x3b   : > { %611 = vmatmul.mubr.bf16.vlgmr.msra.gmra.mrb[0].mxu1 %v751_v37 }
 0x10d   : > { %v806_v39 = vpop.f32.mrb[0].mxu0 }
 0x10e   : > { %v828_v40 = vpop.f32.mrb[0].mxu1  ;;  %v807_v41 = vpop.f32.mrb[1].mxu0 }
 0x10f   : > { %v829_v42 = vpop.f32.mrb[1].mxu1  ;;  %v808_v43 = vadd.f32 %v807_v41, %v806_v39  ;;  %v809_v45 = vpop.f32.mrb[2].mxu0 }
 0x110   : > { %v830_v44 = vadd.f32 %v829_v42, %v828_v40  ;;  %v831_v46 = vpop.f32.mrb[2].mxu1  ;;  %v810_v48 = vpop.f32.mrb[3].mxu0  ;;  %623 = sbr.rel (%p785_p7) target bundleno = 289 (0x121), region = 40 }
 0x111   : > { %v832_v49 = vpop.f32.mrb[3].mxu1 }
 0x112   : > { %v613_v50 = vadd.f32 %v830_v44, %v808_v43 }
 0x114   : > { %v618_v51 = vadd.f32 %v613_v50, %v265_v47 }
 0x116   : > { %619 = vst [vmem:[#allocation2] sm:$0xff] %v618_v51 }
 0x11d   : > { %v624_v52 = vld [vmem:[#allocation2] sm:$0xff] }
 0x11e   : > { %v632_v54 = vadd.f32 %v786_v53, %v624_v52 }
 0x120   : > { %633 = vst [vmem:[%s1026_s3] sm:$0xff] %v632_v54 }
 0x121 PF: > { %s13_s14 = sadd.s32 1, %s917_s14   ;;  %s1027_s12 = smov %s913_s13 }
 0x122   : > { %p10_p8 = scmp.ge.s32.totalorder %s13_s14, 18   ;;  %s1028_s13 = smov %s1030_s15 }
 0x124   :  { %12 = sbr.rel (!%p10_p8) target bundleno = 2 (0x2), region = 76 }

</bundles_post_ra>
